<compile_context>
chip_gen: v7x
topology: tpu7x:2x2x1
jax: 0.10.0
libtpu: 0.0.40
codegen_flags: <defaults>
</compile_context>

<pallas_src>
import jax
import jax.numpy as jnp
from jax.experimental import pallas as pl
from jax.experimental.pallas import tpu as pltpu

EPS = 1e-5                      # PyTorch BatchNorm2d default eps
F32 = jnp.float32
BF16 = jnp.bfloat16


def _vmem_limit_bytes():
    """~75% of physical VMEM, capped: ~48 MiB on v7x, ~96 MiB on v5e/v6e."""
    try:
        cap = pltpu.get_tpu_info().vmem_capacity_bytes
        return min(int(cap) * 3 // 4, 100 * 1024 * 1024)
    except Exception:
        return 48 * 1024 * 1024


# --------------------------------------------------------------------------- #
# In-kernel helpers
# --------------------------------------------------------------------------- #

def _pad_taps(x, H, W, C):
    """Build the 3x3-conv matmul operand from an UNPADDED (H, W, C) input.

    Spatial zero padding is assembled in VMEM (no padded HBM tensors):
    returns ((H+2)*W, 3*C) with rows = (padded_row, col) and lanes = (dx, c).
    """
    zr = jnp.zeros((1, W, C), x.dtype)
    xv = jnp.concatenate([zr, x, zr], axis=0)                    # (H+2, W, C)
    zc = jnp.zeros((H + 2, 1, C), x.dtype)
    pieces = [jnp.concatenate([zc, xv[:, :W - 1, :]], axis=1),   # dx = 0
              xv,                                                # dx = 1
              jnp.concatenate([xv[:, 1:, :], zc], axis=1)]       # dx = 2
    return jnp.concatenate(pieces, axis=-1).reshape((H + 2) * W, 3 * C)


def _conv3x3(xw, w_ref, H, W):
    """xw: ((H+2)*W, 3*C); w_ref: (3, 3*C, Cout) (leading axis = dy tap).

    dx taps live in the matmul K dim; dy taps are 3 row-shifted slices of the
    same operand.  Returns f32 (H*W, Cout).
    """
    acc = jnp.dot(xw[0:H * W, :], w_ref[0], preferred_element_type=jnp.float32)
    for dy in (1, 2):
        acc = acc + jnp.dot(xw[dy * W: dy * W + H * W, :], w_ref[dy],
                            preferred_element_type=jnp.float32)
    return acc


def _sums(acc):
    """Per-channel (sum, sum-of-squares) partials for BatchNorm."""
    return jnp.concatenate([jnp.sum(acc, axis=0, keepdims=True),
                            jnp.sum(acc * acc, axis=0, keepdims=True)], axis=0)


# --------------------------------------------------------------------------- #
# Kernels (one batch element per grid step unless noted)
# --------------------------------------------------------------------------- #

def upconv_kernel(x1_ref, w_ref, bt_ref, y_ref):
    """ConvTranspose2d(k=2, s=2) as one matmul.

    x1_ref: (H1, W1, Cin) bf16; w_ref: (Cin, 4*Cup) bf16, lanes = (a, b, cu);
    bt_ref: (1, 4*Cup) f32; y_ref: (H1, 2, W1, 2*Cup) bf16.
    The output layout reshapes (row-major, free) to the interleaved
    (H, W, Cup) = (2*H1, 2*W1, Cup) in the wrapper.
    """
    H1, W1, Cin = x1_ref.shape
    TC = y_ref.shape[-1]                                   # = 2 * Cup
    z = jnp.dot(x1_ref[...].reshape(H1 * W1, Cin), w_ref[...],
                preferred_element_type=jnp.float32) + bt_ref[...]
    z = z.astype(jnp.bfloat16)                             # lanes (a, b, cu)
    for a in range(2):                                     # output row parity
        y_ref[:, a, :, :] = z[:, a * TC:(a + 1) * TC].reshape(H1, W1, TC)


def conv1_kernel(x2_ref, y_ref, w1f_ref, c1_ref, st_ref):
    """conv1 of cat([x2, up(x1)]); concat + zero-pad done in VMEM.

    x2_ref: (H, W, C2) bf16; y_ref: (H, W, Cup) bf16;
    w1f_ref: (3, 3*(C2+Cup), Cmid) bf16 (rows ordered (dx, x2-ch, up-ch));
    c1_ref: (H, W, Cmid) bf16 raw (pre-BN) conv1; st_ref: (2, Cmid) f32.
    """
    H, W, _ = x2_ref.shape
    Cmid = w1f_ref.shape[-1]
    xcat = jnp.concatenate([x2_ref[...], y_ref[...]], axis=-1)   # torch.cat order
    xw = _pad_taps(xcat, H, W, xcat.shape[-1])
    acc = _conv3x3(xw, w1f_ref, H, W)
    c1_ref[...] = acc.astype(c1_ref.dtype).reshape(H, W, Cmid)
    st_ref[...] = _sums(acc)


def conv2_kernel(c1_ref, sc_ref, sh_ref, w2f_ref, c2_ref, st_ref):
    """BN1 (folded scale/shift) + ReLU + conv2 + BN2 partials.

    c1_ref: (H, W, Cmid) bf16 raw conv1; sc/sh: (1, Cmid) f32;
    w2f_ref: (3, 3*Cmid, Cout) bf16; c2_ref: (H, W, Cout) f32; st: (2, Cout).
    """
    H, W, Cmid = c1_ref.shape
    Cout = w2f_ref.shape[-1]
    h = jnp.maximum(c1_ref[...].astype(jnp.float32) * sc_ref[...] + sh_ref[...],
                    0.0)
    xw = _pad_taps(h.astype(jnp.bfloat16), H, W, Cmid)
    acc = _conv3x3(xw, w2f_ref, H, W)
    c2_ref[...] = acc.reshape(H, W, Cout)
    st_ref[...] = _sums(acc)


def bn_relu_kernel(c_ref, sc_ref, sh_ref, o_ref):
    """Final BN2 affine + ReLU (row-tiled, purely elementwise)."""
    o_ref[...] = jnp.maximum(c_ref[...] * sc_ref[...] + sh_ref[...], 0.0)


# --------------------------------------------------------------------------- #
# Wrapper
# --------------------------------------------------------------------------- #

def _bn_affine(stats, gamma, beta, count):
    """Reduce per-sample (sum, sumsq) partials -> folded BN scale / shift."""
    s = jnp.sum(stats, axis=0)                       # (2, C)
    mu = s[0] / count
    var = jnp.maximum(s[1] / count - mu * mu, 0.0)
    scale = gamma * jax.lax.rsqrt(var + EPS)
    shift = beta - mu * scale
    return scale.reshape(1, -1), shift.reshape(1, -1)


def up_forward(x1_nchw, x2_nchw, params):
    """Forward of `up` (bilinear=False), training-mode BatchNorm, NCHW in/out."""
    N, Cin, H1, W1 = x1_nchw.shape
    C2 = x2_nchw.shape[1]
    H, W = 2 * H1, 2 * W1
    Cup = params["wt"].shape[1]
    Ccat = C2 + Cup
    Cmid = params["w1"].shape[-1]
    Cout = params["w2"].shape[-1]

    vmem = _vmem_limit_bytes()
    cparams = lambda sem: pltpu.CompilerParams(dimension_semantics=sem,
                                               vmem_limit_bytes=vmem)

    # ---- parameter prep (tiny; K-fold + bf16 cast; no channel padding) ------
    wt = params["wt"].astype(F32)                               # (Cin, Cup, 2, 2)
    wtf = jnp.transpose(wt, (0, 2, 3, 1)).reshape(Cin, 4 * Cup).astype(BF16)
    btf = jnp.tile(params["bt"].astype(F32), 4).reshape(1, 4 * Cup)
    w1f = params["w1"].astype(BF16).reshape(3, 3 * Ccat, Cmid)  # HWIO, I=[x2|up]
    w2f = params["w2"].astype(BF16).reshape(3, 3 * Cmid, Cout)
    g1, be1 = params["g1"].astype(F32), params["be1"].astype(F32)
    g2, be2 = params["g2"].astype(F32), params["be2"].astype(F32)
    # conv biases b1/b2 cancel exactly under training-mode BatchNorm mean
    # subtraction, so they are skipped in the kernel path.

    # ---- activations: NCHW -> NHWC bf16; no spatial / channel padding in HBM
    x1 = jnp.transpose(x1_nchw, (0, 2, 3, 1)).astype(BF16)
    x2 = jnp.transpose(x2_nchw, (0, 2, 3, 1)).astype(BF16)

    # ---- K1: ConvTranspose2d(k=2, s=2) -------------------------------------
    y6 = pl.pallas_call(
        upconv_kernel,
        grid=(N,),
        in_specs=[
            pl.BlockSpec((None, H1, W1, Cin), lambda n: (n, 0, 0, 0)),
            pl.BlockSpec((Cin, 4 * Cup), lambda n: (0, 0)),
            pl.BlockSpec((1, 4 * Cup), lambda n: (0, 0)),
        ],
        out_specs=pl.BlockSpec((None, H1, 2, W1, 2 * Cup),
                               lambda n: (n, 0, 0, 0, 0)),
        out_shape=jax.ShapeDtypeStruct((N, H1, 2, W1, 2 * Cup), BF16),
        compiler_params=cparams(("parallel",)),
    )(x1, wtf, btf)
    y = y6.reshape(N, H, W, Cup)          # free row-major regroup (no HBM pass)

    # ---- K2: conv1 (concat + zero-pad in VMEM) + BN1 partials ---------------
    c1, st1 = pl.pallas_call(
        conv1_kernel,
        grid=(N,),
        in_specs=[
            pl.BlockSpec((None, H, W, C2), lambda n: (n, 0, 0, 0)),
            pl.BlockSpec((None, H, W, Cup), lambda n: (n, 0, 0, 0)),
            pl.BlockSpec((3, 3 * Ccat, Cmid), lambda n: (0, 0, 0)),
        ],
        out_specs=(
            pl.BlockSpec((None, H, W, Cmid), lambda n: (n, 0, 0, 0)),
            pl.BlockSpec((None, 2, Cmid), lambda n: (n, 0, 0)),
        ),
        out_shape=(
            jax.ShapeDtypeStruct((N, H, W, Cmid), BF16),   # bf16 intermediate
            jax.ShapeDtypeStruct((N, 2, Cmid), F32),
        ),
        compiler_params=cparams(("parallel",)),
    )(x2, y, w1f)

    count = float(N * H * W)
    sc1, sh1 = _bn_affine(st1, g1, be1, count)

    # ---- K3: BN1 + ReLU + conv2 + BN2 partials ------------------------------
    c2, st2 = pl.pallas_call(
        conv2_kernel,
        grid=(N,),
        in_specs=[
            pl.BlockSpec((None, H, W, Cmid), lambda n: (n, 0, 0, 0)),
            pl.BlockSpec((1, Cmid), lambda n: (0, 0)),
            pl.BlockSpec((1, Cmid), lambda n: (0, 0)),
            pl.BlockSpec((3, 3 * Cmid, Cout), lambda n: (0, 0, 0)),
        ],
        out_specs=(
            pl.BlockSpec((None, H, W, Cout), lambda n: (n, 0, 0, 0)),
            pl.BlockSpec((None, 2, Cout), lambda n: (n, 0, 0)),
        ),
        out_shape=(
            jax.ShapeDtypeStruct((N, H, W, Cout), F32),
            jax.ShapeDtypeStruct((N, 2, Cout), F32),
        ),
        compiler_params=cparams(("parallel",)),
    )(c1, sc1, sh1, w2f)

    sc2, sh2 = _bn_affine(st2, g2, be2, count)

    # ---- K4: final BN2 + ReLU, row-tiled, real :Cout channels only ----------
    if H % 8 == 0:
        rb = max(8, (H // 4) // 8 * 8)
        while H % rb:
            rb -= 8
    else:
        rb = H
    out_nhwc = pl.pallas_call(
        bn_relu_kernel,
        grid=(N, H // rb),
        in_specs=[
            pl.BlockSpec((None, rb, W, Cout), lambda n, r: (n, r, 0, 0)),
            pl.BlockSpec((1, Cout), lambda n, r: (0, 0)),
            pl.BlockSpec((1, Cout), lambda n, r: (0, 0)),
        ],
        out_specs=pl.BlockSpec((None, rb, W, Cout), lambda n, r: (n, r, 0, 0)),
        out_shape=jax.ShapeDtypeStruct((N, H, W, Cout), F32),
        compiler_params=cparams(("parallel", "parallel")),
    )(c2, sc2, sh2)

    return jnp.transpose(out_nhwc, (0, 3, 1, 2))       # back to NCHW


# --------------------------------------------------------------------------- #
# Pure-JAX reference (bf16 matmul operands, f32 accumulation, f32 intermediates)
# --------------------------------------------------------------------------- #

def up_reference(x1_nchw, x2_nchw, params):
    f32, bf16 = jnp.float32, jnp.bfloat16
    x1 = jnp.transpose(x1_nchw, (0, 2, 3, 1)).astype(bf16)
    x2 = jnp.transpose(x2_nchw, (0, 2, 3, 1)).astype(bf16)
    N, H1, W1, _ = x1.shape
    wt = params["wt"].astype(bf16)
    Cup = wt.shape[1]
    # out[n, 2i+a, 2j+b, co] = sum_ci x1[n,i,j,ci] * wt[ci,co,a,b] + bt[co]
    y = jnp.einsum("nijc,cdab->niajbd", x1, wt, preferred_element_type=f32)
    y = y.reshape(N, 2 * H1, 2 * W1, Cup) + params["bt"].astype(f32)
    x = jnp.concatenate([x2, y.astype(bf16)], axis=-1)

    def conv_bn_relu(h, w, b, g, be):
        z = jax.lax.conv_general_dilated(
            h, w.astype(bf16), window_strides=(1, 1), padding="SAME",
            dimension_numbers=("NHWC", "HWIO", "NHWC"),
            preferred_element_type=f32)
        z = z + b.reshape(1, 1, 1, -1).astype(f32)
        mu = jnp.mean(z, axis=(0, 1, 2), keepdims=True)
        var = jnp.mean((z - mu) ** 2, axis=(0, 1, 2), keepdims=True)
        z = ((z - mu) * jax.lax.rsqrt(var + EPS) * g.reshape(1, 1, 1, -1)
             + be.reshape(1, 1, 1, -1))
        return jnp.maximum(z, 0.0)

    h = conv_bn_relu(x, params["w1"], params["b1"], params["g1"], params["be1"])
    h = conv_bn_relu(h.astype(bf16), params["w2"], params["b2"],
                     params["g2"], params["be2"])
    return jnp.transpose(h, (0, 3, 1, 2))


# --------------------------------------------------------------------------- #
# main
# --------------------------------------------------------------------------- #

if __name__ == "__main__":
    in_ch, out_ch = 8, 4          # standard U-Net "up": skip has in_ch-out_ch ch
    N, H1, W1 = 2, 8, 8           # x1 spatial; x2 / output spatial = 16 x 16

    ks = jax.random.split(jax.random.PRNGKey(0), 12)
    x1 = jax.random.normal(ks[0], (N, in_ch, H1, W1), jnp.float32)
    x2 = jax.random.normal(ks[1], (N, in_ch - out_ch, 2 * H1, 2 * W1),
                           jnp.float32)

    params = dict(
        # ConvTranspose2d(in_ch, out_ch, 2, stride=2): weight [in_ch, out_ch, 2, 2]
        wt=0.2 * jax.random.normal(ks[2], (in_ch, out_ch, 2, 2), jnp.float32),
        bt=0.1 * jax.random.normal(ks[3], (out_ch,), jnp.float32),
        # double_conv(in_ch, out_ch): 3x3 conv weights stored directly in HWIO
        w1=0.2 * jax.random.normal(ks[4], (3, 3, in_ch, out_ch), jnp.float32),
        b1=0.1 * jax.random.normal(ks[5], (out_ch,), jnp.float32),
        g1=1.0 + 0.1 * jax.random.normal(ks[6], (out_ch,), jnp.float32),
        be1=0.1 * jax.random.normal(ks[7], (out_ch,), jnp.float32),
        w2=0.2 * jax.random.normal(ks[8], (3, 3, out_ch, out_ch), jnp.float32),
        b2=0.1 * jax.random.normal(ks[9], (out_ch,), jnp.float32),
        g2=1.0 + 0.1 * jax.random.normal(ks[10], (out_ch,), jnp.float32),
        be2=0.1 * jax.random.normal(ks[11], (out_ch,), jnp.float32),
    )

    out = jax.block_until_ready(jax.jit(up_forward)(x1, x2, params))
    ref = jax.block_until_ready(jax.jit(up_reference)(x1, x2, params))

    assert out.shape == (N, out_ch, 2 * H1, 2 * W1), out.shape
    # Tolerance reflects the intentional bf16 storage of the raw conv1
    # intermediate (perf review item); the reference keeps it in f32.
    assert jnp.allclose(out, ref, rtol=1e-2, atol=1e-2), float(
        jnp.max(jnp.abs(out - ref)))
    print("KERNEL_OK")
</pallas_src>

<mosaic_0001>
module attributes {stable_mosaic.version = 11 : i64} {
  func.func @upconv_kernel(%arg0: i32, %arg1: memref<1x8x8x8xbf16, #tpu.memory_space<vmem>>, %arg2: memref<8x16xbf16, #tpu.memory_space<vmem>>, %arg3: memref<1x16xf32, #tpu.memory_space<vmem>>, %arg4: memref<1x8x2x8x8xbf16, #tpu.memory_space<vmem>>) attributes {dimension_semantics = [#tpu.dimension_semantics<parallel>], iteration_bounds = array<i64: 2>, scalar_prefetch = 0 : i64, scratch_operands = 0 : i64, tpu.core_type = #tpu.core_type<tc>, window_params = [{transform_indices = @transform_0, window_bounds = array<i64: 1, 8, 8, 8>}, {pipeline_mode = #tpu.pipeline_mode<synchronous>, transform_indices = @transform_1, window_bounds = array<i64: 8, 16>}, {pipeline_mode = #tpu.pipeline_mode<synchronous>, transform_indices = @transform_2, window_bounds = array<i64: 1, 16>}, {transform_indices = @transform_3, window_bounds = array<i64: 1, 8, 2, 8, 8>}]} {
    %c0 = arith.constant 0 : index
    %c0_0 = arith.constant 0 : index
    %c0_1 = arith.constant 0 : index
    %c0_2 = arith.constant 0 : index
    %0 = vector.load %arg1[%c0, %c0_0, %c0_1, %c0_2] : memref<1x8x8x8xbf16, #tpu.memory_space<vmem>>, vector<1x8x8x8xbf16>
    %1 = vector.shape_cast %0 : vector<1x8x8x8xbf16> to vector<8x8x8xbf16>
    %2 = vector.shape_cast %1 : vector<8x8x8xbf16> to vector<64x8xbf16>
    %c0_3 = arith.constant 0 : index
    %c0_4 = arith.constant 0 : index
    %3 = vector.load %arg2[%c0_3, %c0_4] : memref<8x16xbf16, #tpu.memory_space<vmem>>, vector<8x16xbf16>
    %cst = arith.constant dense<0.000000e+00> : vector<64x16xf32>
    %4 = tpu.matmul %2, %3, %cst {dimension_numbers = #tpu.dot_dimension_numbers<[1], [0], [0], [1], [0, 0, 1, 1], [], []>} : vector<64x8xbf16>, vector<8x16xbf16>, vector<64x16xf32> -> vector<64x16xf32>
    %c0_5 = arith.constant 0 : index
    %c0_6 = arith.constant 0 : index
    %5 = vector.load %arg3[%c0_5, %c0_6] : memref<1x16xf32, #tpu.memory_space<vmem>>, vector<1x16xf32>
    %6 = vector.broadcast %5 : vector<1x16xf32> to vector<64x16xf32>
    %7 = arith.addf %4, %6 : vector<64x16xf32>
    %8 = arith.truncf %7 : vector<64x16xf32> to vector<64x16xbf16>
    %9 = vector.extract_strided_slice %8 {offsets = [0, 0], sizes = [64, 8], strides = [1, 1]} : vector<64x16xbf16> to vector<64x8xbf16>
    %10 = vector.shape_cast %9 : vector<64x8xbf16> to vector<8x8x8xbf16>
    %c0_7 = arith.constant 0 : index
    %c0_8 = arith.constant 0 : index
    %c0_9 = arith.constant 0 : index
    %c0_10 = arith.constant 0 : index
    %c0_11 = arith.constant 0 : index
    %11 = vector.load %arg4[%c0_7, %c0_8, %c0_9, %c0_10, %c0_11] : memref<1x8x2x8x8xbf16, #tpu.memory_space<vmem>>, vector<1x8x1x8x8xbf16>
    %12 = vector.shape_cast %11 : vector<1x8x1x8x8xbf16> to vector<8x8x8xbf16>
    %13 = vector.shape_cast %10 : vector<8x8x8xbf16> to vector<1x8x1x8x8xbf16>
    tpu.vector_store %arg4[%c0_7, %c0_8, %c0_9, %c0_10, %c0_11], %13 {strides = array<i32>} : memref<1x8x2x8x8xbf16, #tpu.memory_space<vmem>>, vector<1x8x1x8x8xbf16>,
    %14 = vector.extract_strided_slice %8 {offsets = [0, 8], sizes = [64, 8], strides = [1, 1]} : vector<64x16xbf16> to vector<64x8xbf16>
    %15 = vector.shape_cast %14 : vector<64x8xbf16> to vector<8x8x8xbf16>
    %c0_12 = arith.constant 0 : index
    %c0_13 = arith.constant 0 : index
    %c1 = arith.constant 1 : index
    %c0_14 = arith.constant 0 : index
    %c0_15 = arith.constant 0 : index
    %16 = vector.load %arg4[%c0_12, %c0_13, %c1, %c0_14, %c0_15] : memref<1x8x2x8x8xbf16, #tpu.memory_space<vmem>>, vector<1x8x1x8x8xbf16>
    %17 = vector.shape_cast %16 : vector<1x8x1x8x8xbf16> to vector<8x8x8xbf16>
    %18 = vector.shape_cast %15 : vector<8x8x8xbf16> to vector<1x8x1x8x8xbf16>
    tpu.vector_store %arg4[%c0_12, %c0_13, %c1, %c0_14, %c0_15], %18 {strides = array<i32>} : memref<1x8x2x8x8xbf16, #tpu.memory_space<vmem>>, vector<1x8x1x8x8xbf16>,
    return
  }
  func.func @transform_0(%arg0: i32) -> (i32, i32, i32, i32) {
    %c0_i32 = arith.constant 0 : i32
    %c0_i32_0 = arith.constant 0 : i32
    %c0_i32_1 = arith.constant 0 : i32
    %c0_i32_2 = arith.constant 0 : i32
    return %arg0, %c0_i32, %c0_i32_0, %c0_i32_1 : i32, i32, i32, i32
  }
  func.func @transform_1(%arg0: i32) -> (i32, i32) {
    %c0_i32 = arith.constant 0 : i32
    %c0_i32_0 = arith.constant 0 : i32
    %c0_i32_1 = arith.constant 0 : i32
    return %c0_i32, %c0_i32_0 : i32, i32
  }
  func.func @transform_2(%arg0: i32) -> (i32, i32) {
    %c0_i32 = arith.constant 0 : i32
    %c0_i32_0 = arith.constant 0 : i32
    %c0_i32_1 = arith.constant 0 : i32
    return %c0_i32, %c0_i32_0 : i32, i32
  }
  func.func @transform_3(%arg0: i32) -> (i32, i32, i32, i32, i32) {
    %c0_i32 = arith.constant 0 : i32
    %c0_i32_0 = arith.constant 0 : i32
    %c0_i32_1 = arith.constant 0 : i32
    %c0_i32_2 = arith.constant 0 : i32
    %c0_i32_3 = arith.constant 0 : i32
    return %arg0, %c0_i32, %c0_i32_0, %c0_i32_1, %c0_i32_2 : i32, i32, i32, i32, i32
  }
}

module attributes {stable_mosaic.version = 11 : i64} {
  func.func @conv1_kernel(%arg0: i32, %arg1: memref<1x16x16x4xbf16, #tpu.memory_space<vmem>>, %arg2: memref<1x16x16x4xbf16, #tpu.memory_space<vmem>>, %arg3: memref<3x24x4xbf16, #tpu.memory_space<vmem>>, %arg4: memref<1x16x16x4xbf16, #tpu.memory_space<vmem>>, %arg5: memref<1x2x4xf32, #tpu.memory_space<vmem>>) attributes {dimension_semantics = [#tpu.dimension_semantics<parallel>], iteration_bounds = array<i64: 2>, scalar_prefetch = 0 : i64, scratch_operands = 0 : i64, tpu.core_type = #tpu.core_type<tc>, window_params = [{transform_indices = @transform_0, window_bounds = array<i64: 1, 16, 16, 4>}, {transform_indices = @transform_1, window_bounds = array<i64: 1, 16, 16, 4>}, {pipeline_mode = #tpu.pipeline_mode<synchronous>, transform_indices = @transform_2, window_bounds = array<i64: 3, 24, 4>}, {transform_indices = @transform_3, window_bounds = array<i64: 1, 16, 16, 4>}, {transform_indices = @transform_4, window_bounds = array<i64: 1, 2, 4>}]} {
    %c0 = arith.constant 0 : index
    %c0_0 = arith.constant 0 : index
    %c0_1 = arith.constant 0 : index
    %c0_2 = arith.constant 0 : index
    %0 = vector.load %arg1[%c0, %c0_0, %c0_1, %c0_2] : memref<1x16x16x4xbf16, #tpu.memory_space<vmem>>, vector<1x16x16x4xbf16>
    %1 = vector.shape_cast %0 : vector<1x16x16x4xbf16> to vector<16x16x4xbf16>
    %c0_3 = arith.constant 0 : index
    %c0_4 = arith.constant 0 : index
    %c0_5 = arith.constant 0 : index
    %c0_6 = arith.constant 0 : index
    %2 = vector.load %arg2[%c0_3, %c0_4, %c0_5, %c0_6] : memref<1x16x16x4xbf16, #tpu.memory_space<vmem>>, vector<1x16x16x4xbf16>
    %3 = vector.shape_cast %2 : vector<1x16x16x4xbf16> to vector<16x16x4xbf16>
    %4 = tpu.concatenate %1, %3 in 2 : vector<16x16x4xbf16>, vector<16x16x4xbf16> -> vector<16x16x8xbf16>
    %cst = arith.constant 0.000000e+00 : bf16
    %5 = vector.broadcast %cst : bf16 to vector<1x16x8xbf16>
    %6 = tpu.concatenate %5, %4, %5 in 0 : vector<1x16x8xbf16>, vector<16x16x8xbf16>, vector<1x16x8xbf16> -> vector<18x16x8xbf16>
    %cst_7 = arith.constant 0.000000e+00 : bf16
    %7 = vector.broadcast %cst_7 : bf16 to vector<18x1x8xbf16>
    %8 = vector.extract_strided_slice %6 {offsets = [0, 0, 0], sizes = [18, 15, 8], strides = [1, 1, 1]} : vector<18x16x8xbf16> to vector<18x15x8xbf16>
    %9 = tpu.concatenate %7, %8 in 1 : vector<18x1x8xbf16>, vector<18x15x8xbf16> -> vector<18x16x8xbf16>
    %10 = vector.extract_strided_slice %6 {offsets = [0, 1, 0], sizes = [18, 15, 8], strides = [1, 1, 1]} : vector<18x16x8xbf16> to vector<18x15x8xbf16>
    %11 = tpu.concatenate %10, %7 in 1 : vector<18x15x8xbf16>, vector<18x1x8xbf16> -> vector<18x16x8xbf16>
    %12 = tpu.concatenate %9, %6, %11 in 2 : vector<18x16x8xbf16>, vector<18x16x8xbf16>, vector<18x16x8xbf16> -> vector<18x16x24xbf16>
    %13 = vector.shape_cast %12 : vector<18x16x24xbf16> to vector<288x24xbf16>
    %14 = vector.extract_strided_slice %13 {offsets = [0, 0], sizes = [256, 24], strides = [1, 1]} : vector<288x24xbf16> to vector<256x24xbf16>
    %c0_8 = arith.constant 0 : index
    %c0_9 = arith.constant 0 : index
    %c0_10 = arith.constant 0 : index
    %15 = vector.load %arg3[%c0_8, %c0_9, %c0_10] : memref<3x24x4xbf16, #tpu.memory_space<vmem>>, vector<1x24x4xbf16>
    %16 = vector.shape_cast %15 : vector<1x24x4xbf16> to vector<24x4xbf16>
    %cst_11 = arith.constant dense<0.000000e+00> : vector<256x4xf32>
    %17 = tpu.matmul %14, %16, %cst_11 {dimension_numbers = #tpu.dot_dimension_numbers<[1], [0], [0], [1], [0, 0, 1, 1], [], []>} : vector<256x24xbf16>, vector<24x4xbf16>, vector<256x4xf32> -> vector<256x4xf32>
    %18 = vector.extract_strided_slice %13 {offsets = [16, 0], sizes = [256, 24], strides = [1, 1]} : vector<288x24xbf16> to vector<256x24xbf16>
    %c1 = arith.constant 1 : index
    %c0_12 = arith.constant 0 : index
    %c0_13 = arith.constant 0 : index
    %19 = vector.load %arg3[%c1, %c0_12, %c0_13] : memref<3x24x4xbf16, #tpu.memory_space<vmem>>, vector<1x24x4xbf16>
    %20 = vector.shape_cast %19 : vector<1x24x4xbf16> to vector<24x4xbf16>
    %cst_14 = arith.constant dense<0.000000e+00> : vector<256x4xf32>
    %21 = tpu.matmul %18, %20, %cst_14 {dimension_numbers = #tpu.dot_dimension_numbers<[1], [0], [0], [1], [0, 0, 1, 1], [], []>} : vector<256x24xbf16>, vector<24x4xbf16>, vector<256x4xf32> -> vector<256x4xf32>
    %22 = arith.addf %17, %21 : vector<256x4xf32>
    %23 = vector.extract_strided_slice %13 {offsets = [32, 0], sizes = [256, 24], strides = [1, 1]} : vector<288x24xbf16> to vector<256x24xbf16>
    %c2 = arith.constant 2 : index
    %c0_15 = arith.constant 0 : index
    %c0_16 = arith.constant 0 : index
    %24 = vector.load %arg3[%c2, %c0_15, %c0_16] : memref<3x24x4xbf16, #tpu.memory_space<vmem>>, vector<1x24x4xbf16>
    %25 = vector.shape_cast %24 : vector<1x24x4xbf16> to vector<24x4xbf16>
    %cst_17 = arith.constant dense<0.000000e+00> : vector<256x4xf32>
    %26 = tpu.matmul %23, %25, %cst_17 {dimension_numbers = #tpu.dot_dimension_numbers<[1], [0], [0], [1], [0, 0, 1, 1], [], []>} : vector<256x24xbf16>, vector<24x4xbf16>, vector<256x4xf32> -> vector<256x4xf32>
    %27 = arith.addf %22, %26 : vector<256x4xf32>
    %28 = arith.truncf %27 : vector<256x4xf32> to vector<256x4xbf16>
    %29 = vector.shape_cast %28 : vector<256x4xbf16> to vector<16x16x4xbf16>
    %c0_18 = arith.constant 0 : index
    %c0_19 = arith.constant 0 : index
    %c0_20 = arith.constant 0 : index
    %c0_21 = arith.constant 0 : index
    %30 = vector.load %arg4[%c0_18, %c0_19, %c0_20, %c0_21] : memref<1x16x16x4xbf16, #tpu.memory_space<vmem>>, vector<1x16x16x4xbf16>
    %31 = vector.shape_cast %30 : vector<1x16x16x4xbf16> to vector<16x16x4xbf16>
    %32 = vector.shape_cast %29 : vector<16x16x4xbf16> to vector<1x16x16x4xbf16>
    tpu.vector_store %arg4[%c0_18, %c0_19, %c0_20, %c0_21], %32 {strides = array<i32>} : memref<1x16x16x4xbf16, #tpu.memory_space<vmem>>, vector<1x16x16x4xbf16>,
    %cst_22 = arith.constant dense<0.000000e+00> : vector<4xf32>
    %33 = vector.multi_reduction <add>, %27, %cst_22 [0] : vector<256x4xf32> to vector<4xf32>
    %34 = vector.shape_cast %33 : vector<4xf32> to vector<1x4xf32>
    %35 = arith.mulf %27, %27 : vector<256x4xf32>
    %cst_23 = arith.constant dense<0.000000e+00> : vector<4xf32>
    %36 = vector.multi_reduction <add>, %35, %cst_23 [0] : vector<256x4xf32> to vector<4xf32>
    %37 = vector.shape_cast %36 : vector<4xf32> to vector<1x4xf32>
    %38 = tpu.concatenate %34, %37 in 0 : vector<1x4xf32>, vector<1x4xf32> -> vector<2x4xf32>
    %c0_24 = arith.constant 0 : index
    %c0_25 = arith.constant 0 : index
    %c0_26 = arith.constant 0 : index
    %39 = vector.load %arg5[%c0_24, %c0_25, %c0_26] : memref<1x2x4xf32, #tpu.memory_space<vmem>>, vector<1x2x4xf32>
    %40 = vector.shape_cast %39 : vector<1x2x4xf32> to vector<2x4xf32>
    %41 = vector.shape_cast %38 : vector<2x4xf32> to vector<1x2x4xf32>
    tpu.vector_store %arg5[%c0_24, %c0_25, %c0_26], %41 {strides = array<i32>} : memref<1x2x4xf32, #tpu.memory_space<vmem>>, vector<1x2x4xf32>,
    return
  }
  func.func @transform_0(%arg0: i32) -> (i32, i32, i32, i32) {
    %c0_i32 = arith.constant 0 : i32
    %c0_i32_0 = arith.constant 0 : i32
    %c0_i32_1 = arith.constant 0 : i32
    %c0_i32_2 = arith.constant 0 : i32
    return %arg0, %c0_i32, %c0_i32_0, %c0_i32_1 : i32, i32, i32, i32
  }
  func.func @transform_1(%arg0: i32) -> (i32, i32, i32, i32) {
    %c0_i32 = arith.constant 0 : i32
    %c0_i32_0 = arith.constant 0 : i32
    %c0_i32_1 = arith.constant 0 : i32
    %c0_i32_2 = arith.constant 0 : i32
    return %arg0, %c0_i32, %c0_i32_0, %c0_i32_1 : i32, i32, i32, i32
  }
  func.func @transform_2(%arg0: i32) -> (i32, i32, i32) {
    %c0_i32 = arith.constant 0 : i32
    %c0_i32_0 = arith.constant 0 : i32
    %c0_i32_1 = arith.constant 0 : i32
    %c0_i32_2 = arith.constant 0 : i32
    return %c0_i32, %c0_i32_0, %c0_i32_1 : i32, i32, i32
  }
  func.func @transform_3(%arg0: i32) -> (i32, i32, i32, i32) {
    %c0_i32 = arith.constant 0 : i32
    %c0_i32_0 = arith.constant 0 : i32
    %c0_i32_1 = arith.constant 0 : i32
    %c0_i32_2 = arith.constant 0 : i32
    return %arg0, %c0_i32, %c0_i32_0, %c0_i32_1 : i32, i32, i32, i32
  }
  func.func @transform_4(%arg0: i32) -> (i32, i32, i32) {
    %c0_i32 = arith.constant 0 : i32
    %c0_i32_0 = arith.constant 0 : i32
    %c0_i32_1 = arith.constant 0 : i32
    return %arg0, %c0_i32, %c0_i32_0 : i32, i32, i32
  }
}

module attributes {stable_mosaic.version = 11 : i64} {
  func.func @conv2_kernel(%arg0: i32, %arg1: memref<1x16x16x4xbf16, #tpu.memory_space<vmem>>, %arg2: memref<1x4xf32, #tpu.memory_space<vmem>>, %arg3: memref<1x4xf32, #tpu.memory_space<vmem>>, %arg4: memref<3x12x4xbf16, #tpu.memory_space<vmem>>, %arg5: memref<1x16x16x4xf32, #tpu.memory_space<vmem>>, %arg6: memref<1x2x4xf32, #tpu.memory_space<vmem>>) attributes {dimension_semantics = [#tpu.dimension_semantics<parallel>], iteration_bounds = array<i64: 2>, scalar_prefetch = 0 : i64, scratch_operands = 0 : i64, tpu.core_type = #tpu.core_type<tc>, window_params = [{transform_indices = @transform_0, window_bounds = array<i64: 1, 16, 16, 4>}, {pipeline_mode = #tpu.pipeline_mode<synchronous>, transform_indices = @transform_1, window_bounds = array<i64: 1, 4>}, {pipeline_mode = #tpu.pipeline_mode<synchronous>, transform_indices = @transform_2, window_bounds = array<i64: 1, 4>}, {pipeline_mode = #tpu.pipeline_mode<synchronous>, transform_indices = @transform_3, window_bounds = array<i64: 3, 12, 4>}, {transform_indices = @transform_4, window_bounds = array<i64: 1, 16, 16, 4>}, {transform_indices = @transform_5, window_bounds = array<i64: 1, 2, 4>}]} {
    %c0 = arith.constant 0 : index
    %c0_0 = arith.constant 0 : index
    %c0_1 = arith.constant 0 : index
    %c0_2 = arith.constant 0 : index
    %0 = vector.load %arg1[%c0, %c0_0, %c0_1, %c0_2] : memref<1x16x16x4xbf16, #tpu.memory_space<vmem>>, vector<1x16x16x4xbf16>
    %1 = vector.shape_cast %0 : vector<1x16x16x4xbf16> to vector<16x16x4xbf16>
    %2 = arith.extf %1 : vector<16x16x4xbf16> to vector<16x16x4xf32>
    %c0_3 = arith.constant 0 : index
    %c0_4 = arith.constant 0 : index
    %3 = vector.load %arg2[%c0_3, %c0_4] : memref<1x4xf32, #tpu.memory_space<vmem>>, vector<1x4xf32>
    %4 = vector.shape_cast %3 : vector<1x4xf32> to vector<1x1x4xf32>
    %5 = vector.broadcast %4 : vector<1x1x4xf32> to vector<16x16x4xf32>
    %6 = arith.mulf %2, %5 : vector<16x16x4xf32>
    %c0_5 = arith.constant 0 : index
    %c0_6 = arith.constant 0 : index
    %7 = vector.load %arg3[%c0_5, %c0_6] : memref<1x4xf32, #tpu.memory_space<vmem>>, vector<1x4xf32>
    %8 = vector.shape_cast %7 : vector<1x4xf32> to vector<1x1x4xf32>
    %9 = vector.broadcast %8 : vector<1x1x4xf32> to vector<16x16x4xf32>
    %10 = arith.addf %6, %9 : vector<16x16x4xf32>
    %cst = arith.constant 0.000000e+00 : f32
    %11 = vector.broadcast %cst : f32 to vector<16x16x4xf32>
    %12 = arith.maximumf %10, %11 : vector<16x16x4xf32>
    %13 = arith.truncf %12 : vector<16x16x4xf32> to vector<16x16x4xbf16>
    %cst_7 = arith.constant 0.000000e+00 : bf16
    %14 = vector.broadcast %cst_7 : bf16 to vector<1x16x4xbf16>
    %15 = tpu.concatenate %14, %13, %14 in 0 : vector<1x16x4xbf16>, vector<16x16x4xbf16>, vector<1x16x4xbf16> -> vector<18x16x4xbf16>
    %cst_8 = arith.constant 0.000000e+00 : bf16
    %16 = vector.broadcast %cst_8 : bf16 to vector<18x1x4xbf16>
    %17 = vector.extract_strided_slice %15 {offsets = [0, 0, 0], sizes = [18, 15, 4], strides = [1, 1, 1]} : vector<18x16x4xbf16> to vector<18x15x4xbf16>
    %18 = tpu.concatenate %16, %17 in 1 : vector<18x1x4xbf16>, vector<18x15x4xbf16> -> vector<18x16x4xbf16>
    %19 = vector.extract_strided_slice %15 {offsets = [0, 1, 0], sizes = [18, 15, 4], strides = [1, 1, 1]} : vector<18x16x4xbf16> to vector<18x15x4xbf16>
    %20 = tpu.concatenate %19, %16 in 1 : vector<18x15x4xbf16>, vector<18x1x4xbf16> -> vector<18x16x4xbf16>
    %21 = tpu.concatenate %18, %15, %20 in 2 : vector<18x16x4xbf16>, vector<18x16x4xbf16>, vector<18x16x4xbf16> -> vector<18x16x12xbf16>
    %22 = vector.shape_cast %21 : vector<18x16x12xbf16> to vector<288x12xbf16>
    %23 = vector.extract_strided_slice %22 {offsets = [0, 0], sizes = [256, 12], strides = [1, 1]} : vector<288x12xbf16> to vector<256x12xbf16>
    %c0_9 = arith.constant 0 : index
    %c0_10 = arith.constant 0 : index
    %c0_11 = arith.constant 0 : index
    %24 = vector.load %arg4[%c0_9, %c0_10, %c0_11] : memref<3x12x4xbf16, #tpu.memory_space<vmem>>, vector<1x12x4xbf16>
    %25 = vector.shape_cast %24 : vector<1x12x4xbf16> to vector<12x4xbf16>
    %cst_12 = arith.constant dense<0.000000e+00> : vector<256x4xf32>
    %26 = tpu.matmul %23, %25, %cst_12 {dimension_numbers = #tpu.dot_dimension_numbers<[1], [0], [0], [1], [0, 0, 1, 1], [], []>} : vector<256x12xbf16>, vector<12x4xbf16>, vector<256x4xf32> -> vector<256x4xf32>
    %27 = vector.extract_strided_slice %22 {offsets = [16, 0], sizes = [256, 12], strides = [1, 1]} : vector<288x12xbf16> to vector<256x12xbf16>
    %c1 = arith.constant 1 : index
    %c0_13 = arith.constant 0 : index
    %c0_14 = arith.constant 0 : index
    %28 = vector.load %arg4[%c1, %c0_13, %c0_14] : memref<3x12x4xbf16, #tpu.memory_space<vmem>>, vector<1x12x4xbf16>
    %29 = vector.shape_cast %28 : vector<1x12x4xbf16> to vector<12x4xbf16>
    %cst_15 = arith.constant dense<0.000000e+00> : vector<256x4xf32>
    %30 = tpu.matmul %27, %29, %cst_15 {dimension_numbers = #tpu.dot_dimension_numbers<[1], [0], [0], [1], [0, 0, 1, 1], [], []>} : vector<256x12xbf16>, vector<12x4xbf16>, vector<256x4xf32> -> vector<256x4xf32>
    %31 = arith.addf %26, %30 : vector<256x4xf32>
    %32 = vector.extract_strided_slice %22 {offsets = [32, 0], sizes = [256, 12], strides = [1, 1]} : vector<288x12xbf16> to vector<256x12xbf16>
    %c2 = arith.constant 2 : index
    %c0_16 = arith.constant 0 : index
    %c0_17 = arith.constant 0 : index
    %33 = vector.load %arg4[%c2, %c0_16, %c0_17] : memref<3x12x4xbf16, #tpu.memory_space<vmem>>, vector<1x12x4xbf16>
    %34 = vector.shape_cast %33 : vector<1x12x4xbf16> to vector<12x4xbf16>
    %cst_18 = arith.constant dense<0.000000e+00> : vector<256x4xf32>
    %35 = tpu.matmul %32, %34, %cst_18 {dimension_numbers = #tpu.dot_dimension_numbers<[1], [0], [0], [1], [0, 0, 1, 1], [], []>} : vector<256x12xbf16>, vector<12x4xbf16>, vector<256x4xf32> -> vector<256x4xf32>
    %36 = arith.addf %31, %35 : vector<256x4xf32>
    %37 = vector.shape_cast %36 : vector<256x4xf32> to vector<16x16x4xf32>
    %c0_19 = arith.constant 0 : index
    %c0_20 = arith.constant 0 : index
    %c0_21 = arith.constant 0 : index
    %c0_22 = arith.constant 0 : index
    %38 = vector.load %arg5[%c0_19, %c0_20, %c0_21, %c0_22] : memref<1x16x16x4xf32, #tpu.memory_space<vmem>>, vector<1x16x16x4xf32>
    %39 = vector.shape_cast %38 : vector<1x16x16x4xf32> to vector<16x16x4xf32>
    %40 = vector.shape_cast %37 : vector<16x16x4xf32> to vector<1x16x16x4xf32>
    tpu.vector_store %arg5[%c0_19, %c0_20, %c0_21, %c0_22], %40 {strides = array<i32>} : memref<1x16x16x4xf32, #tpu.memory_space<vmem>>, vector<1x16x16x4xf32>,
    %cst_23 = arith.constant dense<0.000000e+00> : vector<4xf32>
    %41 = vector.multi_reduction <add>, %36, %cst_23 [0] : vector<256x4xf32> to vector<4xf32>
    %42 = vector.shape_cast %41 : vector<4xf32> to vector<1x4xf32>
    %43 = arith.mulf %36, %36 : vector<256x4xf32>
    %cst_24 = arith.constant dense<0.000000e+00> : vector<4xf32>
    %44 = vector.multi_reduction <add>, %43, %cst_24 [0] : vector<256x4xf32> to vector<4xf32>
    %45 = vector.shape_cast %44 : vector<4xf32> to vector<1x4xf32>
    %46 = tpu.concatenate %42, %45 in 0 : vector<1x4xf32>, vector<1x4xf32> -> vector<2x4xf32>
    %c0_25 = arith.constant 0 : index
    %c0_26 = arith.constant 0 : index
    %c0_27 = arith.constant 0 : index
    %47 = vector.load %arg6[%c0_25, %c0_26, %c0_27] : memref<1x2x4xf32, #tpu.memory_space<vmem>>, vector<1x2x4xf32>
    %48 = vector.shape_cast %47 : vector<1x2x4xf32> to vector<2x4xf32>
    %49 = vector.shape_cast %46 : vector<2x4xf32> to vector<1x2x4xf32>
    tpu.vector_store %arg6[%c0_25, %c0_26, %c0_27], %49 {strides = array<i32>} : memref<1x2x4xf32, #tpu.memory_space<vmem>>, vector<1x2x4xf32>,
    return
  }
  func.func @transform_0(%arg0: i32) -> (i32, i32, i32, i32) {
    %c0_i32 = arith.constant 0 : i32
    %c0_i32_0 = arith.constant 0 : i32
    %c0_i32_1 = arith.constant 0 : i32
    %c0_i32_2 = arith.constant 0 : i32
    return %arg0, %c0_i32, %c0_i32_0, %c0_i32_1 : i32, i32, i32, i32
  }
  func.func @transform_1(%arg0: i32) -> (i32, i32) {
    %c0_i32 = arith.constant 0 : i32
    %c0_i32_0 = arith.constant 0 : i32
    %c0_i32_1 = arith.constant 0 : i32
    return %c0_i32, %c0_i32_0 : i32, i32
  }
  func.func @transform_2(%arg0: i32) -> (i32, i32) {
    %c0_i32 = arith.constant 0 : i32
    %c0_i32_0 = arith.constant 0 : i32
    %c0_i32_1 = arith.constant 0 : i32
    return %c0_i32, %c0_i32_0 : i32, i32
  }
  func.func @transform_3(%arg0: i32) -> (i32, i32, i32) {
    %c0_i32 = arith.constant 0 : i32
    %c0_i32_0 = arith.constant 0 : i32
    %c0_i32_1 = arith.constant 0 : i32
    %c0_i32_2 = arith.constant 0 : i32
    return %c0_i32, %c0_i32_0, %c0_i32_1 : i32, i32, i32
  }
  func.func @transform_4(%arg0: i32) -> (i32, i32, i32, i32) {
    %c0_i32 = arith.constant 0 : i32
    %c0_i32_0 = arith.constant 0 : i32
    %c0_i32_1 = arith.constant 0 : i32
    %c0_i32_2 = arith.constant 0 : i32
    return %arg0, %c0_i32, %c0_i32_0, %c0_i32_1 : i32, i32, i32, i32
  }
  func.func @transform_5(%arg0: i32) -> (i32, i32, i32) {
    %c0_i32 = arith.constant 0 : i32
    %c0_i32_0 = arith.constant 0 : i32
    %c0_i32_1 = arith.constant 0 : i32
    return %arg0, %c0_i32, %c0_i32_0 : i32, i32, i32
  }
}

module attributes {stable_mosaic.version = 11 : i64} {
  func.func @bn_relu_kernel(%arg0: i32, %arg1: i32, %arg2: memref<1x8x16x4xf32, #tpu.memory_space<vmem>>, %arg3: memref<1x4xf32, #tpu.memory_space<vmem>>, %arg4: memref<1x4xf32, #tpu.memory_space<vmem>>, %arg5: memref<1x8x16x4xf32, #tpu.memory_space<vmem>>) attributes {dimension_semantics = [#tpu.dimension_semantics<parallel>, #tpu.dimension_semantics<parallel>], iteration_bounds = array<i64: 2, 2>, scalar_prefetch = 0 : i64, scratch_operands = 0 : i64, tpu.core_type = #tpu.core_type<tc>, window_params = [{transform_indices = @transform_0, window_bounds = array<i64: 1, 8, 16, 4>}, {pipeline_mode = #tpu.pipeline_mode<synchronous>, transform_indices = @transform_1, window_bounds = array<i64: 1, 4>}, {pipeline_mode = #tpu.pipeline_mode<synchronous>, transform_indices = @transform_2, window_bounds = array<i64: 1, 4>}, {transform_indices = @transform_3, window_bounds = array<i64: 1, 8, 16, 4>}]} {
    %c0 = arith.constant 0 : index
    %c0_0 = arith.constant 0 : index
    %c0_1 = arith.constant 0 : index
    %c0_2 = arith.constant 0 : index
    %0 = vector.load %arg2[%c0, %c0_0, %c0_1, %c0_2] : memref<1x8x16x4xf32, #tpu.memory_space<vmem>>, vector<1x8x16x4xf32>
    %1 = vector.shape_cast %0 : vector<1x8x16x4xf32> to vector<8x16x4xf32>
    %c0_3 = arith.constant 0 : index
    %c0_4 = arith.constant 0 : index
    %2 = vector.load %arg3[%c0_3, %c0_4] : memref<1x4xf32, #tpu.memory_space<vmem>>, vector<1x4xf32>
    %3 = vector.shape_cast %2 : vector<1x4xf32> to vector<1x1x4xf32>
    %4 = vector.broadcast %3 : vector<1x1x4xf32> to vector<8x16x4xf32>
    %5 = arith.mulf %1, %4 : vector<8x16x4xf32>
    %c0_5 = arith.constant 0 : index
    %c0_6 = arith.constant 0 : index
    %6 = vector.load %arg4[%c0_5, %c0_6] : memref<1x4xf32, #tpu.memory_space<vmem>>, vector<1x4xf32>
    %7 = vector.shape_cast %6 : vector<1x4xf32> to vector<1x1x4xf32>
    %8 = vector.broadcast %7 : vector<1x1x4xf32> to vector<8x16x4xf32>
    %9 = arith.addf %5, %8 : vector<8x16x4xf32>
    %cst = arith.constant 0.000000e+00 : f32
    %10 = vector.broadcast %cst : f32 to vector<8x16x4xf32>
    %11 = arith.maximumf %9, %10 : vector<8x16x4xf32>
    %c0_7 = arith.constant 0 : index
    %c0_8 = arith.constant 0 : index
    %c0_9 = arith.constant 0 : index
    %c0_10 = arith.constant 0 : index
    %12 = vector.load %arg5[%c0_7, %c0_8, %c0_9, %c0_10] : memref<1x8x16x4xf32, #tpu.memory_space<vmem>>, vector<1x8x16x4xf32>
    %13 = vector.shape_cast %12 : vector<1x8x16x4xf32> to vector<8x16x4xf32>
    %14 = vector.shape_cast %11 : vector<8x16x4xf32> to vector<1x8x16x4xf32>
    tpu.vector_store %arg5[%c0_7, %c0_8, %c0_9, %c0_10], %14 {strides = array<i32>} : memref<1x8x16x4xf32, #tpu.memory_space<vmem>>, vector<1x8x16x4xf32>,
    return
  }
  func.func @transform_0(%arg0: i32, %arg1: i32) -> (i32, i32, i32, i32) {
    %c0_i32 = arith.constant 0 : i32
    %c0_i32_0 = arith.constant 0 : i32
    %c0_i32_1 = arith.constant 0 : i32
    return %arg0, %arg1, %c0_i32, %c0_i32_0 : i32, i32, i32, i32
  }
  func.func @transform_1(%arg0: i32, %arg1: i32) -> (i32, i32) {
    %c0_i32 = arith.constant 0 : i32
    %c0_i32_0 = arith.constant 0 : i32
    %c0_i32_1 = arith.constant 0 : i32
    return %c0_i32, %c0_i32_0 : i32, i32
  }
  func.func @transform_2(%arg0: i32, %arg1: i32) -> (i32, i32) {
    %c0_i32 = arith.constant 0 : i32
    %c0_i32_0 = arith.constant 0 : i32
    %c0_i32_1 = arith.constant 0 : i32
    return %c0_i32, %c0_i32_0 : i32, i32
  }
  func.func @transform_3(%arg0: i32, %arg1: i32) -> (i32, i32, i32, i32) {
    %c0_i32 = arith.constant 0 : i32
    %c0_i32_0 = arith.constant 0 : i32
    %c0_i32_1 = arith.constant 0 : i32
    return %arg0, %arg1, %c0_i32, %c0_i32_0 : i32, i32, i32, i32
  }
}

</mosaic_0001>

<bundles_post_ra>
// kernel: tile.8
= control target key start
LH: loop header
LB: loop body
LE: loop exit
PB: predicated region body
PF: predicated region fallthrough
CT: control target
= control target key end

     0   :  { %s22_s0 = inlined_call_operand.vmem [shape: f32[4], index: 0, kind: input, shape index: {}]   ;;  %s23_s1 = inlined_call_operand.vmem [shape: f32[4,4], index: 1, kind: output, shape index: {}]  }
   0x1   :  { %v4_v0 = vld [vmem:[%s22_s0] ss:$0 sm:$0xff] }
   0x2   :  { %5 = vst [vmem:[%s23_s1] sm:$0xf] %v4_v0 }

// kernel: tile.9
= control target key start
LH: loop header
LB: loop body
LE: loop exit
PB: predicated region body
PF: predicated region fallthrough
CT: control target
= control target key end

     0   :  { %vm7_vm0 = vcmask 31744   ;;  %s37_s8 = smov 4   ;;  %s38_s9 = smov 8   ;;  %vm13_vm1 = vcmask 130144   ;;  %vm19_vm2 = vcmask 97344   ;;  %vm25_vm3 = vcmask 64544   ;;  %s55_s0 = inlined_call_operand.vmem [shape: f32[4,4], index: 0, kind: input, shape index: {}]   ;;  %s56_s1 = inlined_call_operand.vmem [shape: f32[1,16], index: 1, kind: output, shape index: {}]  }
   0x1   :  { %v4_v0 = vld [vmem:[%s55_s0] sm:$0xf]  ;;  %s36_s0 = smov 12  }
   0x2   :  { %5 = vst [vmem:[#allocation1] sm:$0xf] %v4_v0 }
   0x9   :  { %v10_v1 = vld [vmem:[#allocation1 + $0x3] sm:$0x1]   ;;  %v22_v2 = vld [vmem:[#allocation1 + $0x1] sm:$0x1]   ;;  %v6_v3 = vld [vmem:[#allocation1] sm:$0x1]  }
   0xa   :  { %11 = vrot.lane.b32.xlu0 %v10_v1, %s36_s0  ;;  %23 = vrot.lane.b32.xlu1 %v22_v2, %s37_s8  ;;  %v16_v4 = vld [vmem:[#allocation1 + $0x2] sm:$0x1]   ;;  %8 = vst.msk [vmem:[#allocation0] sm:$0x1] %vm7_vm0, %v6_v3  }
   0xe   :  { %17 = vrot.lane.b32.xlu0 %v16_v4, %s38_s9 }
  0x7c   :  { %v12_v5 = vpop.permute.xlu0 %11   ;;  %v24_v6 = vpop.permute.xlu1 %23  }
  0x7d   :  { %14 = vst.msk [vmem:[#allocation0] sm:$0x1] %vm13_vm1, %v12_v5  }
  0x80   :  { %v18_v7 = vpop.permute.xlu0 %17  }
  0x81   :  { %20 = vst.msk [vmem:[#allocation0] sm:$0x1] %vm19_vm2, %v18_v7  }
  0x82   :  { %26 = vst.msk [vmem:[#allocation0] sm:$0x1] %vm25_vm3, %v24_v6  }
  0x89   :  { %v30_v8 = vld [vmem:[#allocation0] sm:$0x1] }
  0x8a   :  { %32 = vst [vmem:[%s56_s1] sm:$0x1] %v30_v8 }

// kernel: up_forward.7
= control target key start
LH: loop header
LB: loop body
LE: loop exit
PB: predicated region body
PF: predicated region fallthrough
CT: control target
= control target key end

     0   :  { %s526_s12 = smov 0   ;;  %s528_s13 = smov 0   ;;  %s671_s0 = inlined_call_operand.vmem [shape: f32[2,16,16,4], index: 0, kind: input, shape index: {}]   ;;  %s672_s1 = inlined_call_operand.vmem [shape: f32[1,4], index: 1, kind: input, shape index: {}]   ;;  %s673_s2 = inlined_call_operand.vmem [shape: f32[1,4], index: 2, kind: input, shape index: {}]   ;;  %s674_s3 = inlined_call_operand.vmem [shape: f32[2,16,16,4], index: 3, kind: output, shape index: {}]  }
   0x1   :  { %s530_s14 = smov 0   ;;  %s532_s15 = smov 0  }
   0x2   :  { %s534_s16 = smov 0  }
   0x3 LB: > { %s22_s17 = sadd.s32 1, %s496_s14  ;;  %s25_s18 = sadd.s32 1, %s500_s15  ;;  %s504_s16 = sphi %s534_s16, %s13_s16   ;;  %s500_s15 = sphi %s532_s15, %s678_s15   ;;  %s496_s14 = sphi %s530_s14, %s677_s14   ;;  %s492_s13 = sphi %s528_s13, %s676_s13   ;;  %s488_s12 = sphi %s526_s12, %s675_s12  }
   0x4   : > { %p23_p0 = scmp.ge.s32.totalorder %s22_s17, 2  ;;  %p413_p1 = scmp.ge.s32.totalorder %s504_s16, 1 }
   0x5   : > { %p159_p2 = scmp.lt.s32.totalorder %s504_s16, 5 }
   0x6   : > { %s680_s17 = smov (%p23_p0, %s22_s17), 0  ;;  %s682_s18 = smov (!%p23_p0, %s25_s18), %s500_s15 }
   0x7   : > { %p160_p3 = pnand %p413_p1, %p159_p2  ;;  %p27_p4 = scmp.ge.s32.totalorder %s682_s18, 2 }
   0x8   : > { %s414_s19 = sshll.u32 (!%p160_p3), %s488_s12, 3  ;;  %p194_p5 = scmp.lt.s32.totalorder (!%p160_p3), %s492_s13, 1  ;;  %v559_v0 = vld [vmem:[%s672_s1] ss:$0 sm:$0xff] (!%p160_p3)  ;;  %vm293_vm0 = vcmask (!%p160_p3), 31744  }
   0x9   : > { %s684_s18 = smov (%p27_p4, %s682_s18), 0  ;;  %163 = sbr.rel (%p160_p3) target bundleno = 39 (0x27), region = 32 }
   0xa   : > { %p196_p6 = scmp.lt.s32.totalorder (!%p160_p3), %s414_s19, 15  ;;  %v569_v1 = vld [vmem:[%s673_s2] ss:$0 sm:$0xff] (!%p160_p3) }
  0x10   : > { %s686_s13 = smov (!%p194_p5, %s492_s13), 1  ;;  %s688_s19 = smov (!%p196_p6, %s414_s19), 15 }
  0x11   : > { %s416_s20 = sshll.u32 %s686_s13, 5  ;;  %s415_s21 = sshll.u32 %s688_s19, 1 }
  0x12   : > { %s200_s22 = sadd.s32 %s416_s20, %s415_s21 }
  0x13   : > { %s417_s23 = sshll.u32 %s200_s22, 3 }
  0x14   : > { %s564_s28 = scalar_lea.vmem %s671_s0, %s417_s23  ;;  %s592_s6 = scalar_lea.vmem %s674_s3, %s417_s23 }
  0x15   : > { %v215_v2 = vld [vmem:[%s564_s28] sm:$0xff]  ;;  %v216_v3 = vld [vmem:[%s564_s28 + $0x8] sm:$0xff]  ;;  %v217_v4 = vld [vmem:[%s564_s28 + $0x10] sm:$0xff] }
  0x16   : > { %v238_v5 = vmul.f32 %v559_v0, %v215_v2  ;;  %v239_v6 = vmul.f32 %v559_v0, %v216_v3  ;;  %v240_v7 = vmul.f32 %v559_v0, %v217_v4  ;;  %v218_v8 = vld [vmem:[%s564_s28 + $0x18] sm:$0xff]  ;;  %v219_v9 = vld [vmem:[%s564_s28 + $0x20] sm:$0xff]  ;;  %v220_v10 = vld [vmem:[%s564_s28 + $0x28] sm:$0xff] }
  0x17   : > { %v241_v11 = vmul.f32 %v559_v0, %v218_v8  ;;  %v242_v12 = vmul.f32 %v559_v0, %v219_v9  ;;  %v243_v13 = vmul.f32 %v559_v0, %v220_v10  ;;  %v221_v14 = vld [vmem:[%s564_s28 + $0x30] sm:$0xff]  ;;  %v222_v15 = vld [vmem:[%s564_s28 + $0x38] sm:$0xff]  ;;  %v223_v24 = vld [vmem:[%s564_s28 + $0x40] sm:$0xff] }
  0x18   : > { %v261_v16 = vadd.f32 %v569_v1, %v238_v5  ;;  %v262_v17 = vadd.f32 %v569_v1, %v239_v6  ;;  %v263_v18 = vadd.f32 %v569_v1, %v240_v7  ;;  %v244_v19 = vmul.f32 %v559_v0, %v221_v14  ;;  %v224_v25 = vld [vmem:[%s564_s28 + $0x48] sm:$0xff]  ;;  %v225_v26 = vld [vmem:[%s564_s28 + $0x50] sm:$0xff]  ;;  %v226_v31 = vld [vmem:[%s564_s28 + $0x58] sm:$0xff] }
  0x19   : > { %v264_v20 = vadd.f32 %v569_v1, %v241_v11  ;;  %v265_v21 = vadd.f32 %v569_v1, %v242_v12  ;;  %v266_v22 = vadd.f32 %v569_v1, %v243_v13  ;;  %v245_v23 = vmul.f32 %v559_v0, %v222_v15  ;;  %v227_v32 = vld [vmem:[%s564_s28 + $0x60] sm:$0xff]  ;;  %v228_v33 = vld [vmem:[%s564_s28 + $0x68] sm:$0xff]  ;;  %v229_v38 = vld [vmem:[%s564_s28 + $0x70] sm:$0xff] }
  0x1a   : > { %v277_v27 = vmax.f32 %v261_v16, 0.0  ;;  %v278_v28 = vmax.f32 %v262_v17, 0.0  ;;  %v279_v29 = vmax.f32 %v263_v18, 0.0  ;;  %v267_v30 = vadd.f32 %v569_v1, %v244_v19  ;;  %v230_v43 = vld [vmem:[%s564_s28 + $0x78] sm:$0xff] }
  0x1b   : > { %v280_v34 = vmax.f32 %v264_v20, 0.0  ;;  %v281_v35 = vmax.f32 %v265_v21, 0.0  ;;  %v282_v36 = vmax.f32 %v266_v22, 0.0  ;;  %v268_v37 = vadd.f32 %v569_v1, %v245_v23 }
  0x1c   : > { %294 = vst.msk [vmem:[%s592_s6] sm:$0xff] %vm293_vm0, %v277_v27  ;;  %295 = vst.msk [vmem:[%s592_s6 + $0x8] sm:$0xff] %vm293_vm0, %v278_v28  ;;  %v283_v39 = vmax.f32 %v267_v30, 0.0  ;;  %v246_v40 = vmul.f32 %v559_v0, %v223_v24  ;;  %v247_v41 = vmul.f32 %v559_v0, %v224_v25  ;;  %v248_v42 = vmul.f32 %v559_v0, %v225_v26 }
  0x1d   : > { %296 = vst.msk [vmem:[%s592_s6 + $0x10] sm:$0xff] %vm293_vm0, %v279_v29  ;;  %297 = vst.msk [vmem:[%s592_s6 + $0x18] sm:$0xff] %vm293_vm0, %v280_v34  ;;  %v284_v44 = vmax.f32 %v268_v37, 0.0  ;;  %v249_v45 = vmul.f32 %v559_v0, %v226_v31  ;;  %v250_v46 = vmul.f32 %v559_v0, %v227_v32  ;;  %v251_v47 = vmul.f32 %v559_v0, %v228_v33 }
  0x1e   : > { %298 = vst.msk [vmem:[%s592_s6 + $0x20] sm:$0xff] %vm293_vm0, %v281_v35  ;;  %299 = vst.msk [vmem:[%s592_s6 + $0x28] sm:$0xff] %vm293_vm0, %v282_v36  ;;  %v269_v48 = vadd.f32 %v569_v1, %v246_v40  ;;  %v270_v49 = vadd.f32 %v569_v1, %v247_v41  ;;  %v271_v50 = vadd.f32 %v569_v1, %v248_v42 }
  0x1f   : > { %300 = vst.msk [vmem:[%s592_s6 + $0x30] sm:$0xff] %vm293_vm0, %v283_v39  ;;  %v252_v51 = vmul.f32 %v559_v0, %v229_v38  ;;  %301 = vst.msk [vmem:[%s592_s6 + $0x38] sm:$0xff] %vm293_vm0, %v284_v44  ;;  %v272_v52 = vadd.f32 %v569_v1, %v249_v45  ;;  %v273_v53 = vadd.f32 %v569_v1, %v250_v46 }
  0x20   : > { %v274_v54 = vadd.f32 %v569_v1, %v251_v47  ;;  %v253_v55 = vmul.f32 %v559_v0, %v230_v43  ;;  %v285_v56 = vmax.f32 %v269_v48, 0.0  ;;  %v286_v57 = vmax.f32 %v270_v49, 0.0 }
  0x21   : > { %v287_v58 = vmax.f32 %v271_v50, 0.0  ;;  %v275_v59 = vadd.f32 %v569_v1, %v252_v51  ;;  %v288_v60 = vmax.f32 %v272_v52, 0.0  ;;  %v289_v61 = vmax.f32 %v273_v53, 0.0 }
  0x22   : > { %v290_v62 = vmax.f32 %v274_v54, 0.0  ;;  %v276_v63 = vadd.f32 %v569_v1, %v253_v55  ;;  %302 = vst.msk [vmem:[%s592_s6 + $0x40] sm:$0xff] %vm293_vm0, %v285_v56  ;;  %303 = vst.msk [vmem:[%s592_s6 + $0x48] sm:$0xff] %vm293_vm0, %v286_v57 }
  0x23   : > { %304 = vst.msk [vmem:[%s592_s6 + $0x50] sm:$0xff] %vm293_vm0, %v287_v58  ;;  %v291_v2 = vmax.f32 %v275_v59, 0.0  ;;  %305 = vst.msk [vmem:[%s592_s6 + $0x58] sm:$0xff] %vm293_vm0, %v288_v60 }
  0x24   : > { %306 = vst.msk [vmem:[%s592_s6 + $0x60] sm:$0xff] %vm293_vm0, %v289_v61  ;;  %307 = vst.msk [vmem:[%s592_s6 + $0x68] sm:$0xff] %vm293_vm0, %v290_v62  ;;  %v292_v0 = vmax.f32 %v276_v63, 0.0 }
  0x25   : > { %308 = vst.msk [vmem:[%s592_s6 + $0x70] sm:$0xff] %vm293_vm0, %v291_v2 }
  0x26   : > { %309 = vst.msk [vmem:[%s592_s6 + $0x78] sm:$0xff] %vm293_vm0, %v292_v0 }
  0x27 PF: > { %s13_s16 = sadd.s32 1, %s504_s16   ;;  %s675_s12 = smov %s496_s14 }
  0x28   : > { %p10_p7 = scmp.ge.s32.totalorder %s13_s16, 6   ;;  %s676_s13 = smov %s500_s15 }
  0x29   : > { %s677_s14 = smov %s680_s17  ;;  %s678_s15 = smov %s684_s18 }
  0x2a   :  { %12 = sbr.rel (!%p10_p7) target bundleno = 3 (0x3), region = 62 }

// kernel: up_forward.4
= control target key start
LH: loop header
LB: loop body
LE: loop exit
PB: predicated region body
PF: predicated region fallthrough
CT: control target
= control target key end

     0   :  { %s526_s12 = smov 0   ;;  %s583_s0 = inlined_call_operand.vmem [shape: bf16[2,8,8,8], index: 0, kind: input, shape index: {}]   ;;  %s584_s1 = inlined_call_operand.vmem [shape: bf16[8,16], index: 1, kind: input, shape index: {}]   ;;  %s585_s2 = inlined_call_operand.vmem [shape: f32[1,16], index: 2, kind: input, shape index: {}]   ;;  %s586_s3 = inlined_call_operand.vmem [shape: bf16[2,8,2,8,8], index: 3, kind: output, shape index: {}]  }
   0x1 LB: > { %s419_s13 = sadd.s32 4294967295, %s503_s12   ;;  %p423_p0 = scmp.ge.s32.totalorder %s503_s12, 1  ;;  %s503_s12 = sphi %s526_s12, %s13_s12  }
   0x2   : > { %p137_p1 = scmp.lt.s32.totalorder %s503_s12, 3 }
   0x4   : > { %p138_p2 = pnand %p423_p0, %p137_p1 }
   0x5   : > { %v180_v0 = vld [vmem:[%s584_s1] sm:$0xf] (!%p138_p2)  ;;  %vm221_vm0 = vcmask (!%p138_p2), 1043456   ;;  %p161_p3 = scmp.lt.s32.totalorder (!%p138_p2), %s419_s13, 1  ;;  %vm208_vm1 = vcmask (!%p138_p2), 64512   ;;  %vm322_vm2 = vcmask (!%p138_p2), 60416  }
   0x6   : > { %141 = sbr.rel (%p138_p2) target bundleno = 363 (0x16b), region = 32  ;;  %482 = vmatprep.subr.msk.bf16.mxu0 (!%p138_p2), %vm221_vm0, %v180_v0  ;;  %483 = vmatprep.subr.msk.bf16.mxu1 (!%p138_p2), %vm221_vm0, %v180_v0  ;;  %v223_v1 = vsel (!%p138_p2), %vm221_vm0, %v180_v0, 0  ;;  %v428_v6 = vld [vmem:[%s585_s2] ss:$0 sm:$0xff] (!%p138_p2)  ;;  %s505_s26 = smov (!%p138_p2), 120  }
   0x7   : > { %471 = vmatpush3.bf16.msra.mxu0 (!%p138_p2), %v223_v1  ;;  %481 = vmatpush3.bf16.msra.mxu1 (!%p138_p2), %v223_v1 }
   0xd   : > { %s588_s13 = smov (!%p161_p3, %s419_s13), 1 }
   0xe   : > { %s455_s16 = sshll.u32 %s588_s13, 5  ;;  %s456_s22 = sshll.u32 %s588_s13, 6 }
   0xf   : > { %s165_s19 = scalar_lea.vmem %s583_s0, %s455_s16  ;;  %s546_s25 = scalar_lea.vmem %s586_s3, %s456_s22 }
  0x10   : > { %v493_v2 = vld [vmem:[%s165_s19] sm:$0xff]   ;;  %v494_v3 = vld [vmem:[%s165_s19 + $0x8] sm:$0xff]   ;;  %v495_v4 = vld [vmem:[%s165_s19 + $0x10] sm:$0xff]  }
  0x11   : > { %472 = vmatprep.mubr.msk.bf16.mxu0 %vm208_vm1, %v493_v2  ;;  %v496_v5 = vld [vmem:[%s165_s19 + $0x18] sm:$0xff]   ;;  %476 = vmatprep.mubr.msk.bf16.mxu1 %vm208_vm1, %v495_v4 }
  0x12   : > { %473 = vmatmul.mubr.msk.bf16.vlgmr.msra.gmra.mrb[0].mxu0 %vm208_vm1, %v494_v3  ;;  %477 = vmatmul.mubr.msk.bf16.vlgmr.msra.gmra.mrb[0].mxu1 %vm208_vm1, %v496_v5 }
  0xe5   : > { %v474_v7 = vpop.f32.mrb[0].mxu0  ;;  %v478_v11 = vpop.f32.mrb[0].mxu1 }
  0xe6   : > { %v268_v8 = vadd.f32 %v474_v7, %v428_v6  ;;  %v259_v9 = vpop.f32.mrb[1].mxu0  ;;  %v284_v14 = vadd.f32 %v478_v11, %v428_v6  ;;  %v275_v16 = vpop.f32.mrb[1].mxu1 }
  0xe7   : > { %v260_v10 = vadd.f32 %v428_v6, %v259_v9  ;;  %v475_v12 = vpop.f32.mrb[2].mxu0  ;;  %v276_v19 = vadd.f32 %v428_v6, %v275_v16  ;;  %v479_v21 = vpop.f32.mrb[2].mxu1 }
  0xe8   : > { %v459_v13 = vpack.c.bf16 %v268_v8, %v268_v8  ;;  %v271_v15 = vadd.f32 %v475_v12, %v428_v6  ;;  %v262_v17 = vpop.f32.mrb[3].mxu0  ;;  %v463_v22 = vpack.c.bf16 %v284_v14, %v284_v14  ;;  %v287_v24 = vadd.f32 %v479_v21, %v428_v6  ;;  %v278_v25 = vpop.f32.mrb[3].mxu1 }
  0xe9   : > { %v457_v18 = vpack.c.bf16 %v260_v10, %v260_v10  ;;  %v263_v20 = vadd.f32 %v428_v6, %v262_v17  ;;  %v461_v26 = vpack.c.bf16 %v276_v19, %v276_v19  ;;  %v279_v28 = vadd.f32 %v428_v6, %v278_v25 }
  0xea   : > { %325 = vst.msk [vmem:[%s546_s25 + $0x10] sm:$0xf] %vm322_vm2, %v459_v13  ;;  %v460_v23 = vpack.c.bf16 %v271_v15, %v271_v15  ;;  %335 = vrot.lane.b32.xlu1 %v459_v13, %s505_s26  ;;  %329 = vst.msk [vmem:[%s546_s25 + $0x30] sm:$0xf] %vm322_vm2, %v463_v22  ;;  %v464_v29 = vpack.c.bf16 %v287_v24, %v287_v24 }
  0xeb   : > { %323 = vst.msk [vmem:[%s546_s25] sm:$0xf] %vm322_vm2, %v457_v18  ;;  %v458_v27 = vpack.c.bf16 %v263_v20, %v263_v20  ;;  %331 = vrot.lane.b32.xlu0 %v457_v18, %s505_s26  ;;  %327 = vst.msk [vmem:[%s546_s25 + $0x20] sm:$0xf] %vm322_vm2, %v461_v26  ;;  %v462_v30 = vpack.c.bf16 %v279_v28, %v279_v28 }
  0xec   : > { %326 = vst.msk [vmem:[%s546_s25 + $0x18] sm:$0xf] %vm322_vm2, %v460_v23  ;;  %330 = vst.msk [vmem:[%s546_s25 + $0x38] sm:$0xf] %vm322_vm2, %v464_v29 }
  0xed   : > { %324 = vst.msk [vmem:[%s546_s25 + $0x8] sm:$0xf] %vm322_vm2, %v458_v27  ;;  %328 = vst.msk [vmem:[%s546_s25 + $0x28] sm:$0xf] %vm322_vm2, %v462_v30 }
  0xee   : > { %337 = vrot.lane.b32.xlu1 %v460_v23, %s505_s26 }
  0xef   : > { %339 = vrot.lane.b32.xlu0 %v461_v26, %s505_s26 }
  0xf2   : > { %341 = vrot.lane.b32.xlu1 %v462_v30, %s505_s26 }
  0xf3   : > { %333 = vrot.lane.b32.xlu0 %v458_v27, %s505_s26 }
  0xf6   : > { %345 = vrot.lane.b32.xlu1 %v464_v29, %s505_s26 }
  0xf7   : > { %343 = vrot.lane.b32.xlu0 %v463_v22, %s505_s26 }
 0x15c   : > { %v336_v31 = vpop.permute.xlu1 %335 }
 0x15d   : > { %447 = vst.msk [vmem:[%s546_s25 + $0x14] sm:$0xf] %vm322_vm2, %v336_v31  ;;  %v332_v32 = vpop.permute.xlu0 %331 }
 0x15e   : > { %445 = vst.msk [vmem:[%s546_s25 + $0x4] sm:$0xf] %vm322_vm2, %v332_v32 }
 0x160   : > { %v338_v33 = vpop.permute.xlu1 %337 }
 0x161   : > { %448 = vst.msk [vmem:[%s546_s25 + $0x1c] sm:$0xf] %vm322_vm2, %v338_v33  ;;  %v340_v34 = vpop.permute.xlu0 %339 }
 0x162   : > { %449 = vst.msk [vmem:[%s546_s25 + $0x24] sm:$0xf] %vm322_vm2, %v340_v34 }
 0x164   : > { %v342_v35 = vpop.permute.xlu1 %341 }
 0x165   : > { %450 = vst.msk [vmem:[%s546_s25 + $0x2c] sm:$0xf] %vm322_vm2, %v342_v35  ;;  %v334_v36 = vpop.permute.xlu0 %333 }
 0x166   : > { %446 = vst.msk [vmem:[%s546_s25 + $0xc] sm:$0xf] %vm322_vm2, %v334_v36 }
 0x168   : > { %v346_v37 = vpop.permute.xlu1 %345 }
 0x169   : > { %452 = vst.msk [vmem:[%s546_s25 + $0x3c] sm:$0xf] %vm322_vm2, %v346_v37  ;;  %v344_v38 = vpop.permute.xlu0 %343 }
 0x16a   : > { %451 = vst.msk [vmem:[%s546_s25 + $0x34] sm:$0xf] %vm322_vm2, %v344_v38 }
 0x16b PF: > { %s13_s12 = sadd.s32 1, %s503_s12  }
 0x16c   : > { %p10_p4 = scmp.ge.s32.totalorder %s13_s12, 4  }
 0x16e   :  { %12 = sbr.rel (!%p10_p4) target bundleno = 1 (0x1), region = 63 }

// kernel: up_forward.6
= control target key start
LH: loop header
LB: loop body
LE: loop exit
PB: predicated region body
PF: predicated region fallthrough
CT: control target
= control target key end

     0   :  { %s2146_s18 = smov 0   ;;  %s2875_s0 = inlined_call_operand.vmem [shape: bf16[2,16,16,4], index: 0, kind: input, shape index: {}]   ;;  %s2876_s1 = inlined_call_operand.vmem [shape: f32[1,4], index: 1, kind: input, shape index: {}]   ;;  %s2877_s2 = inlined_call_operand.vmem [shape: f32[1,4], index: 2, kind: input, shape index: {}]   ;;  %s2878_s3 = inlined_call_operand.vmem [shape: bf16[3,12,4], index: 3, kind: input, shape index: {}]   ;;  %s2879_s4 = inlined_call_operand.vmem [shape: f32[2,16,16,4], index: 4, kind: output, shape index: {0}]   ;;  %s2880_s5 = inlined_call_operand.vmem [shape: f32[2,2,4], index: 5, kind: output, shape index: {1}]  }
   0x1 LB: > { %s1718_s19 = sadd.s32 4294967295, %s2111_s18   ;;  %p1722_p0 = scmp.ge.s32.totalorder %s2111_s18, 1  ;;  %s2111_s18 = sphi %s2146_s18, %s16_s18  }
   0x2   : > { %p190_p1 = scmp.lt.s32.totalorder %s2111_s18, 3 }
   0x4   : > { %p191_p2 = pnand %p1722_p0, %p190_p1 }
   0x5   : > { %vm634_vm0 = vcmask (!%p191_p2), 1047552   ;;  %vm635_vm1 = vsmask.f32 (!%p191_p2), 7424  ;;  %v2113_v0 = vmov (!%p191_p2), 0   ;;  %s2114_s20 = smov (!%p191_p2), 4   ;;  %p222_p3 = scmp.lt.s32.totalorder (!%p191_p2), %s1718_s19, 1 }
   0x6   : > { %194 = sbr.rel (%p191_p2) target bundleno = 479 (0x1df), region = 36  ;;  %671 = vrot.lane.b32.xlu0 (!%p191_p2), %v2113_v0, %s2114_s20  ;;  %v583_v1 = vrot.slane (!%p191_p2), %v2113_v0, 1  ;;  %vm2157_vm2 = vmand (!%p191_p2), %vm634_vm0, %vm635_vm1  ;;  %s2115_s21 = smov (!%p191_p2), 8   ;;  %v2170_v4 = vld [vmem:[%s2876_s1] ss:$0 sm:$0xff] (!%p191_p2)  ;;  %vm886_vm3 = vcmask (!%p191_p2), 1045504  }
   0x7   : > { %v2102_v5 = vld [vmem:[%s2878_s3 + $0x8] sm:$0x3f] (!%p191_p2)   ;;  %v2183_v6 = vld [vmem:[%s2878_s3] sm:$0x3f] (!%p191_p2)   ;;  %vm563_vm4 = vcmask (!%p191_p2), 1040384   ;;  %vm756_vm7 = vcmask (!%p191_p2), 31744  }
   0x8   : > { %v637_v3 = vsel (!%p191_p2), %vm2157_vm2, %v583_v1, 0  ;;  %2087 = vmatprep.subr.msk.bf16.mxu1 (!%p191_p2), %vm886_vm3, %v2102_v5  ;;  %v888_v10 = vsel (!%p191_p2), %vm886_vm3, %v2102_v5, 0  ;;  %2088 = vmatprep.subr.msk.bf16.mxu0 (!%p191_p2), %vm886_vm3, %v2183_v6  ;;  %v2196_v16 = vld [vmem:[%s2877_s2] ss:$0 sm:$0xff] (!%p191_p2)  ;;  %vm564_vm5 = vsmask.f32 (!%p191_p2), 256 }
   0x9   : > { %722 = vrot.lane.b32.xlu1 (!%p191_p2), %v637_v3, %s2115_s21  ;;  %1920 = vmatpush3.bf16.msra.mxu1 (!%p191_p2), %v888_v10  ;;  %vm2567_vm6 = vmand (!%p191_p2), %vm563_vm4, %vm564_vm5  ;;  %vm808_vm8 = vcmask (!%p191_p2), 64512   ;;  %vm853_vm9 = vcmask (!%p191_p2), 97280   ;;  %vm1630_vm10 = vcmask (!%p191_p2), 25600  }
   0xa   : > { %2089 = vmatprep.subr.msk.bf16.mxu1 (!%p191_p2), %vm886_vm3, %v2183_v6 }
   0xd   : > { %s2886_s19 = smov (!%p222_p3, %s1718_s19), 1 }
   0xe   : > { %s1787_s22 = sshll.u32 %s2886_s19, 7  ;;  %s1788_s11 = sshll.u32 %s2886_s19, 8 }
   0xf   : > { %s2178_s29 = scalar_lea.vmem %s2875_s0, %s1787_s22  ;;  %s2729_s14 = scalar_lea.vmem %s2879_s4, %s1788_s11 }
  0x10   : > { %v1853_v7 = vld [vmem:[%s2178_s29 + $0x8] sm:$0xff]   ;;  %v1790_v8 = vld [vmem:[%s2178_s29] sm:$0xff]   ;;  %v1855_v9 = vld [vmem:[%s2178_s29 + $0x18] sm:$0xff]   ;;  %s1727_s15 = sshll.u32 %s2886_s19, 1 }
  0x11   : > { %v1795_v11 = vunpack.c.l.bf16 %v1853_v7  ;;  %v1796_v12 = vunpack.c.h.bf16 %v1853_v7  ;;  %v1791_v13 = vunpack.c.l.bf16 %v1790_v8  ;;  %v1792_v14 = vunpack.c.h.bf16 %v1790_v8  ;;  %v1854_v15 = vld [vmem:[%s2178_s29 + $0x10] sm:$0xff]   ;;  %v1857_v37 = vld [vmem:[%s2178_s29 + $0x28] sm:$0xff]   ;;  %v1856_v42 = vld [vmem:[%s2178_s29 + $0x20] sm:$0xff]  }
  0x12   : > { %v1803_v17 = vunpack.c.l.bf16 %v1855_v9  ;;  %v1804_v18 = vunpack.c.h.bf16 %v1855_v9  ;;  %v1799_v19 = vunpack.c.l.bf16 %v1854_v15  ;;  %v1800_v20 = vunpack.c.h.bf16 %v1854_v15  ;;  %v1859_v15 = vld [vmem:[%s2178_s29 + $0x38] sm:$0xff]  }
  0x13   : > { %v310_v21 = vmul.f32 %v1795_v11, %v2170_v4  ;;  %v311_v22 = vmul.f32 %v1796_v12, %v2170_v4  ;;  %v308_v23 = vmul.f32 %v1791_v13, %v2170_v4  ;;  %v309_v24 = vmul.f32 %v1792_v14, %v2170_v4 }
  0x14   : > { %v314_v25 = vmul.f32 %v1803_v17, %v2170_v4  ;;  %v315_v26 = vmul.f32 %v1804_v18, %v2170_v4  ;;  %v312_v27 = vmul.f32 %v1799_v19, %v2170_v4  ;;  %v313_v28 = vmul.f32 %v1800_v20, %v2170_v4 }
  0x15   : > { %v349_v29 = vadd.f32 %v2196_v16, %v310_v21  ;;  %v350_v30 = vadd.f32 %v2196_v16, %v311_v22  ;;  %v347_v31 = vadd.f32 %v2196_v16, %v308_v23  ;;  %v348_v32 = vadd.f32 %v2196_v16, %v309_v24  ;;  %v1858_v21 = vld [vmem:[%s2178_s29 + $0x30] sm:$0xff]  }
  0x16   : > { %v353_v33 = vadd.f32 %v2196_v16, %v314_v25  ;;  %v354_v34 = vadd.f32 %v2196_v16, %v315_v26  ;;  %v351_v35 = vadd.f32 %v2196_v16, %v312_v27  ;;  %v352_v36 = vadd.f32 %v2196_v16, %v313_v28  ;;  %v1861_v26 = vld [vmem:[%s2178_s29 + $0x48] sm:$0xff]  }
  0x17   : > { %v381_v38 = vmax.f32 %v349_v29, 0.0  ;;  %v382_v39 = vmax.f32 %v350_v30, 0.0  ;;  %v379_v40 = vmax.f32 %v347_v31, 0.0  ;;  %v380_v41 = vmax.f32 %v348_v32, 0.0 }
  0x18   : > { %v385_v43 = vmax.f32 %v353_v33, 0.0  ;;  %v386_v44 = vmax.f32 %v354_v34, 0.0  ;;  %v383_v45 = vmax.f32 %v351_v35, 0.0  ;;  %v384_v46 = vmax.f32 %v352_v36, 0.0 }
  0x19   : > { %v2218_v47 = vpack.c.bf16 %v382_v39, %v381_v38  ;;  %v2220_v48 = vpack.c.bf16 %v380_v41, %v379_v40  ;;  %v1811_v49 = vunpack.c.l.bf16 %v1857_v37  ;;  %v1812_v50 = vunpack.c.h.bf16 %v1857_v37 }
  0x1a   : > { %v2222_v51 = vpack.c.bf16 %v386_v44, %v385_v43  ;;  %v2224_v52 = vpack.c.bf16 %v384_v46, %v383_v45  ;;  %v1807_v53 = vunpack.c.l.bf16 %v1856_v42  ;;  %v1808_v54 = vunpack.c.h.bf16 %v1856_v42 }
  0x1b   : > { %675 = vrot.lane.b32.xlu1 %v2218_v47, %s2114_s20  ;;  %673 = vrot.lane.b32.xlu0 %v2220_v48, %s2114_s20  ;;  %v442_v55 = vshrl.u32 %v2218_v47, 16  ;;  %v445_v56 = vshll.u32 %v2218_v47, 16  ;;  %v435_v57 = vshrl.u32 %v2220_v48, 16  ;;  %v438_v58 = vshll.u32 %v2220_v48, 16 }
  0x1c   : > { %v456_v59 = vshrl.u32 %v2222_v51, 16  ;;  %v459_v60 = vshll.u32 %v2222_v51, 16  ;;  %v449_v61 = vshrl.u32 %v2224_v52, 16  ;;  %v452_v62 = vshll.u32 %v2224_v52, 16 }
  0x1d   : > { %v587_v63 = vrot.slane %v445_v56, 1  ;;  %v585_v1 = vrot.slane %v438_v58, 1  ;;  %v318_v9 = vmul.f32 %v1811_v49, %v2170_v4  ;;  %v319_v10 = vmul.f32 %v1812_v50, %v2170_v4 }
  0x1e   : > { %v591_v3 = vrot.slane %v459_v60, 1  ;;  %v589_v5 = vrot.slane %v452_v62, 1  ;;  %v316_v13 = vmul.f32 %v1807_v53, %v2170_v4  ;;  %v317_v14 = vmul.f32 %v1808_v54, %v2170_v4 }
  0x1f   : > { %v588_v7 = vor.u32 %v587_v63, %v442_v55  ;;  %v586_v8 = vor.u32 %v585_v1, %v435_v57  ;;  %v357_v19 = vadd.f32 %v2196_v16, %v318_v9  ;;  %v358_v20 = vadd.f32 %v2196_v16, %v319_v10 }
  0x20   : > { %v592_v11 = vor.u32 %v591_v3, %v456_v59  ;;  %v590_v12 = vor.u32 %v589_v5, %v449_v61  ;;  %v355_v24 = vadd.f32 %v2196_v16, %v316_v13  ;;  %v356_v25 = vadd.f32 %v2196_v16, %v317_v14  ;;  %v1860_v5 = vld [vmem:[%s2178_s29 + $0x40] sm:$0xff]  }
  0x21   : > { %v639_v17 = vsel %vm2157_vm2, %v588_v7, 0  ;;  %v638_v18 = vsel %vm2157_vm2, %v586_v8, 0  ;;  %v389_v27 = vmax.f32 %v357_v19, 0.0  ;;  %v390_v28 = vmax.f32 %v358_v20, 0.0 }
  0x22   : > { %726 = vrot.lane.b32.xlu1 %v639_v17, %s2115_s21  ;;  %724 = vrot.lane.b32.xlu0 %v638_v18, %s2115_s21  ;;  %v641_v22 = vsel %vm2157_vm2, %v592_v11, 0  ;;  %v640_v23 = vsel %vm2157_vm2, %v590_v12, 0  ;;  %v1819_v29 = vunpack.c.l.bf16 %v1859_v15  ;;  %v1820_v30 = vunpack.c.h.bf16 %v1859_v15 }
  0x23   : > { %v387_v31 = vmax.f32 %v355_v24, 0.0  ;;  %v388_v32 = vmax.f32 %v356_v25, 0.0  ;;  %v1815_v33 = vunpack.c.l.bf16 %v1858_v21  ;;  %v1816_v34 = vunpack.c.h.bf16 %v1858_v21 }
  0x24   : > { %v2275_v35 = vpack.c.bf16 %v390_v28, %v389_v27  ;;  %v322_v36 = vmul.f32 %v1819_v29, %v2170_v4  ;;  %v323_v37 = vmul.f32 %v1820_v30, %v2170_v4  ;;  %v1827_v38 = vunpack.c.l.bf16 %v1861_v26 }
  0x25   : > { %v2283_v39 = vpack.c.bf16 %v388_v32, %v387_v31  ;;  %v320_v40 = vmul.f32 %v1815_v33, %v2170_v4  ;;  %v321_v41 = vmul.f32 %v1816_v34, %v2170_v4  ;;  %v1828_v42 = vunpack.c.h.bf16 %v1861_v26  ;;  %v1863_v26 = vld [vmem:[%s2178_s29 + $0x58] sm:$0xff]   ;;  %v1862_v31 = vld [vmem:[%s2178_s29 + $0x50] sm:$0xff]  }
  0x26   : > { %679 = vrot.lane.b32.xlu1 %v2222_v51, %s2114_s20  ;;  %677 = vrot.lane.b32.xlu0 %v2224_v52, %s2114_s20  ;;  %v470_v43 = vshrl.u32 %v2275_v35, 16  ;;  %v473_v44 = vshll.u32 %v2275_v35, 16  ;;  %v361_v45 = vadd.f32 %v2196_v16, %v322_v36  ;;  %v362_v46 = vadd.f32 %v2196_v16, %v323_v37 }
  0x27   : > { %v463_v49 = vshrl.u32 %v2283_v39, 16  ;;  %v466_v50 = vshll.u32 %v2283_v39, 16  ;;  %v359_v53 = vadd.f32 %v2196_v16, %v320_v40  ;;  %v360_v54 = vadd.f32 %v2196_v16, %v321_v41 }
  0x28   : > { %v595_v63 = vrot.slane %v473_v44, 1  ;;  %v393_v1 = vmax.f32 %v361_v45, 0.0  ;;  %v394_v3 = vmax.f32 %v362_v46, 0.0  ;;  %v326_v12 = vmul.f32 %v1827_v38, %v2170_v4 }
  0x29   : > { %v593_v7 = vrot.slane %v466_v50, 1  ;;  %v391_v8 = vmax.f32 %v359_v53, 0.0  ;;  %v392_v9 = vmax.f32 %v360_v54, 0.0  ;;  %v327_v13 = vmul.f32 %v1828_v42, %v2170_v4 }
  0x2a   : > { %730 = vrot.lane.b32.xlu1 %v641_v22, %s2115_s21  ;;  %728 = vrot.lane.b32.xlu0 %v640_v23, %s2115_s21  ;;  %v596_v10 = vor.u32 %v595_v63, %v470_v43  ;;  %v2304_v11 = vpack.c.bf16 %v394_v3, %v393_v1  ;;  %v1823_v17 = vunpack.c.l.bf16 %v1860_v5  ;;  %v1824_v18 = vunpack.c.h.bf16 %v1860_v5  ;;  %v1865_v3 = vld [vmem:[%s2178_s29 + $0x68] sm:$0xff]  }
  0x2b   : > { %v594_v14 = vor.u32 %v593_v7, %v463_v49  ;;  %v2310_v15 = vpack.c.bf16 %v392_v9, %v391_v8  ;;  %v365_v21 = vadd.f32 %v2196_v16, %v326_v12  ;;  %v366_v25 = vadd.f32 %v2196_v16, %v327_v13 }
  0x2c   : > { %v484_v19 = vshrl.u32 %v2304_v11, 16  ;;  %v487_v20 = vshll.u32 %v2304_v11, 16  ;;  %v643_v22 = vsel %vm2157_vm2, %v596_v10, 0  ;;  %v324_v30 = vmul.f32 %v1823_v17, %v2170_v4 }
  0x2d   : > { %v477_v23 = vshrl.u32 %v2310_v15, 16  ;;  %v480_v24 = vshll.u32 %v2310_v15, 16  ;;  %v642_v27 = vsel %vm2157_vm2, %v594_v14, 0  ;;  %v397_v29 = vmax.f32 %v365_v21, 0.0 }
  0x2e   : > { %683 = vrot.lane.b32.xlu1 %v2275_v35, %s2114_s20  ;;  %681 = vrot.lane.b32.xlu0 %v2283_v39, %s2114_s20  ;;  %v599_v28 = vrot.slane %v487_v20, 1  ;;  %v2333_v32 = vrot.slane %v442_v55, 7  ;;  %v398_v34 = vmax.f32 %v366_v25, 0.0  ;;  %v325_v36 = vmul.f32 %v1824_v18, %v2170_v4 }
  0x2f   : > { %v597_v33 = vrot.slane %v480_v24, 1  ;;  %v363_v38 = vadd.f32 %v2196_v16, %v324_v30  ;;  %v1835_v40 = vunpack.c.l.bf16 %v1863_v26  ;;  %v1836_v41 = vunpack.c.h.bf16 %v1863_v26 }
  0x30   : > { %v600_v37 = vor.u32 %v599_v28, %v484_v19  ;;  %v2345_v42 = vpack.c.bf16 %v398_v34, %v397_v29  ;;  %v364_v45 = vadd.f32 %v2196_v16, %v325_v36  ;;  %v1831_v46 = vunpack.c.l.bf16 %v1862_v31 }
  0x31   : > { %v598_v55 = vor.u32 %v597_v33, %v477_v23  ;;  %v2350_v53 = vrot.slane %v435_v57, 7  ;;  %v395_v54 = vmax.f32 %v363_v38, 0.0  ;;  %v330_v63 = vmul.f32 %v1835_v40, %v2170_v4  ;;  %v1864_v38 = vld [vmem:[%s2178_s29 + $0x60] sm:$0xff]  }
  0x32   : > { %734 = vrot.lane.b32.xlu1 %v643_v22, %s2115_s21  ;;  %732 = vrot.lane.b32.xlu0 %v642_v27, %s2115_s21  ;;  %v331_v1 = vmul.f32 %v1836_v41, %v2170_v4  ;;  %v645_v5 = vsel %vm2157_vm2, %v600_v37, 0  ;;  %v396_v7 = vmax.f32 %v364_v45, 0.0  ;;  %v498_v8 = vshrl.u32 %v2345_v42, 16 }
  0x33   : > { %v501_v9 = vshll.u32 %v2345_v42, 16  ;;  %v369_v10 = vadd.f32 %v2196_v16, %v330_v63  ;;  %v1832_v57 = vunpack.c.h.bf16 %v1862_v31  ;;  %v328_v13 = vmul.f32 %v1831_v46, %v2170_v4 }
  0x34   : > { %v370_v12 = vadd.f32 %v2196_v16, %v331_v1  ;;  %v644_v14 = vsel %vm2157_vm2, %v598_v55, 0  ;;  %v2368_v17 = vpack.c.bf16 %v396_v7, %v395_v54  ;;  %v1843_v21 = vunpack.c.l.bf16 %v1865_v3  ;;  %v1867_v7 = vld [vmem:[%s2178_s29 + $0x78] sm:$0xff]  }
  0x35   : > { %v603_v18 = vrot.slane %v501_v9, 1  ;;  %v401_v22 = vmax.f32 %v369_v10, 0.0  ;;  %v329_v26 = vmul.f32 %v1832_v57, %v2170_v4  ;;  %v367_v27 = vadd.f32 %v2196_v16, %v328_v13 }
  0x36   : > { %687 = vrot.lane.b32.xlu1 %v2304_v11, %s2114_s20  ;;  %685 = vrot.lane.b32.xlu0 %v2310_v15, %s2114_s20  ;;  %v402_v25 = vmax.f32 %v370_v12, 0.0  ;;  %v491_v29 = vshrl.u32 %v2368_v17, 16  ;;  %v494_v30 = vshll.u32 %v2368_v17, 16  ;;  %v1844_v31 = vunpack.c.h.bf16 %v1865_v3 }
  0x37   : > { %v604_v28 = vor.u32 %v603_v18, %v498_v8  ;;  %v368_v34 = vadd.f32 %v2196_v16, %v329_v26  ;;  %v399_v36 = vmax.f32 %v367_v27, 0.0  ;;  %v334_v37 = vmul.f32 %v1843_v21, %v2170_v4 }
  0x38   : > { %v2378_v33 = vpack.c.bf16 %v402_v25, %v401_v22  ;;  %v2385_v40 = vrot.slane %v456_v59, 7  ;;  %v2389_v41 = vrot.slane %v449_v61, 7  ;;  %v601_v55 = vrot.slane %v494_v30, 1 }
  0x39   : > { %v335_v45 = vmul.f32 %v1844_v31, %v2170_v4  ;;  %v400_v46 = vmax.f32 %v368_v34, 0.0  ;;  %v373_v59 = vadd.f32 %v2196_v16, %v334_v37  ;;  %v1839_v3 = vunpack.c.l.bf16 %v1864_v38 }
  0x3a   : > { %738 = vrot.lane.b32.xlu1 %v645_v5, %s2115_s21  ;;  %736 = vrot.lane.b32.xlu0 %v644_v14, %s2115_s21  ;;  %v512_v54 = vshrl.u32 %v2378_v33, 16  ;;  %v515_v63 = vshll.u32 %v2378_v33, 16  ;;  %v602_v61 = vor.u32 %v601_v55, %v491_v29  ;;  %v1840_v5 = vunpack.c.h.bf16 %v1864_v38  ;;  %v1866_v38 = vld [vmem:[%s2178_s29 + $0x70] sm:$0xff]  }
  0x3b   : > { %v374_v1 = vadd.f32 %v2196_v16, %v335_v45  ;;  %v647_v10 = vsel %vm2157_vm2, %v604_v28, 0  ;;  %v2405_v12 = vpack.c.bf16 %v400_v46, %v399_v36  ;;  %v405_v13 = vmax.f32 %v373_v59, 0.0 }
  0x3c   : > { %v607_v57 = vrot.slane %v515_v63, 1  ;;  %v646_v14 = vsel %vm2157_vm2, %v602_v61, 0  ;;  %v332_v21 = vmul.f32 %v1839_v3, %v2170_v4  ;;  %v333_v22 = vmul.f32 %v1840_v5, %v2170_v4 }
  0x3d   : > { %v406_v18 = vmax.f32 %v374_v1, 0.0  ;;  %v505_v26 = vshrl.u32 %v2405_v12, 16  ;;  %v508_v27 = vshll.u32 %v2405_v12, 16  ;;  %v1851_v28 = vunpack.c.l.bf16 %v1867_v7 }
  0x3e   : > { %691 = vrot.lane.b32.xlu1 %v2345_v42, %s2114_s20  ;;  %689 = vrot.lane.b32.xlu0 %v2368_v17, %s2114_s20  ;;  %v608_v25 = vor.u32 %v607_v57, %v512_v54  ;;  %v371_v34 = vadd.f32 %v2196_v16, %v332_v21  ;;  %v372_v36 = vadd.f32 %v2196_v16, %v333_v22  ;;  %v1852_v37 = vunpack.c.h.bf16 %v1867_v7 }
  0x3f   : > { %v2421_v31 = vpack.c.bf16 %v406_v18, %v405_v13  ;;  %v472_v55 = vrot.slane %v470_v43, 7  ;;  %v465_v45 = vrot.slane %v463_v49, 7  ;;  %v605_v46 = vrot.slane %v508_v27, 1 }
  0x40   : > { %v338_v59 = vmul.f32 %v1851_v28, %v2170_v4  ;;  %v2435_v61 = vrot.slane %v484_v19, 7  ;;  %v403_v1 = vmax.f32 %v371_v34, 0.0  ;;  %v404_v3 = vmax.f32 %v372_v36, 0.0 }
  0x41   : > { %v529_v43 = vshll.u32 %v2421_v31, 16  ;;  %v606_v5 = vor.u32 %v605_v46, %v505_v26  ;;  %v339_v49 = vmul.f32 %v1852_v37, %v2170_v4  ;;  %v1847_v57 = vunpack.c.l.bf16 %v1866_v38 }
  0x42   : > { %742 = vrot.lane.b32.xlu1 %v647_v10, %s2115_s21  ;;  %740 = vrot.lane.b32.xlu0 %v646_v14, %s2115_s21  ;;  %v377_v7 = vadd.f32 %v2196_v16, %v338_v59  ;;  %v649_v13 = vsel %vm2157_vm2, %v608_v25, 0  ;;  %v2444_v18 = vpack.c.bf16 %v404_v3, %v403_v1  ;;  %v526_v19 = vshrl.u32 %v2421_v31, 16 }
  0x43   : > { %v1848_v10 = vunpack.c.h.bf16 %v1866_v38  ;;  %v611_v14 = vrot.slane %v529_v43, 1  ;;  %v378_v21 = vadd.f32 %v2196_v16, %v339_v49  ;;  %v336_v28 = vmul.f32 %v1847_v57, %v2170_v4  ;;  %v2104_v38 = vld [vmem:[%s2878_s3 + $0x10] sm:$0x3f]  }
  0x44   : > { %v409_v22 = vmax.f32 %v377_v7, 0.0  ;;  %v648_v25 = vsel %vm2157_vm2, %v606_v5, 0  ;;  %v519_v34 = vshrl.u32 %v2444_v18, 16  ;;  %v522_v36 = vshll.u32 %v2444_v18, 16 }
  0x45   : > { %v337_v37 = vmul.f32 %v1848_v10, %v2170_v4  ;;  %v410_v46 = vmax.f32 %v378_v21, 0.0  ;;  %v375_v59 = vadd.f32 %v2196_v16, %v336_v28  ;;  %v2467_v1 = vor.u32 %v445_v56, %v2333_v32 }
  0x46   : > { %695 = vrot.lane.b32.xlu1 %v2378_v33, %s2114_s20  ;;  %693 = vrot.lane.b32.xlu0 %v2405_v12, %s2114_s20  ;;  %v2472_v3 = vor.u32 %v438_v58, %v2350_v53  ;;  %v479_v4 = vrot.slane %v477_v23, 7  ;;  %v500_v5 = vrot.slane %v498_v8, 7  ;;  %v609_v49 = vrot.slane %v522_v36, 1 }
  0x47   : > { %v376_v7 = vadd.f32 %v2196_v16, %v337_v37  ;;  %v493_v57 = vrot.slane %v491_v29, 7  ;;  %v612_v47 = vor.u32 %v611_v14, %v526_v19  ;;  %v426_v56 = vpack.c.bf16 %v410_v46, %v409_v22 }
  0x48   : > { %v407_v32 = vmax.f32 %v375_v59, 0.0  ;;  %v610_v48 = vor.u32 %v609_v49, %v519_v34  ;;  %v2485_v23 = vsel %vm886_vm3, %v2183_v6, 0  ;;  %v2488_v53 = vsel %vm886_vm3, %v2104_v38, 0 }
  0x49   : > { %v408_v58 = vmax.f32 %v376_v7, 0.0  ;;  %v514_v16 = vrot.slane %v512_v54, 7  ;;  %v543_v8 = vshll.u32 %v426_v56, 16  ;;  %1954 = vmatpush3.bf16.msra.mxu0 %v2485_v23  ;;  %v2496_v29 = vor.u32 %v459_v60, %v2385_v40 }
  0x4a   : > { %746 = vrot.lane.b32.xlu1 %v649_v13, %s2115_s21  ;;  %744 = vrot.lane.b32.xlu0 %v648_v25, %s2115_s21  ;;  %v2501_v13 = vor.u32 %v452_v62, %v2389_v41  ;;  %v507_v6 = vrot.slane %v505_v26, 7  ;;  %v2506_v54 = vor.u32 %v473_v44, %v472_v55  ;;  %v2510_v14 = vor.u32 %v466_v50, %v465_v45 }
  0x4b   : > { %v425_v10 = vpack.c.bf16 %v408_v58, %v407_v32  ;;  %2090 = vmatprep.subr.msk.bf16.mxu0 %vm886_vm3, %v2104_v38  ;;  %v528_v51 = vrot.slane %v526_v19, 7  ;;  %v651_v60 = vsel %vm2157_vm2, %v612_v47, 0  ;;  %v521_v40 = vrot.slane %v519_v34, 7 }
  0x4c   : > { %v540_v52 = vshrl.u32 %v426_v56, 16  ;;  %v650_v62 = vsel %vm2157_vm2, %v610_v48, 0  ;;  %v615_v35 = vrot.slane %v543_v8, 1  ;;  %v2523_v41 = vor.u32 %v487_v20, %v2435_v61 }
  0x4d   : > { %v533_v44 = vshrl.u32 %v425_v10, 16  ;;  %v536_v39 = vshll.u32 %v425_v10, 16  ;;  %v2527_v26 = vor.u32 %v480_v24, %v479_v4  ;;  %v2531_v55 = vor.u32 %v501_v9, %v500_v5 }
  0x4e   : > { %699 = vrot.lane.b32.xlu1 %v2421_v31, %s2114_s20  ;;  %697 = vrot.lane.b32.xlu0 %v2444_v18, %s2114_s20  ;;  %v542_v50 = vrot.slane %v540_v52, 7  ;;  %v2535_v19 = vor.u32 %v494_v30, %v493_v57  ;;  %v2539_v21 = vor.u32 %v515_v63, %v514_v16  ;;  %v616_v11 = vor.u32 %v615_v35, %v540_v52 }
  0x4f   : > { %v535_v45 = vrot.slane %v533_v44, 7  ;;  %v613_v18 = vrot.slane %v536_v39, 1  ;;  %v2545_v20 = vor.u32 %v508_v27, %v507_v6  ;;  %v2549_v24 = vor.u32 %v529_v43, %v528_v51 }
  0x50   : > { %v2551_v42 = vor.u32 %v522_v36, %v521_v40  ;;  %v2553_v9 = vor.u32 %v543_v8, %v542_v50  ;;  %v653_v30 = vsel %vm2157_vm2, %v616_v11, 0  ;;  %v430_v63 = vrot.slane %v2113_v0, 7 }
  0x51   : > { %v614_v15 = vor.u32 %v613_v18, %v533_v44  ;;  %v2555_v17 = vor.u32 %v536_v39, %v535_v45  ;;  %v568_v28 = vsel %vm2567_vm6, 0, %v2467_v1  ;;  %v567_v25 = vsel %vm2567_vm6, 0, %v2472_v3 }
  0x52   : > { %750 = vrot.lane.b32.xlu1 %v651_v60, %s2115_s21  ;;  %748 = vrot.lane.b32.xlu0 %v650_v62, %s2115_s21  ;;  %v566_v27 = vsel %vm2567_vm6, 0, %v430_v63  ;;  %v570_v4 = vsel %vm2567_vm6, 0, %v2496_v29  ;;  %v569_v5 = vsel %vm2567_vm6, 0, %v2501_v13  ;;  %v574_v51 = vsel %vm2567_vm6, 0, %v2523_v41 }
  0x53   : > { %v652_v33 = vsel %vm2157_vm2, %v614_v15, 0  ;;  %v573_v60 = vsel %vm2567_vm6, 0, %v2527_v26  ;;  %v576_v26 = vsel %vm2567_vm6, 0, %v2531_v55  ;;  %v575_v45 = vsel %vm2567_vm6, 0, %v2535_v19 }
  0x56   : > { %703 = vrot.lane.b32.xlu1 %v426_v56, %s2114_s20  ;;  %701 = vrot.lane.b32.xlu0 %v425_v10, %s2114_s20  ;;  %s235_s20 = scalar_lea.vmem %s2880_s5, %s1727_s15 }
  0x5a   : > { %754 = vrot.lane.b32.xlu1 %v653_v30, %s2115_s21  ;;  %752 = vrot.lane.b32.xlu0 %v652_v33, %s2115_s21 }
  0x78   : > { %v672_v31 = vpop.permute.xlu0 %671 }
  0x79   : > { %v759_v2 = vsel %vm756_vm7, %v566_v27, %v672_v31  ;;  %v578_v27 = vsel %vm2567_vm6, 0, %v2539_v21  ;;  %v577_v31 = vsel %vm2567_vm6, 0, %v2545_v20 }
  0x7b   : > { %v723_v61 = vpop.permute.xlu1 %722 }
  0x7c   : > { %v2575_v43 = vsel %vm808_vm8, %v759_v2, %v723_v61 }
  0x7d   : > { %1955 = vmatprep.mubr.msk.bf16.mxu0 %vm853_vm9, %v2575_v43 }
  0x8d   : > { %v676_v0 = vpop.permute.xlu1 %675  ;;  %v674_v22 = vpop.permute.xlu0 %673 }
  0x8e   : > { %v765_v34 = vsel %vm756_vm7, %v568_v28, %v676_v0  ;;  %v762_v36 = vsel %vm756_vm7, %v567_v25, %v674_v22 }
  0x94   : > { %v727_v37 = vpop.permute.xlu1 %726  ;;  %v725_v38 = vpop.permute.xlu0 %724 }
  0x95   : > { %v814_v46 = vsel %vm808_vm8, %v765_v34, %v727_v37  ;;  %v812_v59 = vsel %vm808_vm8, %v762_v36, %v725_v38  ;;  %v580_v34 = vsel %vm2567_vm6, 0, %v2549_v24  ;;  %v579_v36 = vsel %vm2567_vm6, 0, %v2551_v42 }
  0x96   : > { %1921 = vmatprep.mubr.msk.bf16.mxu1 %vm853_vm9, %v812_v59  ;;  %1956 = vmatmul.mubr.msk.bf16.vlgmr.msra.gmra.mrb[0].mxu0 %vm853_vm9, %v812_v59 }
  0x97   : > { %1922 = vmatmul.mubr.msk.bf16.vlgmr.msra.gmra.mrb[0].mxu1 %vm853_vm9, %v814_v46  ;;  %1959 = vmatprep.mubr.msk.bf16.mxu0 %vm853_vm9, %v814_v46 }
  0x98   : > { %2022 = vmatpush3.bf16.msra.mxu1 %v2485_v23  ;;  %1988 = vmatpush3.bf16.msra.mxu0 %v2488_v53  ;;  %v680_v1 = vpop.permute.xlu1 %679  ;;  %v678_v3 = vpop.permute.xlu0 %677  ;;  %v572_v23 = vsel %vm2567_vm6, 0, %v2506_v54  ;;  %v571_v53 = vsel %vm2567_vm6, 0, %v2510_v14 }
  0x99   : > { %v771_v49 = vsel %vm756_vm7, %v570_v4, %v680_v1  ;;  %v768_v7 = vsel %vm756_vm7, %v569_v5, %v678_v3  ;;  %v582_v4 = vsel %vm2567_vm6, 0, %v2553_v9  ;;  %v581_v5 = vsel %vm2567_vm6, 0, %v2555_v17 }
  0x9c   : > { %v731_v57 = vpop.permute.xlu1 %730  ;;  %v729_v47 = vpop.permute.xlu0 %728 }
  0x9d   : > { %v818_v56 = vsel %vm808_vm8, %v771_v49, %v731_v57  ;;  %v816_v32 = vsel %vm808_vm8, %v768_v7, %v729_v47 }
  0x9e   : > { %1925 = vmatprep.mubr.msk.bf16.mxu1 %vm853_vm9, %v816_v32  ;;  %1960 = vmatmul.mubr.msk.bf16.gmra.mrb[4].mxu0 %vm853_vm9, %v816_v32 }
  0x9f   : > { %1926 = vmatmul.mubr.msk.bf16.gmra.mrb[4].mxu1 %vm853_vm9, %v818_v56  ;;  %1963 = vmatprep.mubr.msk.bf16.mxu0 %vm853_vm9, %v818_v56 }
  0xa0   : > { %v684_v48 = vpop.permute.xlu1 %683  ;;  %v682_v58 = vpop.permute.xlu0 %681 }
  0xa1   : > { %v777_v16 = vsel %vm756_vm7, %v572_v23, %v684_v48  ;;  %v774_v8 = vsel %vm756_vm7, %v571_v53, %v682_v58 }
  0xa4   : > { %v735_v29 = vpop.permute.xlu1 %734  ;;  %v733_v13 = vpop.permute.xlu0 %732 }
  0xa5   : > { %v822_v6 = vsel %vm808_vm8, %v777_v16, %v735_v29  ;;  %v820_v10 = vsel %vm808_vm8, %v774_v8, %v733_v13 }
  0xa6   : > { %1929 = vmatprep.mubr.msk.bf16.mxu1 %vm853_vm9, %v820_v10  ;;  %1964 = vmatmul.mubr.msk.bf16.gmra.mrb[8].mxu0 %vm853_vm9, %v820_v10 }
  0xa7   : > { %1930 = vmatmul.mubr.msk.bf16.gmra.mrb[8].mxu1 %vm853_vm9, %v822_v6  ;;  %1967 = vmatprep.mubr.msk.bf16.mxu0 %vm853_vm9, %v822_v6 }
  0xa8   : > { %v688_v54 = vpop.permute.xlu1 %687  ;;  %v686_v14 = vpop.permute.xlu0 %685 }
  0xa9   : > { %v783_v40 = vsel %vm756_vm7, %v574_v51, %v688_v54  ;;  %v780_v52 = vsel %vm756_vm7, %v573_v60, %v686_v14 }
  0xac   : > { %v739_v62 = vpop.permute.xlu1 %738  ;;  %v737_v35 = vpop.permute.xlu0 %736 }
  0xad   : > { %v826_v44 = vsel %vm808_vm8, %v783_v40, %v739_v62  ;;  %v824_v39 = vsel %vm808_vm8, %v780_v52, %v737_v35 }
  0xae   : > { %1933 = vmatprep.mubr.msk.bf16.mxu1 %vm853_vm9, %v824_v39  ;;  %1968 = vmatmul.mubr.msk.bf16.gmra.mrb[12].mxu0 %vm853_vm9, %v824_v39 }
  0xaf   : > { %1934 = vmatmul.mubr.msk.bf16.gmra.mrb[12].mxu1 %vm853_vm9, %v826_v44  ;;  %1989 = vmatprep.mubr.msk.bf16.mxu0 %vm853_vm9, %v814_v46 }
  0xb0   : > { %v692_v50 = vpop.permute.xlu1 %691  ;;  %v690_v41 = vpop.permute.xlu0 %689 }
  0xb1   : > { %v789_v18 = vsel %vm756_vm7, %v576_v26, %v692_v50  ;;  %v786_v11 = vsel %vm756_vm7, %v575_v45, %v690_v41 }
  0xb4   : > { %v743_v15 = vpop.permute.xlu1 %742  ;;  %v741_v30 = vpop.permute.xlu0 %740 }
  0xb5   : > { %v830_v33 = vsel %vm808_vm8, %v789_v18, %v743_v15  ;;  %v828_v63 = vsel %vm808_vm8, %v786_v11, %v741_v30 }
  0xb6   : > { %1937 = vmatprep.mubr.msk.bf16.mxu1 %vm853_vm9, %v828_v63  ;;  %1990 = vmatmul.mubr.msk.bf16.vlgmr.msra.gmra.mrb[0].mxu0 %vm853_vm9, %v816_v32 }
  0xb7   : > { %1938 = vmatmul.mubr.msk.bf16.gmra.mrb[16].mxu1 %vm853_vm9, %v830_v33  ;;  %1993 = vmatprep.mubr.msk.bf16.mxu0 %vm853_vm9, %v818_v56 }
  0xb8   : > { %v696_v55 = vpop.permute.xlu1 %695  ;;  %v694_v19 = vpop.permute.xlu0 %693 }
  0xb9   : > { %v795_v2 = vsel %vm756_vm7, %v578_v27, %v696_v55  ;;  %v792_v61 = vsel %vm756_vm7, %v577_v31, %v694_v19 }
  0xbc   : > { %v747_v0 = vpop.permute.xlu1 %746  ;;  %v745_v22 = vpop.permute.xlu0 %744 }
  0xbd   : > { %v834_v28 = vsel %vm808_vm8, %v795_v2, %v747_v0  ;;  %v832_v25 = vsel %vm808_vm8, %v792_v61, %v745_v22 }
  0xbe   : > { %1941 = vmatprep.mubr.msk.bf16.mxu1 %vm853_vm9, %v832_v25  ;;  %1994 = vmatmul.mubr.msk.bf16.gmra.mrb[4].mxu0 %vm853_vm9, %v820_v10 }
  0xbf   : > { %1942 = vmatmul.mubr.msk.bf16.gmra.mrb[20].mxu1 %vm853_vm9, %v834_v28  ;;  %1997 = vmatprep.mubr.msk.bf16.mxu0 %vm853_vm9, %v822_v6 }
  0xc0   : > { %v700_v21 = vpop.permute.xlu1 %699  ;;  %v698_v20 = vpop.permute.xlu0 %697 }
  0xc1   : > { %v801_v37 = vsel %vm756_vm7, %v580_v34, %v700_v21  ;;  %v798_v38 = vsel %vm756_vm7, %v579_v36, %v698_v20 }
  0xc4   : > { %v751_v46 = vpop.permute.xlu1 %750  ;;  %v749_v59 = vpop.permute.xlu0 %748 }
  0xc5   : > { %v838_v1 = vsel %vm808_vm8, %v801_v37, %v751_v46  ;;  %v836_v3 = vsel %vm808_vm8, %v798_v38, %v749_v59 }
  0xc6   : > { %1945 = vmatprep.mubr.msk.bf16.mxu1 %vm853_vm9, %v836_v3  ;;  %1998 = vmatmul.mubr.msk.bf16.gmra.mrb[8].mxu0 %vm853_vm9, %v824_v39 }
  0xc7   : > { %1946 = vmatmul.mubr.msk.bf16.gmra.mrb[24].mxu1 %vm853_vm9, %v838_v1  ;;  %2001 = vmatprep.mubr.msk.bf16.mxu0 %vm853_vm9, %v826_v44 }
  0xc8   : > { %v704_v24 = vpop.permute.xlu1 %703  ;;  %v702_v42 = vpop.permute.xlu0 %701 }
  0xc9   : > { %v807_v49 = vsel %vm756_vm7, %v582_v4, %v704_v24  ;;  %v804_v7 = vsel %vm756_vm7, %v581_v5, %v702_v42 }
  0xcc   : > { %v755_v57 = vpop.permute.xlu1 %754  ;;  %v753_v47 = vpop.permute.xlu0 %752 }
  0xcd   : > { %v842_v56 = vsel %vm808_vm8, %v807_v49, %v755_v57  ;;  %v840_v32 = vsel %vm808_vm8, %v804_v7, %v753_v47 }
  0xce   : > { %1949 = vmatprep.mubr.msk.bf16.mxu1 %vm853_vm9, %v840_v32  ;;  %2002 = vmatmul.mubr.msk.bf16.gmra.mrb[12].mxu0 %vm853_vm9, %v828_v63 }
  0xcf   : > { %1950 = vmatmul.mubr.msk.bf16.gmra.mrb[28].mxu1 %vm853_vm9, %v842_v56  ;;  %2005 = vmatprep.mubr.msk.bf16.mxu0 %vm853_vm9, %v830_v33 }
  0xd0   : > { %1971 = vmatprep.mubr.msk.bf16.mxu1 %vm853_vm9, %v826_v44 }
  0xd6   : > { %2006 = vmatmul.mubr.msk.bf16.gmra.mrb[16].mxu0 %vm853_vm9, %v832_v25 }
  0xd7   : > { %1972 = vmatmul.mubr.msk.bf16.vlgmr.msra.gmra.mrb[16].mxu1 %vm853_vm9, %v828_v63  ;;  %2009 = vmatprep.mubr.msk.bf16.mxu0 %vm853_vm9, %v834_v28 }
  0xd8   : > { %1975 = vmatprep.mubr.msk.bf16.mxu1 %vm853_vm9, %v830_v33 }
  0xde   : > { %2010 = vmatmul.mubr.msk.bf16.gmra.mrb[20].mxu0 %vm853_vm9, %v836_v3 }
  0xdf   : > { %1976 = vmatmul.mubr.msk.bf16.gmra.mrb[20].mxu1 %vm853_vm9, %v832_v25  ;;  %2013 = vmatprep.mubr.msk.bf16.mxu0 %vm853_vm9, %v838_v1 }
  0xe0   : > { %1979 = vmatprep.mubr.msk.bf16.mxu1 %vm853_vm9, %v834_v28 }
  0xe6   : > { %2014 = vmatmul.mubr.msk.bf16.gmra.mrb[24].mxu0 %vm853_vm9, %v840_v32 }
  0xe7   : > { %1980 = vmatmul.mubr.msk.bf16.gmra.mrb[24].mxu1 %vm853_vm9, %v836_v3  ;;  %2017 = vmatprep.mubr.msk.bf16.mxu0 %vm853_vm9, %v842_v56 }
  0xe8   : > { %1983 = vmatprep.mubr.msk.bf16.mxu1 %vm853_vm9, %v838_v1 }
  0xee   : > { %2018 = vmatmul.mubr.msk.bf16.gmra.mrb[28].mxu0 %vm853_vm9, %v2575_v43 }
  0xef   : > { %1984 = vmatmul.mubr.msk.bf16.gmra.mrb[28].mxu1 %vm853_vm9, %v840_v32 }
 0x16a   : > { %v1923_v9 = vpop.f32.mrb[0].mxu1 }
 0x16b   : > { %v924_v17 = vpop.f32.mrb[1].mxu1 }
 0x16c   : > { %v1924_v12 = vpop.f32.mrb[2].mxu1 }
 0x16d   : > { %v927_v48 = vpop.f32.mrb[3].mxu1 }
 0x172   : > { %v1927_v58 = vpop.f32.mrb[4].mxu1 }
 0x173   : > { %v940_v23 = vpop.f32.mrb[5].mxu1 }
 0x174   : > { %v1928_v53 = vpop.f32.mrb[6].mxu1 }
 0x175   : > { %v943_v16 = vpop.f32.mrb[7].mxu1 }
 0x17a   : > { %v2709_v8 = vpop.f32.mrb[8].mxu1 }
 0x17b   : > { %v2711_v29 = vpop.f32.mrb[9].mxu1 }
 0x17c   : > { %v2713_v13 = vpop.f32.mrb[10].mxu1 }
 0x17d   : > { %v2715_v6 = vpop.f32.mrb[11].mxu1 }
 0x182   : > { %v2717_v43 = vpop.f32.mrb[12].mxu1 }
 0x183   : > { %v2719_v10 = vpop.f32.mrb[13].mxu1 }
 0x184   : > { %v2721_v54 = vpop.f32.mrb[14].mxu1 }
 0x185   : > { %v2723_v14 = vpop.f32.mrb[15].mxu1 }
 0x189   : > { %v1991_v51 = vpop.f32.mrb[0].mxu0 }
 0x18a   : > { %v2023_v60 = vadd.f32 %v1991_v51, %v1923_v9  ;;  %v1267_v40 = vpop.f32.mrb[1].mxu0 }
 0x18b   : > { %v2024_v52 = vadd.f32 %v1267_v40, %v924_v17  ;;  %v1992_v62 = vpop.f32.mrb[2].mxu0 }
 0x18c   : > { %1428 = vst.msk [vmem:[%s2729_s14 + $0x10] sm:$0xff] %vm756_vm7, %v2023_v60  ;;  %v2025_v35 = vadd.f32 %v1992_v62, %v1924_v12  ;;  %v1270_v44 = vpop.f32.mrb[3].mxu0  ;;  %v1529_v41 = vmul.f32 %v2023_v60, %v2023_v60  ;;  %v1461_v30 = vsel %vm756_vm7, %v2023_v60, 0.0 }
 0x18d   : > { %1426 = vst.msk [vmem:[%s2729_s14] sm:$0xff] %vm756_vm7, %v2024_v52  ;;  %v1527_v39 = vmul.f32 %v2024_v52, %v2024_v52  ;;  %v2026_v50 = vadd.f32 %v1270_v44, %v927_v48  ;;  %v1458_v26 = vsel %vm756_vm7, %v2024_v52, 0.0 }
 0x18e   : > { %1429 = vst.msk [vmem:[%s2729_s14 + $0x18] sm:$0xff] %vm756_vm7, %v2025_v35  ;;  %v1530_v11 = vmul.f32 %v2025_v35, %v2025_v35  ;;  %v1562_v61 = vsel %vm756_vm7, %v1529_v41, 0.0  ;;  %v1463_v0 = vsel %vm756_vm7, %v2025_v35, 0.0 }
 0x18f   : > { %1427 = vst.msk [vmem:[%s2729_s14 + $0x8] sm:$0xff] %vm756_vm7, %v2026_v50  ;;  %v1459_v45 = vsel %vm756_vm7, %v2026_v50, 0.0  ;;  %v1528_v18 = vmul.f32 %v2026_v50, %v2026_v50  ;;  %v1559_v33 = vsel %vm756_vm7, %v1527_v39, 0.0 }
 0x190   : > { %v1460_v15 = vadd.f32 %v1459_v45, %v1458_v26  ;;  %v1564_v25 = vsel %vm756_vm7, %v1530_v11, 0.0 }
 0x191   : > { %v1560_v63 = vsel %vm756_vm7, %v1528_v18, 0.0  ;;  %v1995_v55 = vpop.f32.mrb[4].mxu0 }
 0x192   : > { %v1462_v19 = vadd.f32 %v1461_v30, %v1460_v15  ;;  %v1561_v27 = vadd.f32 %v1560_v63, %v1559_v33  ;;  %v2027_v31 = vadd.f32 %v1995_v55, %v1927_v58  ;;  %v1283_v2 = vpop.f32.mrb[5].mxu0 }
 0x193   : > { %v2028_v22 = vadd.f32 %v1283_v2, %v940_v23  ;;  %v1996_v28 = vpop.f32.mrb[6].mxu0 }
 0x194   : > { %v1563_v21 = vadd.f32 %v1562_v61, %v1561_v27  ;;  %1432 = vst.msk [vmem:[%s2729_s14 + $0x30] sm:$0xff] %vm756_vm7, %v2027_v31  ;;  %v1464_v20 = vadd.f32 %v1463_v0, %v1462_v19  ;;  %v1286_v34 = vpop.f32.mrb[7].mxu0  ;;  %v2029_v38 = vadd.f32 %v1996_v28, %v1928_v53  ;;  %v1533_v42 = vmul.f32 %v2027_v31, %v2027_v31 }
 0x195   : > { %1430 = vst.msk [vmem:[%s2729_s14 + $0x20] sm:$0xff] %vm756_vm7, %v2028_v22  ;;  %v1465_v36 = vsel %vm756_vm7, %v2028_v22, 0.0  ;;  %v1531_v37 = vmul.f32 %v2028_v22, %v2028_v22  ;;  %v2030_v46 = vadd.f32 %v1286_v34, %v943_v16  ;;  %v1469_v7 = vsel %vm756_vm7, %v2027_v31, 0.0 }
 0x196   : > { %v1466_v59 = vadd.f32 %v1465_v36, %v1464_v20  ;;  %v1565_v1 = vadd.f32 %v1564_v25, %v1563_v21  ;;  %1433 = vst.msk [vmem:[%s2729_s14 + $0x38] sm:$0xff] %vm756_vm7, %v2029_v38  ;;  %v1534_v47 = vmul.f32 %v2029_v38, %v2029_v38  ;;  %v1471_v12 = vsel %vm756_vm7, %v2029_v38, 0.0 }
 0x197   : > { %v1566_v3 = vsel %vm756_vm7, %v1531_v37, 0.0  ;;  %1431 = vst.msk [vmem:[%s2729_s14 + $0x28] sm:$0xff] %vm756_vm7, %v2030_v46  ;;  %v1467_v24 = vsel %vm756_vm7, %v2030_v46, 0.0  ;;  %v1532_v49 = vmul.f32 %v2030_v46, %v2030_v46  ;;  %v1570_v53 = vsel %vm756_vm7, %v1533_v42, 0.0 }
 0x198   : > { %v1567_v4 = vadd.f32 %v1566_v3, %v1565_v1  ;;  %v1468_v5 = vadd.f32 %v1467_v24, %v1466_v59 }
 0x199   : > { %v1999_v57 = vpop.f32.mrb[8].mxu0  ;;  %v1568_v32 = vsel %vm756_vm7, %v1532_v49, 0.0 }
 0x19a   : > { %v1470_v56 = vadd.f32 %v1469_v7, %v1468_v5  ;;  %v2031_v9 = vadd.f32 %v1999_v57, %v2709_v8  ;;  %v1299_v17 = vpop.f32.mrb[9].mxu0  ;;  %v1569_v48 = vadd.f32 %v1568_v32, %v1567_v4 }
 0x19b   : > { %v2032_v58 = vadd.f32 %v1299_v17, %v2711_v29  ;;  %v2000_v23 = vpop.f32.mrb[10].mxu0  ;;  %v1572_v29 = vsel %vm756_vm7, %v1534_v47, 0.0 }
 0x19c   : > { %1436 = vst.msk [vmem:[%s2729_s14 + $0x50] sm:$0xff] %vm756_vm7, %v2031_v9  ;;  %v1472_v16 = vadd.f32 %v1471_v12, %v1470_v56  ;;  %v2033_v51 = vadd.f32 %v2000_v23, %v2713_v13  ;;  %v1302_v60 = vpop.f32.mrb[11].mxu0  ;;  %v1571_v40 = vadd.f32 %v1570_v53, %v1569_v48  ;;  %v1537_v41 = vmul.f32 %v2031_v9, %v2031_v9 }
 0x19d   : > { %1434 = vst.msk [vmem:[%s2729_s14 + $0x40] sm:$0xff] %vm756_vm7, %v2032_v58  ;;  %v1473_v8 = vsel %vm756_vm7, %v2032_v58, 0.0  ;;  %v1535_v52 = vmul.f32 %v2032_v58, %v2032_v58  ;;  %v2034_v62 = vadd.f32 %v1302_v60, %v2715_v6  ;;  %v1477_v45 = vsel %vm756_vm7, %v2031_v9, 0.0 }
 0x19e   : > { %v1474_v35 = vadd.f32 %v1473_v8, %v1472_v16  ;;  %1437 = vst.msk [vmem:[%s2729_s14 + $0x58] sm:$0xff] %vm756_vm7, %v2033_v51  ;;  %v1573_v44 = vadd.f32 %v1572_v29, %v1571_v40  ;;  %v1538_v15 = vmul.f32 %v2033_v51, %v2033_v51  ;;  %v1479_v55 = vsel %vm756_vm7, %v2033_v51, 0.0 }
 0x19f   : > { %v1574_v39 = vsel %vm756_vm7, %v1535_v52, 0.0  ;;  %1435 = vst.msk [vmem:[%s2729_s14 + $0x48] sm:$0xff] %vm756_vm7, %v2034_v62  ;;  %v1475_v13 = vsel %vm756_vm7, %v2034_v62, 0.0  ;;  %v1536_v50 = vmul.f32 %v2034_v62, %v2034_v62  ;;  %v1578_v2 = vsel %vm756_vm7, %v1537_v41, 0.0 }
 0x1a0   : > { %v1476_v26 = vadd.f32 %v1475_v13, %v1474_v35  ;;  %v1575_v18 = vadd.f32 %v1574_v39, %v1573_v44 }
 0x1a1   : > { %v1576_v6 = vsel %vm756_vm7, %v1536_v50, 0.0  ;;  %v2003_v11 = vpop.f32.mrb[12].mxu0 }
 0x1a2   : > { %v1478_v30 = vadd.f32 %v1477_v45, %v1476_v26  ;;  %v2035_v33 = vadd.f32 %v2003_v11, %v2717_v43  ;;  %v1315_v63 = vpop.f32.mrb[13].mxu0  ;;  %v1577_v19 = vadd.f32 %v1576_v6, %v1575_v18 }
 0x1a3   : > { %v2036_v27 = vadd.f32 %v1315_v63, %v2719_v10  ;;  %v2004_v31 = vpop.f32.mrb[14].mxu0  ;;  %v1580_v10 = vsel %vm756_vm7, %v1538_v15, 0.0 }
 0x1a4   : > { %1440 = vst.msk [vmem:[%s2729_s14 + $0x70] sm:$0xff] %vm756_vm7, %v2035_v33  ;;  %v1480_v61 = vadd.f32 %v1479_v55, %v1478_v30  ;;  %v2037_v0 = vadd.f32 %v2004_v31, %v2721_v54  ;;  %v1318_v22 = vpop.f32.mrb[15].mxu0  ;;  %v1579_v28 = vadd.f32 %v1578_v2, %v1577_v19  ;;  %v1541_v38 = vmul.f32 %v2035_v33, %v2035_v33 }
 0x1a5   : > { %1438 = vst.msk [vmem:[%s2729_s14 + $0x60] sm:$0xff] %vm756_vm7, %v2036_v27  ;;  %v1481_v43 = vsel %vm756_vm7, %v2036_v27, 0.0  ;;  %v1539_v25 = vmul.f32 %v2036_v27, %v2036_v27  ;;  %v2038_v21 = vadd.f32 %v1318_v22, %v2723_v14  ;;  %v1485_v59 = vsel %vm756_vm7, %v2035_v33, 0.0 }
 0x1a6   : > { %v1482_v20 = vadd.f32 %v1481_v43, %v1480_v61  ;;  %1441 = vst.msk [vmem:[%s2729_s14 + $0x78] sm:$0xff] %vm756_vm7, %v2037_v0  ;;  %v1581_v34 = vadd.f32 %v1580_v10, %v1579_v28  ;;  %v1542_v24 = vmul.f32 %v2037_v0, %v2037_v0  ;;  %v1487_v49 = vsel %vm756_vm7, %v2037_v0, 0.0 }
 0x1a7   : > { %v1582_v36 = vsel %vm756_vm7, %v1539_v25, 0.0  ;;  %1439 = vst.msk [vmem:[%s2729_s14 + $0x68] sm:$0xff] %vm756_vm7, %v2038_v21  ;;  %v1483_v54 = vsel %vm756_vm7, %v2038_v21, 0.0  ;;  %v1540_v37 = vmul.f32 %v2038_v21, %v2038_v21  ;;  %v1586_v32 = vsel %vm756_vm7, %v1541_v38, 0.0 }
 0x1a8   : > { %v1484_v46 = vadd.f32 %v1483_v54, %v1482_v20  ;;  %v1583_v1 = vadd.f32 %v1582_v36, %v1581_v34  ;;  %v1588_v16 = vsel %vm756_vm7, %v1542_v24, 0.0 }
 0x1a9   : > { %v1584_v14 = vsel %vm756_vm7, %v1540_v37, 0.0  ;;  %v2007_v3 = vpop.f32.mrb[16].mxu0 }
 0x1aa   : > { %v1486_v42 = vadd.f32 %v1485_v59, %v1484_v46  ;;  %v1973_v4 = vpop.f32.mrb[16].mxu1  ;;  %v1331_v5 = vpop.f32.mrb[17].mxu0  ;;  %v1585_v7 = vadd.f32 %v1584_v14, %v1583_v1 }
 0x1ab   : > { %v2039_v57 = vadd.f32 %v2007_v3, %v1973_v4  ;;  %v1159_v47 = vpop.f32.mrb[17].mxu1  ;;  %v2008_v56 = vpop.f32.mrb[18].mxu0 }
 0x1ac   : > { %v2040_v9 = vadd.f32 %v1331_v5, %v1159_v47  ;;  %v1488_v17 = vadd.f32 %v1487_v49, %v1486_v42  ;;  %v1974_v12 = vpop.f32.mrb[18].mxu1  ;;  %v1334_v48 = vpop.f32.mrb[19].mxu0  ;;  %v1587_v58 = vadd.f32 %v1586_v32, %v1585_v7 }
 0x1ad   : > { %1444 = vst.msk [vmem:[%s2729_s14 + $0x90] sm:$0xff] %vm756_vm7, %v2039_v57  ;;  %v2041_v23 = vadd.f32 %v2008_v56, %v1974_v12  ;;  %v1162_v53 = vpop.f32.mrb[19].mxu1  ;;  %v1545_v62 = vmul.f32 %v2039_v57, %v2039_v57  ;;  %v1493_v26 = vsel %vm756_vm7, %v2039_v57, 0.0 }
 0x1ae   : > { %1442 = vst.msk [vmem:[%s2729_s14 + $0x80] sm:$0xff] %vm756_vm7, %v2040_v9  ;;  %v1489_v51 = vsel %vm756_vm7, %v2040_v9, 0.0  ;;  %v1543_v60 = vmul.f32 %v2040_v9, %v2040_v9  ;;  %v2042_v40 = vadd.f32 %v1334_v48, %v1162_v53  ;;  %v1589_v52 = vadd.f32 %v1588_v16, %v1587_v58 }
 0x1af   : > { %v1490_v8 = vadd.f32 %v1489_v51, %v1488_v17  ;;  %1445 = vst.msk [vmem:[%s2729_s14 + $0x98] sm:$0xff] %vm756_vm7, %v2041_v23  ;;  %v1546_v13 = vmul.f32 %v2041_v23, %v2041_v23  ;;  %v1594_v55 = vsel %vm756_vm7, %v1545_v62, 0.0  ;;  %v1495_v19 = vsel %vm756_vm7, %v2041_v23, 0.0 }
 0x1b0   : > { %v1590_v29 = vsel %vm756_vm7, %v1543_v60, 0.0  ;;  %1443 = vst.msk [vmem:[%s2729_s14 + $0x88] sm:$0xff] %vm756_vm7, %v2042_v40  ;;  %v1491_v35 = vsel %vm756_vm7, %v2042_v40, 0.0  ;;  %v1544_v44 = vmul.f32 %v2042_v40, %v2042_v40 }
 0x1b1   : > { %v1591_v39 = vadd.f32 %v1590_v29, %v1589_v52  ;;  %v1492_v50 = vadd.f32 %v1491_v35, %v1490_v8  ;;  %v2011_v41 = vpop.f32.mrb[20].mxu0  ;;  %v1596_v61 = vsel %vm756_vm7, %v1546_v13, 0.0 }
 0x1b2   : > { %v1592_v45 = vsel %vm756_vm7, %v1544_v44, 0.0  ;;  %v1977_v18 = vpop.f32.mrb[20].mxu1  ;;  %v1347_v6 = vpop.f32.mrb[21].mxu0 }
 0x1b3   : > { %v1494_v11 = vadd.f32 %v1493_v26, %v1492_v50  ;;  %v1593_v15 = vadd.f32 %v1592_v45, %v1591_v39  ;;  %v2043_v30 = vadd.f32 %v2011_v41, %v1977_v18  ;;  %v1175_v33 = vpop.f32.mrb[21].mxu1  ;;  %v2012_v63 = vpop.f32.mrb[22].mxu0 }
 0x1b4   : > { %v2044_v27 = vadd.f32 %v1347_v6, %v1175_v33  ;;  %v1978_v31 = vpop.f32.mrb[22].mxu1  ;;  %v1350_v2 = vpop.f32.mrb[23].mxu0 }
 0x1b5   : > { %v1595_v0 = vadd.f32 %v1594_v55, %v1593_v15  ;;  %1448 = vst.msk [vmem:[%s2729_s14 + $0xb0] sm:$0xff] %vm756_vm7, %v2043_v30  ;;  %v1496_v22 = vadd.f32 %v1495_v19, %v1494_v11  ;;  %v1178_v28 = vpop.f32.mrb[23].mxu1  ;;  %v2045_v21 = vadd.f32 %v2012_v63, %v1978_v31  ;;  %v1549_v37 = vmul.f32 %v2043_v30, %v2043_v30 }
 0x1b6   : > { %1446 = vst.msk [vmem:[%s2729_s14 + $0xa0] sm:$0xff] %vm756_vm7, %v2044_v27  ;;  %v1497_v43 = vsel %vm756_vm7, %v2044_v27, 0.0  ;;  %v1547_v25 = vmul.f32 %v2044_v27, %v2044_v27  ;;  %v2046_v10 = vadd.f32 %v1350_v2, %v1178_v28  ;;  %v1501_v14 = vsel %vm756_vm7, %v2043_v30, 0.0 }
 0x1b7   : > { %v1498_v20 = vadd.f32 %v1497_v43, %v1496_v22  ;;  %v1597_v34 = vadd.f32 %v1596_v61, %v1595_v0  ;;  %1449 = vst.msk [vmem:[%s2729_s14 + $0xb8] sm:$0xff] %vm756_vm7, %v2045_v21  ;;  %v1550_v42 = vmul.f32 %v2045_v21, %v2045_v21  ;;  %v1503_v47 = vsel %vm756_vm7, %v2045_v21, 0.0 }
 0x1b8   : > { %v1598_v36 = vsel %vm756_vm7, %v1547_v25, 0.0  ;;  %1447 = vst.msk [vmem:[%s2729_s14 + $0xa8] sm:$0xff] %vm756_vm7, %v2046_v10  ;;  %v1499_v54 = vsel %vm756_vm7, %v2046_v10, 0.0  ;;  %v1548_v59 = vmul.f32 %v2046_v10, %v2046_v10  ;;  %v1602_v12 = vsel %vm756_vm7, %v1549_v37, 0.0 }
 0x1b9   : > { %v1599_v38 = vadd.f32 %v1598_v36, %v1597_v34  ;;  %v1500_v46 = vadd.f32 %v1499_v54, %v1498_v20  ;;  %v2015_v1 = vpop.f32.mrb[24].mxu0  ;;  %v1604_v40 = vsel %vm756_vm7, %v1550_v42, 0.0 }
 0x1ba   : > { %v1981_v3 = vpop.f32.mrb[24].mxu1  ;;  %v1363_v24 = vpop.f32.mrb[25].mxu0  ;;  %v1600_v5 = vsel %vm756_vm7, %v1548_v59, 0.0 }
 0x1bb   : > { %v1502_v4 = vadd.f32 %v1501_v14, %v1500_v46  ;;  %v2047_v49 = vadd.f32 %v2015_v1, %v1981_v3  ;;  %v1191_v7 = vpop.f32.mrb[25].mxu1  ;;  %v2016_v57 = vpop.f32.mrb[26].mxu0  ;;  %v1601_v56 = vadd.f32 %v1600_v5, %v1599_v38 }
 0x1bc   : > { %v2048_v32 = vadd.f32 %v1363_v24, %v1191_v7  ;;  %v1982_v9 = vpop.f32.mrb[26].mxu1  ;;  %v1366_v17 = vpop.f32.mrb[27].mxu0 }
 0x1bd   : > { %1452 = vst.msk [vmem:[%s2729_s14 + $0xd0] sm:$0xff] %vm756_vm7, %v2047_v49  ;;  %v1504_v48 = vadd.f32 %v1503_v47, %v1502_v4  ;;  %v2049_v58 = vadd.f32 %v2016_v57, %v1982_v9  ;;  %v1194_v23 = vpop.f32.mrb[27].mxu1  ;;  %v1603_v53 = vadd.f32 %v1602_v12, %v1601_v56  ;;  %v1553_v44 = vmul.f32 %v2047_v49, %v2047_v49 }
 0x1be   : > { %1450 = vst.msk [vmem:[%s2729_s14 + $0xc0] sm:$0xff] %vm756_vm7, %v2048_v32  ;;  %v1505_v16 = vsel %vm756_vm7, %v2048_v32, 0.0  ;;  %v1551_v51 = vmul.f32 %v2048_v32, %v2048_v32  ;;  %v2050_v60 = vadd.f32 %v1366_v17, %v1194_v23  ;;  %v1509_v50 = vsel %vm756_vm7, %v2047_v49, 0.0 }
 0x1bf   : > { %v1506_v8 = vadd.f32 %v1505_v16, %v1504_v48  ;;  %1453 = vst.msk [vmem:[%s2729_s14 + $0xd8] sm:$0xff] %vm756_vm7, %v2049_v58  ;;  %v1605_v52 = vadd.f32 %v1604_v40, %v1603_v53  ;;  %v1554_v6 = vmul.f32 %v2049_v58, %v2049_v58  ;;  %v1511_v63 = vsel %vm756_vm7, %v2049_v58, 0.0 }
 0x1c0   : > { %v1606_v62 = vsel %vm756_vm7, %v1551_v51, 0.0  ;;  %1451 = vst.msk [vmem:[%s2729_s14 + $0xc8] sm:$0xff] %vm756_vm7, %v2050_v60  ;;  %v1507_v29 = vsel %vm756_vm7, %v2050_v60, 0.0  ;;  %v1552_v35 = vmul.f32 %v2050_v60, %v2050_v60  ;;  %v1610_v2 = vsel %vm756_vm7, %v1553_v44, 0.0 }
 0x1c1   : > { %v1508_v39 = vadd.f32 %v1507_v29, %v1506_v8  ;;  %v2019_v13 = vpop.f32.mrb[28].mxu0  ;;  %v1607_v41 = vadd.f32 %v1606_v62, %v1605_v52  ;;  %v1612_v10 = vsel %vm756_vm7, %v1554_v6, 0.0 }
 0x1c2   : > { %v1608_v26 = vsel %vm756_vm7, %v1552_v35, 0.0  ;;  %v1985_v45 = vpop.f32.mrb[28].mxu1  ;;  %v1379_v18 = vpop.f32.mrb[29].mxu0 }
 0x1c3   : > { %v1510_v11 = vadd.f32 %v1509_v50, %v1508_v39  ;;  %v2051_v15 = vadd.f32 %v2019_v13, %v1985_v45  ;;  %v1207_v30 = vpop.f32.mrb[29].mxu1  ;;  %v2020_v33 = vpop.f32.mrb[30].mxu0  ;;  %v1609_v55 = vadd.f32 %v1608_v26, %v1607_v41 }
 0x1c4   : > { %v2052_v19 = vadd.f32 %v1379_v18, %v1207_v30  ;;  %v1986_v27 = vpop.f32.mrb[30].mxu1  ;;  %v1382_v31 = vpop.f32.mrb[31].mxu0 }
 0x1c5   : > { %1456 = vst.msk [vmem:[%s2729_s14 + $0xf0] sm:$0xff] %vm756_vm7, %v2051_v15  ;;  %v1512_v61 = vadd.f32 %v1511_v63, %v1510_v11  ;;  %v2053_v0 = vadd.f32 %v2020_v33, %v1986_v27  ;;  %v1210_v22 = vpop.f32.mrb[31].mxu1  ;;  %v1611_v28 = vadd.f32 %v1610_v2, %v1609_v55  ;;  %v1557_v38 = vmul.f32 %v2051_v15, %v2051_v15 }
 0x1c6   : > { %1454 = vst.msk [vmem:[%s2729_s14 + $0xe0] sm:$0xff] %vm756_vm7, %v2052_v19  ;;  %v1513_v43 = vsel %vm756_vm7, %v2052_v19, 0.0  ;;  %v1555_v25 = vmul.f32 %v2052_v19, %v2052_v19  ;;  %v2054_v21 = vadd.f32 %v1382_v31, %v1210_v22  ;;  %v1517_v59 = vsel %vm756_vm7, %v2051_v15, 0.0 }
 0x1c7   : > { %v1514_v20 = vadd.f32 %v1513_v43, %v1512_v61  ;;  %1457 = vst.msk [vmem:[%s2729_s14 + $0xf8] sm:$0xff] %vm756_vm7, %v2053_v0  ;;  %v1613_v34 = vadd.f32 %v1612_v10, %v1611_v28  ;;  %v1558_v3 = vmul.f32 %v2053_v0, %v2053_v0  ;;  %v1519_v42 = vsel %vm756_vm7, %v2053_v0, 0.0 }
 0x1c8   : > { %v1614_v36 = vsel %vm756_vm7, %v1555_v25, 0.0  ;;  %1455 = vst.msk [vmem:[%s2729_s14 + $0xe8] sm:$0xff] %vm756_vm7, %v2054_v21  ;;  %v1515_v54 = vsel %vm756_vm7, %v2054_v21, 0.0  ;;  %v1556_v37 = vmul.f32 %v2054_v21, %v2054_v21  ;;  %v1618_v5 = vsel %vm756_vm7, %v1557_v38, 0.0 }
 0x1c9   : > { %v1516_v46 = vadd.f32 %v1515_v54, %v1514_v20  ;;  %v1615_v1 = vadd.f32 %v1614_v36, %v1613_v34  ;;  %v1620_v57 = vsel %vm756_vm7, %v1558_v3, 0.0 }
 0x1ca   : > { %v1616_v14 = vsel %vm756_vm7, %v1556_v37, 0.0 }
 0x1cb   : > { %v1518_v24 = vadd.f32 %v1517_v59, %v1516_v46  ;;  %v1617_v4 = vadd.f32 %v1616_v14, %v1615_v1 }
 0x1cd   : > { %v1520_v49 = vadd.f32 %v1519_v42, %v1518_v24  ;;  %v1619_v7 = vadd.f32 %v1618_v5, %v1617_v4 }
 0x1cf   : > { %v1521_v47 = vrot.slane %v1520_v49, 4  ;;  %v1621_v56 = vadd.f32 %v1620_v57, %v1619_v7 }
 0x1d1   : > { %v1522_v32 = vadd.f32 %v1521_v47, %v1520_v49  ;;  %v1622_v9 = vrot.slane %v1621_v56, 4 }
 0x1d3   : > { %v1523_v17 = vrot.slane %v1522_v32, 2  ;;  %v1623_v12 = vadd.f32 %v1622_v9, %v1621_v56 }
 0x1d5   : > { %v1524_v48 = vadd.f32 %v1523_v17, %v1522_v32  ;;  %v1624_v58 = vrot.slane %v1623_v12, 2 }
 0x1d7   : > { %v1525_v23 = vrot.slane %v1524_v48, 1  ;;  %v1625_v53 = vadd.f32 %v1624_v58, %v1623_v12 }
 0x1d9   : > { %v1626_v16 = vrot.slane %v1625_v53, 1  ;;  %v1526_v51 = vadd.f32 %v1525_v23, %v1524_v48 }
 0x1db   : > { %v1627_v60 = vadd.f32 %v1626_v16, %v1625_v53 }
 0x1dd   : > { %v1629_v40 = vsel %vm563_vm4, %v1526_v51, %v1627_v60 }
 0x1de   : > { %1631 = vst.msk [vmem:[%s235_s20] sm:$0x3] %vm1630_vm10, %v1629_v40 }
 0x1df PF: > { %s16_s18 = sadd.s32 1, %s2111_s18  }
 0x1e0   : > { %p13_p4 = scmp.ge.s32.totalorder %s16_s18, 4  }
 0x1e2   :  { %15 = sbr.rel (!%p13_p4) target bundleno = 1 (0x1), region = 80 }

// kernel: up_forward.5
= control target key start
LH: loop header
LB: loop body
LE: loop exit
PB: predicated region body
PF: predicated region fallthrough
CT: control target
= control target key end

     0   :  { %s2460_s15 = smov 0   ;;  %s3086_s0 = inlined_call_operand.vmem [shape: bf16[2,16,16,4], index: 0, kind: input, shape index: {}]   ;;  %s3087_s1 = inlined_call_operand.vmem [shape: bf16[2,16,16,4], index: 1, kind: input, shape index: {}]   ;;  %s3088_s2 = inlined_call_operand.vmem [shape: bf16[3,24,4], index: 2, kind: input, shape index: {}]   ;;  %s3089_s3 = inlined_call_operand.vmem [shape: bf16[2,16,16,4], index: 3, kind: output, shape index: {0}]   ;;  %s3090_s4 = inlined_call_operand.vmem [shape: f32[2,2,4], index: 4, kind: output, shape index: {1}]  }
   0x1 LB: > { %s1966_s16 = sadd.s32 4294967295, %s2429_s15   ;;  %p1970_p0 = scmp.ge.s32.totalorder %s2429_s15, 1  ;;  %s2429_s15 = sphi %s2460_s15, %s15_s15  }
   0x2   : > { %p175_p1 = scmp.lt.s32.totalorder %s2429_s15, 3 }
   0x4   : > { %p176_p2 = pnand %p1970_p0, %p175_p1 }
   0x5   : > { %p210_p3 = scmp.lt.s32.totalorder (!%p176_p2), %s1966_s16, 1  ;;  %s2431_s21 = smov (!%p176_p2), 4   ;;  %vm727_vm0 = vsmask.f32 (!%p176_p2), 7424  ;;  %vm726_vm1 = vcmask (!%p176_p2), 1047552   ;;  %v2432_v16 = vmov (!%p176_p2), 0  }
   0x6   : > { %179 = sbr.rel (%p176_p2) target bundleno = 588 (0x24c), region = 32  ;;  %v675_v17 = vrot.slane (!%p176_p2), %v2432_v16, 1  ;;  %vm2516_vm2 = vmand (!%p176_p2), %vm726_vm1, %vm727_vm0  ;;  %s2433_s25 = smov (!%p176_p2), 8   ;;  %v2530_v20 = vld [vmem:[%s3088_s2] sm:$0xff] (!%p176_p2)   ;;  %v2418_v21 = vld [vmem:[%s3088_s2 + $0xc] sm:$0xff] (!%p176_p2)   ;;  %vm984_vm3 = vcmask (!%p176_p2), 1043456  }
   0x7   : > { %s2434_s26 = smov (!%p176_p2), 16   ;;  %2229 = vmatprep.subr.bf16.mxu0 (!%p176_p2), %v2530_v20  ;;  %2193 = vmatprep.subr.bf16.mxu1 (!%p176_p2), %v2418_v21  ;;  %v2540_v22 = vld [vmem:[%s3088_s2 + $0x8] ss:$0 sps:$4 sm:$0xff] (!%p176_p2)   ;;  %v2420_v23 = vld [vmem:[%s3088_s2 + $0x14] ss:$0 sps:$4 sm:$0xff] (!%p176_p2)   ;;  %vm486_vm4 = vcmask (!%p176_p2), 31744  }
   0x8   : > { %v729_v19 = vsel (!%p176_p2), %vm2516_vm2, %v675_v17, 0  ;;  %2230 = vmatpush3.bf16.msra.mxu0 (!%p176_p2), %v2530_v20  ;;  %2194 = vmatpush3.bf16.msra.mxu1 (!%p176_p2), %v2418_v21  ;;  %v2549_v24 = vsel (!%p176_p2), %vm984_vm3, %v2540_v22, 0  ;;  %v986_v25 = vsel (!%p176_p2), %vm984_vm3, %v2420_v23, 0  ;;  %v2560_v29 = vld [vmem:[%s3088_s2 + $0x18] sm:$0xff] (!%p176_p2)   ;;  %vm655_vm5 = vcmask (!%p176_p2), 1040384  }
   0x9   : > { %2370 = vmatprep.subr.msk.bf16.mxu0 (!%p176_p2), %vm984_vm3, %v2540_v22  ;;  %2369 = vmatprep.subr.msk.bf16.mxu1 (!%p176_p2), %vm984_vm3, %v2420_v23  ;;  %vm656_vm6 = vsmask.f32 (!%p176_p2), 256  ;;  %vm848_vm8 = vcmask (!%p176_p2), 64512   ;;  %vm900_vm9 = vcmask (!%p176_p2), 130048   ;;  %vm951_vm10 = vcmask (!%p176_p2), 195584  }
   0xa   : > { %vm2633_vm7 = vmand (!%p176_p2), %vm655_vm5, %vm656_vm6  ;;  %vm1661_vm11 = vcmask (!%p176_p2), 27648   ;;  %vm1866_vm12 = vcmask (!%p176_p2), 25600  }
   0xc   : > { %2232 = vmatpush3.bf16.msra.mxu0 (!%p176_p2), %v2549_v24  ;;  %2196 = vmatpush3.bf16.msra.mxu1 (!%p176_p2), %v986_v25 }
   0xd   : > { %s3096_s16 = smov (!%p210_p3, %s1966_s16), 1  ;;  %2301 = vmatprep.subr.bf16.mxu1 %v2530_v20  ;;  %2265 = vmatprep.subr.bf16.mxu0 %v2560_v29 }
   0xe   : > { %s2471_s17 = sshll.u32 %s3096_s16, 7 }
   0xf   : > { %s2477_s20 = scalar_lea.vmem %s3087_s1, %s2471_s17  ;;  %s2499_s24 = scalar_lea.vmem %s3086_s0, %s2471_s17 }
  0x10   : > { %v2385_v0 = vld [vmem:[%s2477_s20] sm:$0xff]   ;;  %v2386_v1 = vld [vmem:[%s2477_s20 + $0x8] sm:$0xff]   ;;  %v2387_v2 = vld [vmem:[%s2477_s20 + $0x10] sm:$0xff]   ;;  %s2940_s18 = scalar_lea.vmem %s3089_s3, %s2471_s17  ;;  %s1977_s17 = sshll.u32 %s3096_s16, 1 }
  0x11   : > { %454 = vrot.lane.b32.xlu0 %v2385_v0, %s2431_s21  ;;  %458 = vrot.lane.b32.xlu1 %v2387_v2, %s2431_s21  ;;  %v2388_v3 = vld [vmem:[%s2477_s20 + $0x18] sm:$0xff]   ;;  %v2389_v4 = vld [vmem:[%s2477_s20 + $0x20] sm:$0xff]  }
  0x12   : > { %v2390_v5 = vld [vmem:[%s2477_s20 + $0x28] sm:$0xff]   ;;  %v2391_v6 = vld [vmem:[%s2477_s20 + $0x30] sm:$0xff]   ;;  %v2392_v7 = vld [vmem:[%s2477_s20 + $0x38] sm:$0xff]  }
  0x13   : > { %v2393_v8 = vld [vmem:[%s2477_s20 + $0x40] sm:$0xff]   ;;  %v2394_v9 = vld [vmem:[%s2477_s20 + $0x48] sm:$0xff]   ;;  %v2395_v10 = vld [vmem:[%s2477_s20 + $0x50] sm:$0xff]  }
  0x14   : > { %v2396_v11 = vld [vmem:[%s2477_s20 + $0x58] sm:$0xff]   ;;  %v2397_v12 = vld [vmem:[%s2477_s20 + $0x60] sm:$0xff]   ;;  %v2398_v13 = vld [vmem:[%s2477_s20 + $0x68] sm:$0xff]  }
  0x15   : > { %456 = vrot.lane.b32.xlu0 %v2386_v1, %s2431_s21  ;;  %460 = vrot.lane.b32.xlu1 %v2388_v3, %s2431_s21  ;;  %v2399_v14 = vld [vmem:[%s2477_s20 + $0x70] sm:$0xff]   ;;  %v2400_v15 = vld [vmem:[%s2477_s20 + $0x78] sm:$0xff]  }
  0x16   : > { %v2401_v26 = vld [vmem:[%s2499_s24] sm:$0xff]   ;;  %v2403_v27 = vld [vmem:[%s2499_s24 + $0x10] sm:$0xff]   ;;  %v2402_v31 = vld [vmem:[%s2499_s24 + $0x8] sm:$0xff]  }
  0x17   : > { %v2404_v36 = vld [vmem:[%s2499_s24 + $0x18] sm:$0xff]   ;;  %v2405_v42 = vld [vmem:[%s2499_s24 + $0x20] sm:$0xff]   ;;  %v2406_v57 = vld [vmem:[%s2499_s24 + $0x28] sm:$0xff]  }
  0x18   : > { %v2407_v3 = vld [vmem:[%s2499_s24 + $0x30] sm:$0xff]  }
  0x19   : > { %462 = vrot.lane.b32.xlu0 %v2389_v4, %s2431_s21  ;;  %464 = vrot.lane.b32.xlu1 %v2390_v5, %s2431_s21  ;;  %v2408_v4 = vld [vmem:[%s2499_s24 + $0x38] sm:$0xff]  }
  0x1d   : > { %466 = vrot.lane.b32.xlu0 %v2391_v6, %s2431_s21  ;;  %468 = vrot.lane.b32.xlu1 %v2392_v7, %s2431_s21 }
  0x21   : > { %470 = vrot.lane.b32.xlu0 %v2393_v8, %s2431_s21  ;;  %472 = vrot.lane.b32.xlu1 %v2394_v9, %s2431_s21 }
  0x25   : > { %474 = vrot.lane.b32.xlu0 %v2395_v10, %s2431_s21  ;;  %476 = vrot.lane.b32.xlu1 %v2396_v11, %s2431_s21 }
  0x29   : > { %478 = vrot.lane.b32.xlu0 %v2397_v12, %s2431_s21  ;;  %480 = vrot.lane.b32.xlu1 %v2398_v13, %s2431_s21 }
  0x2d   : > { %482 = vrot.lane.b32.xlu0 %v2399_v14, %s2431_s21  ;;  %484 = vrot.lane.b32.xlu1 %v2400_v15, %s2431_s21  ;;  %s228_s21 = scalar_lea.vmem %s3090_s4, %s1977_s17 }
  0x31   : > { %763 = vrot.lane.b32.xlu0 %v2432_v16, %s2433_s25  ;;  %814 = vrot.lane.b32.xlu1 %v729_v19, %s2434_s26 }
  0x83   : > { %v455_v28 = vpop.permute.xlu0 %454  ;;  %v459_v34 = vpop.permute.xlu1 %458 }
  0x84   : > { %v489_v30 = vsel %vm486_vm4, %v2401_v26, %v455_v28  ;;  %v495_v35 = vsel %vm486_vm4, %v2403_v27, %v459_v34  ;;  %v2409_v26 = vld [vmem:[%s2499_s24 + $0x40] sm:$0xff]  }
  0x85   : > { %765 = vrot.lane.b32.xlu1 %v489_v30, %s2433_s25  ;;  %v542_v32 = vshrl.u32 %v489_v30, 16  ;;  %v545_v33 = vshll.u32 %v489_v30, 16  ;;  %v557_v41 = vshll.u32 %v495_v35, 16  ;;  %v554_v47 = vshrl.u32 %v495_v35, 16 }
  0x87   : > { %v544_v37 = vrot.slane %v542_v32, 7  ;;  %v457_v38 = vpop.permute.xlu0 %456  ;;  %v677_v39 = vrot.slane %v545_v33, 1  ;;  %v461_v45 = vpop.permute.xlu1 %460  ;;  %v681_v55 = vrot.slane %v557_v41, 1  ;;  %v556_v60 = vrot.slane %v554_v47, 7 }
  0x88   : > { %v492_v40 = vsel %vm486_vm4, %v2402_v31, %v457_v38  ;;  %v498_v48 = vsel %vm486_vm4, %v2404_v36, %v461_v45  ;;  %v2410_v36 = vld [vmem:[%s2499_s24 + $0x48] sm:$0xff]   ;;  %v2412_v38 = vld [vmem:[%s2499_s24 + $0x58] sm:$0xff]  }
  0x89   : > { %767 = vrot.lane.b32.xlu0 %v492_v40, %s2433_s25  ;;  %v548_v43 = vshrl.u32 %v492_v40, 16  ;;  %v551_v44 = vshll.u32 %v492_v40, 16  ;;  %v678_v46 = vor.u32 %v677_v39, %v542_v32  ;;  %v2572_v49 = vor.u32 %v545_v33, %v544_v37  ;;  %v2411_v37 = vld [vmem:[%s2499_s24 + $0x50] sm:$0xff]  }
  0x8a   : > { %v563_v54 = vshll.u32 %v498_v48, 16  ;;  %v560_v61 = vshrl.u32 %v498_v48, 16  ;;  %v682_v5 = vor.u32 %v681_v55, %v554_v47  ;;  %v2590_v11 = vor.u32 %v557_v41, %v556_v60 }
  0x8b   : > { %v550_v50 = vrot.slane %v548_v43, 7  ;;  %v730_v51 = vsel %vm2516_vm2, %v678_v46, 0  ;;  %v679_v52 = vrot.slane %v551_v44, 1  ;;  %v463_v53 = vpop.permute.xlu0 %462  ;;  %v465_v59 = vpop.permute.xlu1 %464  ;;  %v2414_v46 = vld [vmem:[%s2499_s24 + $0x68] sm:$0xff]  }
  0x8c   : > { %v501_v56 = vsel %vm486_vm4, %v2405_v42, %v463_v53  ;;  %v683_v1 = vrot.slane %v563_v54, 1  ;;  %v2587_v6 = vsel %vm486_vm4, %v2406_v57, %v465_v59  ;;  %v562_v9 = vrot.slane %v560_v61, 7 }
  0x8d   : > { %816 = vrot.lane.b32.xlu0 %v730_v51, %s2434_s26  ;;  %v680_v58 = vor.u32 %v679_v52, %v548_v43  ;;  %v569_v62 = vshll.u32 %v501_v56, 16  ;;  %v2579_v63 = vor.u32 %v551_v44, %v550_v50  ;;  %v566_v7 = vshrl.u32 %v501_v56, 16  ;;  %v2413_v43 = vld [vmem:[%s2499_s24 + $0x60] sm:$0xff]  }
  0x8e   : > { %v684_v12 = vor.u32 %v683_v1, %v560_v61  ;;  %v575_v13 = vshll.u32 %v2587_v6, 16  ;;  %v732_v19 = vsel %vm2516_vm2, %v682_v5, 0  ;;  %v572_v23 = vshrl.u32 %v2587_v6, 16 }
  0x8f   : > { %v731_v0 = vsel %vm2516_vm2, %v680_v58, 0  ;;  %v467_v2 = vpop.permute.xlu0 %466  ;;  %v469_v8 = vpop.permute.xlu1 %468  ;;  %v685_v10 = vrot.slane %v569_v62, 1  ;;  %v568_v21 = vrot.slane %v566_v7, 7  ;;  %v2607_v31 = vor.u32 %v563_v54, %v562_v9  ;;  %v2415_v58 = vld [vmem:[%s2499_s24 + $0x70] sm:$0xff]  }
  0x90   : > { %818 = vrot.lane.b32.xlu1 %v731_v0, %s2434_s26  ;;  %v2594_v14 = vsel %vm486_vm4, %v2407_v3, %v467_v2  ;;  %v2597_v17 = vsel %vm486_vm4, %v2408_v4, %v469_v8  ;;  %v733_v32 = vsel %vm2516_vm2, %v684_v12, 0  ;;  %v687_v33 = vrot.slane %v575_v13, 1  ;;  %v2416_v3 = vld [vmem:[%s2499_s24 + $0x78] sm:$0xff]  }
  0x91   : > { %769 = vrot.lane.b32.xlu0 %v495_v35, %s2433_s25  ;;  %v686_v27 = vor.u32 %v685_v10, %v566_v7  ;;  %v581_v28 = vshll.u32 %v2594_v14, 16  ;;  %v587_v30 = vshll.u32 %v2597_v17, 16  ;;  %v2612_v35 = vrot.slane %v2432_v16, 7 }
  0x92   : > { %v574_v39 = vrot.slane %v572_v23, 7  ;;  %v578_v40 = vshrl.u32 %v2594_v14, 16  ;;  %v688_v50 = vor.u32 %v687_v33, %v572_v23  ;;  %v584_v51 = vshrl.u32 %v2597_v17, 16 }
  0x93   : > { %v471_v15 = vpop.permute.xlu0 %470  ;;  %v473_v25 = vpop.permute.xlu1 %472  ;;  %v734_v16 = vsel %vm2516_vm2, %v686_v27, 0  ;;  %v689_v44 = vrot.slane %v581_v28, 1  ;;  %v691_v45 = vrot.slane %v587_v30, 1  ;;  %v658_v53 = vsel %vm2633_vm7, 0, %v2612_v35 }
  0x94   : > { %771 = vrot.lane.b32.xlu1 %v498_v48, %s2433_s25  ;;  %v2621_v41 = vsel %vm486_vm4, %v2409_v26, %v471_v15  ;;  %v2637_v48 = vor.u32 %v569_v62, %v568_v21  ;;  %v2647_v55 = vsel %vm486_vm4, %v2410_v36, %v473_v25  ;;  %v580_v59 = vrot.slane %v578_v40, 7 }
  0x95   : > { %820 = vrot.lane.b32.xlu0 %v732_v19, %s2434_s26  ;;  %v593_v54 = vshll.u32 %v2621_v41, 16  ;;  %v590_v60 = vshrl.u32 %v2621_v41, 16  ;;  %v690_v0 = vor.u32 %v689_v44, %v578_v40  ;;  %v692_v1 = vor.u32 %v691_v45, %v584_v51 }
  0x96   : > { %v2665_v4 = vor.u32 %v575_v13, %v574_v39  ;;  %v735_v5 = vsel %vm2516_vm2, %v688_v50, 0  ;;  %v586_v10 = vrot.slane %v584_v51, 7  ;;  %v599_v21 = vshll.u32 %v2647_v55, 16 }
  0x97   : > { %v475_v34 = vpop.permute.xlu0 %474  ;;  %v477_v42 = vpop.permute.xlu1 %476  ;;  %v693_v12 = vrot.slane %v593_v54, 1  ;;  %v592_v13 = vrot.slane %v590_v60, 7  ;;  %v736_v27 = vsel %vm2516_vm2, %v690_v0, 0  ;;  %v660_v18 = vsel %vm2633_vm7, 0, %v2579_v63 }
  0x98   : > { %822 = vrot.lane.b32.xlu1 %v733_v32, %s2434_s26  ;;  %v2653_v57 = vsel %vm486_vm4, %v2412_v38, %v477_v42  ;;  %v737_v32 = vsel %vm2516_vm2, %v692_v1, 0  ;;  %v661_v63 = vsel %vm2633_vm7, 0, %v2590_v11 }
  0x99   : > { %773 = vrot.lane.b32.xlu0 %v501_v56, %s2433_s25  ;;  %v2650_v56 = vsel %vm486_vm4, %v2411_v37, %v475_v34  ;;  %v608_v8 = vshrl.u32 %v2653_v57, 16  ;;  %v2691_v34 = vor.u32 %v581_v28, %v580_v59  ;;  %v694_v40 = vor.u32 %v693_v12, %v590_v60 }
  0x9a   : > { %v602_v7 = vshrl.u32 %v2650_v56, 16  ;;  %v605_v42 = vshll.u32 %v2650_v56, 16 }
  0x9b   : > { %v479_v52 = vpop.permute.xlu0 %478  ;;  %v481_v61 = vpop.permute.xlu1 %480  ;;  %v610_v37 = vrot.slane %v608_v8, 7  ;;  %v738_v1 = vsel %vm2516_vm2, %v694_v40, 0 }
  0x9c   : > { %775 = vrot.lane.b32.xlu1 %v2587_v6, %s2433_s25  ;;  %v2659_v62 = vsel %vm486_vm4, %v2413_v43, %v479_v52  ;;  %v2662_v2 = vsel %vm486_vm4, %v2414_v46, %v481_v61  ;;  %v596_v6 = vshrl.u32 %v2647_v55, 16  ;;  %v604_v36 = vrot.slane %v602_v7, 7 }
  0x9d   : > { %824 = vrot.lane.b32.xlu0 %v734_v16, %s2434_s26  ;;  %v614_v15 = vshrl.u32 %v2659_v62, 16  ;;  %v620_v23 = vshrl.u32 %v2662_v2, 16  ;;  %v617_v28 = vshll.u32 %v2659_v62, 16  ;;  %v2712_v52 = vor.u32 %v587_v30, %v586_v10 }
  0x9e   : > { %v598_v35 = vrot.slane %v596_v6, 7  ;;  %v2720_v60 = vor.u32 %v605_v42, %v604_v36  ;;  %v623_v0 = vshll.u32 %v2662_v2, 16 }
  0x9f   : > { %v483_v9 = vpop.permute.xlu0 %482  ;;  %v485_v25 = vpop.permute.xlu1 %484  ;;  %v616_v43 = vrot.slane %v614_v15, 7  ;;  %v622_v44 = vrot.slane %v620_v23, 7 }
  0xa0   : > { %826 = vrot.lane.b32.xlu1 %v735_v5, %s2434_s26  ;;  %v2675_v19 = vsel %vm486_vm4, %v2415_v58, %v483_v9  ;;  %v2687_v33 = vsel %vm486_vm4, %v2416_v3, %v485_v25  ;;  %v695_v58 = vrot.slane %v599_v21, 1  ;;  %v2718_v59 = vor.u32 %v599_v21, %v598_v35 }
  0xa1   : > { %777 = vrot.lane.b32.xlu0 %v2594_v14, %s2433_s25  ;;  %v626_v26 = vshrl.u32 %v2675_v19, 16  ;;  %v632_v38 = vshrl.u32 %v2687_v33, 16  ;;  %v611_v14 = vshll.u32 %v2653_v57, 16  ;;  %v635_v30 = vshll.u32 %v2687_v33, 16 }
  0xa2   : > { %v697_v3 = vrot.slane %v605_v42, 1  ;;  %v2734_v5 = vor.u32 %v623_v0, %v622_v44  ;;  %v696_v12 = vor.u32 %v695_v58, %v596_v6 }
  0xa3   : > { %v764_v39 = vpop.permute.xlu0 %763  ;;  %v628_v45 = vrot.slane %v626_v26, 7  ;;  %v815_v46 = vpop.permute.xlu1 %814  ;;  %v634_v50 = vrot.slane %v632_v38, 7  ;;  %v2722_v61 = vor.u32 %v611_v14, %v610_v37  ;;  %v699_v21 = vrot.slane %v611_v14, 1 }
  0xa4   : > { %779 = vrot.lane.b32.xlu1 %v2597_v17, %s2433_s25  ;;  %v851_v16 = vsel %vm848_vm8, %v658_v53, %v764_v39  ;;  %v2714_v53 = vor.u32 %v593_v54, %v592_v13  ;;  %v629_v17 = vshll.u32 %v2675_v19, 16  ;;  %v2728_v54 = vor.u32 %v617_v28, %v616_v43 }
  0xa5   : > { %828 = vrot.lane.b32.xlu0 %v736_v27, %s2434_s26  ;;  %v2708_v51 = vsel %vm900_vm9, %v851_v16, %v815_v46  ;;  %v2738_v10 = vor.u32 %v635_v30, %v634_v50  ;;  %v698_v13 = vor.u32 %v697_v3, %v602_v7  ;;  %v701_v27 = vrot.slane %v617_v28, 1 }
  0xa6   : > { %2233 = vmatprep.mubr.msk.bf16.mxu0 %vm951_vm10, %v2708_v51  ;;  %v2736_v9 = vor.u32 %v629_v17, %v628_v45  ;;  %v700_v6 = vor.u32 %v699_v21, %v608_v8  ;;  %v705_v35 = vrot.slane %v629_v17, 1  ;;  %v707_v36 = vrot.slane %v635_v30, 1 }
  0xa7   : > { %v740_v25 = vsel %vm2516_vm2, %v698_v13, 0  ;;  %v662_v46 = vsel %vm2633_vm7, 0, %v2607_v31  ;;  %v663_v31 = vsel %vm2633_vm7, 0, %v2637_v48  ;;  %v665_v13 = vsel %vm2633_vm7, 0, %v2691_v34 }
  0xa8   : > { %830 = vrot.lane.b32.xlu1 %v737_v32, %s2434_s26  ;;  %v741_v7 = vsel %vm2516_vm2, %v700_v6, 0  ;;  %v703_v32 = vrot.slane %v623_v0, 1 }
  0xa9   : > { %781 = vrot.lane.b32.xlu0 %v2621_v41, %s2433_s25  ;;  %v739_v41 = vsel %vm2516_vm2, %v696_v12, 0 }
  0xaa   : > { %v704_v8 = vor.u32 %v703_v32, %v620_v23  ;;  %v708_v23 = vor.u32 %v707_v36, %v632_v38  ;;  %v667_v32 = vsel %vm2633_vm7, 0, %v2714_v53 }
  0xac   : > { %783 = vrot.lane.b32.xlu1 %v2647_v55, %s2433_s25  ;;  %v702_v55 = vor.u32 %v701_v27, %v614_v15  ;;  %v743_v15 = vsel %vm2516_vm2, %v704_v8, 0  ;;  %v666_v27 = vsel %vm2633_vm7, 0, %v2712_v52 }
  0xad   : > { %832 = vrot.lane.b32.xlu0 %v738_v1, %s2434_s26 }
  0xb0   : > { %834 = vrot.lane.b32.xlu1 %v739_v41, %s2434_s26 }
  0xb1   : > { %785 = vrot.lane.b32.xlu0 %v2650_v56, %s2433_s25  ;;  %v742_v56 = vsel %vm2516_vm2, %v702_v55, 0 }
  0xb4   : > { %787 = vrot.lane.b32.xlu1 %v2653_v57, %s2433_s25  ;;  %v706_v57 = vor.u32 %v705_v35, %v626_v26 }
  0xb5   : > { %836 = vrot.lane.b32.xlu0 %v740_v25, %s2434_s26 }
  0xb8   : > { %838 = vrot.lane.b32.xlu1 %v741_v7, %s2434_s26 }
  0xb9   : > { %789 = vrot.lane.b32.xlu0 %v2659_v62, %s2433_s25  ;;  %v744_v62 = vsel %vm2516_vm2, %v706_v57, 0  ;;  %v668_v57 = vsel %vm2633_vm7, 0, %v2718_v59 }
  0xbc   : > { %791 = vrot.lane.b32.xlu1 %v2662_v2, %s2433_s25  ;;  %v745_v2 = vsel %vm2516_vm2, %v708_v23, 0  ;;  %v669_v23 = vsel %vm2633_vm7, 0, %v2720_v60 }
  0xbd   : > { %840 = vrot.lane.b32.xlu0 %v742_v56, %s2434_s26 }
  0xc0   : > { %842 = vrot.lane.b32.xlu1 %v743_v15, %s2434_s26 }
  0xc1   : > { %793 = vrot.lane.b32.xlu0 %v2675_v19, %s2433_s25  ;;  %v659_v19 = vsel %vm2633_vm7, 0, %v2572_v49 }
  0xc4   : > { %795 = vrot.lane.b32.xlu1 %v2687_v33, %s2433_s25  ;;  %v2422_v33 = vld [vmem:[%s3088_s2 + $0x20] ss:$0 sps:$4 sm:$0xff]  }
  0xc5   : > { %844 = vrot.lane.b32.xlu0 %v744_v62, %s2434_s26  ;;  %v1338_v14 = vsel %vm984_vm3, %v2422_v33, 0 }
  0xc8   : > { %846 = vrot.lane.b32.xlu1 %v745_v2, %s2434_s26 }
  0xf7   : > { %v766_v37 = vpop.permute.xlu1 %765 }
  0xf8   : > { %v854_v39 = vsel %vm848_vm8, %v659_v19, %v766_v37  ;;  %v670_v19 = vsel %vm2633_vm7, 0, %v2722_v61 }
  0xfb   : > { %v768_v26 = vpop.permute.xlu0 %767 }
  0xfc   : > { %v857_v42 = vsel %vm848_vm8, %v660_v18, %v768_v26 }
  0xff   : > { %v817_v40 = vpop.permute.xlu0 %816 }
 0x100   : > { %v904_v38 = vsel %vm900_vm9, %v854_v39, %v817_v40 }
 0x101   : > { %2197 = vmatprep.mubr.msk.bf16.mxu1 %vm951_vm10, %v904_v38  ;;  %2234 = vmatmul.mubr.msk.bf16.vlgmr.msra.gmra.mrb[0].mxu0 %vm951_vm10, %v904_v38  ;;  %v671_v38 = vsel %vm2633_vm7, 0, %v2728_v54 }
 0x102   : > { %v819_v49 = vpop.permute.xlu1 %818  ;;  %2266 = vmatpush3.bf16.msra.mxu0 %v2560_v29 }
 0x103   : > { %v906_v43 = vsel %vm900_vm9, %v857_v42, %v819_v49  ;;  %v770_v16 = vpop.permute.xlu0 %769  ;;  %2372 = vmatprep.subr.msk.bf16.mxu0 %vm984_vm3, %v2422_v33 }
 0x104   : > { %2198 = vmatmul.mubr.msk.bf16.vlgmr.msra.gmra.mrb[0].mxu1 %vm951_vm10, %v906_v43  ;;  %2237 = vmatprep.mubr.msk.bf16.mxu0 %vm951_vm10, %v906_v43  ;;  %v860_v29 = vsel %vm848_vm8, %v661_v63, %v770_v16 }
 0x105   : > { %2303 = vmatpush3.bf16.msra.mxu1 %v2530_v20 }
 0x106   : > { %v772_v28 = vpop.permute.xlu1 %771  ;;  %2268 = vmatpush3.bf16.msra.mxu0 %v1338_v14  ;;  %2371 = vmatprep.subr.msk.bf16.mxu1 %vm984_vm3, %v2540_v22 }
 0x107   : > { %v821_v44 = vpop.permute.xlu0 %820  ;;  %v863_v20 = vsel %vm848_vm8, %v662_v46, %v772_v28  ;;  %v673_v28 = vsel %vm2633_vm7, 0, %v2736_v9  ;;  %v674_v46 = vsel %vm2633_vm7, 0, %v2738_v10 }
 0x108   : > { %v908_v45 = vsel %vm900_vm9, %v860_v29, %v821_v44 }
 0x109   : > { %2201 = vmatprep.mubr.msk.bf16.mxu1 %vm951_vm10, %v908_v45  ;;  %2238 = vmatmul.mubr.msk.bf16.gmra.mrb[4].mxu0 %vm951_vm10, %v908_v45 }
 0x10a   : > { %v823_v11 = vpop.permute.xlu1 %822  ;;  %2304 = vmatpush3.bf16.msra.mxu1 %v2549_v24  ;;  %v664_v24 = vsel %vm2633_vm7, 0, %v2665_v4 }
 0x10b   : > { %v910_v22 = vsel %vm900_vm9, %v863_v20, %v823_v11  ;;  %v774_v50 = vpop.permute.xlu0 %773 }
 0x10c   : > { %2202 = vmatmul.mubr.msk.bf16.gmra.mrb[4].mxu1 %vm951_vm10, %v910_v22  ;;  %2241 = vmatprep.mubr.msk.bf16.mxu0 %vm951_vm10, %v910_v22  ;;  %v866_v0 = vsel %vm848_vm8, %v663_v31, %v774_v50 }
 0x10e   : > { %v776_v58 = vpop.permute.xlu1 %775 }
 0x10f   : > { %v825_v17 = vpop.permute.xlu0 %824  ;;  %v869_v1 = vsel %vm848_vm8, %v664_v24, %v776_v58 }
 0x110   : > { %v912_v30 = vsel %vm900_vm9, %v866_v0, %v825_v17 }
 0x111   : > { %2205 = vmatprep.mubr.msk.bf16.mxu1 %vm951_vm10, %v912_v30  ;;  %2242 = vmatmul.mubr.msk.bf16.gmra.mrb[8].mxu0 %vm951_vm10, %v912_v30 }
 0x112   : > { %v827_v3 = vpop.permute.xlu1 %826 }
 0x113   : > { %v914_v12 = vsel %vm900_vm9, %v869_v1, %v827_v3  ;;  %v778_v48 = vpop.permute.xlu0 %777 }
 0x114   : > { %2206 = vmatmul.mubr.msk.bf16.gmra.mrb[8].mxu1 %vm951_vm10, %v914_v12  ;;  %2245 = vmatprep.mubr.msk.bf16.mxu0 %vm951_vm10, %v914_v12  ;;  %v872_v4 = vsel %vm848_vm8, %v665_v13, %v778_v48 }
 0x116   : > { %v780_v41 = vpop.permute.xlu1 %779 }
 0x117   : > { %v829_v21 = vpop.permute.xlu0 %828  ;;  %v875_v6 = vsel %vm848_vm8, %v666_v27, %v780_v41 }
 0x118   : > { %v916_v25 = vsel %vm900_vm9, %v872_v4, %v829_v21 }
 0x119   : > { %2209 = vmatprep.mubr.msk.bf16.mxu1 %vm951_vm10, %v916_v25  ;;  %2246 = vmatmul.mubr.msk.bf16.gmra.mrb[12].mxu0 %vm951_vm10, %v916_v25 }
 0x11a   : > { %v831_v55 = vpop.permute.xlu1 %830  ;;  %2269 = vmatprep.mubr.msk.bf16.mxu0 %vm951_vm10, %v906_v43  ;;  %v672_v43 = vsel %vm2633_vm7, 0, %v2734_v5 }
 0x11b   : > { %v918_v34 = vsel %vm900_vm9, %v875_v6, %v831_v55  ;;  %v782_v7 = vpop.permute.xlu0 %781 }
 0x11c   : > { %2210 = vmatmul.mubr.msk.bf16.gmra.mrb[12].mxu1 %vm951_vm10, %v918_v34  ;;  %v878_v52 = vsel %vm848_vm8, %v667_v32, %v782_v7 }
 0x11e   : > { %v784_v56 = vpop.permute.xlu1 %783 }
 0x11f   : > { %v833_v35 = vpop.permute.xlu0 %832  ;;  %v881_v15 = vsel %vm848_vm8, %v668_v57, %v784_v56 }
 0x120   : > { %v920_v8 = vsel %vm900_vm9, %v878_v52, %v833_v35 }
 0x121   : > { %2213 = vmatprep.mubr.msk.bf16.mxu1 %vm951_vm10, %v920_v8  ;;  %2270 = vmatmul.mubr.msk.bf16.vlgmr.msra.gmra.mrb[0].mxu0 %vm951_vm10, %v908_v45 }
 0x122   : > { %v835_v36 = vpop.permute.xlu1 %834  ;;  %2273 = vmatprep.mubr.msk.bf16.mxu0 %vm951_vm10, %v910_v22 }
 0x123   : > { %v922_v53 = vsel %vm900_vm9, %v881_v15, %v835_v36  ;;  %v786_v62 = vpop.permute.xlu0 %785 }
 0x124   : > { %2214 = vmatmul.mubr.msk.bf16.gmra.mrb[16].mxu1 %vm951_vm10, %v922_v53  ;;  %v884_v59 = vsel %vm848_vm8, %v669_v23, %v786_v62 }
 0x126   : > { %v788_v2 = vpop.permute.xlu1 %787 }
 0x127   : > { %v837_v26 = vpop.permute.xlu0 %836  ;;  %v887_v39 = vsel %vm848_vm8, %v670_v19, %v788_v2 }
 0x128   : > { %v924_v37 = vsel %vm900_vm9, %v884_v59, %v837_v26 }
 0x129   : > { %2217 = vmatprep.mubr.msk.bf16.mxu1 %vm951_vm10, %v924_v37  ;;  %2274 = vmatmul.mubr.msk.bf16.gmra.mrb[4].mxu0 %vm951_vm10, %v912_v30 }
 0x12a   : > { %v839_v40 = vpop.permute.xlu1 %838  ;;  %2277 = vmatprep.mubr.msk.bf16.mxu0 %vm951_vm10, %v914_v12 }
 0x12b   : > { %v926_v60 = vsel %vm900_vm9, %v887_v39, %v839_v40  ;;  %v790_v33 = vpop.permute.xlu0 %789 }
 0x12c   : > { %2218 = vmatmul.mubr.msk.bf16.gmra.mrb[20].mxu1 %vm951_vm10, %v926_v60  ;;  %v890_v61 = vsel %vm848_vm8, %v671_v38, %v790_v33 }
 0x12e   : > { %v792_v18 = vpop.permute.xlu1 %791 }
 0x12f   : > { %v841_v42 = vpop.permute.xlu0 %840  ;;  %v893_v16 = vsel %vm848_vm8, %v672_v43, %v792_v18 }
 0x130   : > { %v928_v49 = vsel %vm900_vm9, %v890_v61, %v841_v42 }
 0x131   : > { %2221 = vmatprep.mubr.msk.bf16.mxu1 %vm951_vm10, %v928_v49  ;;  %2278 = vmatmul.mubr.msk.bf16.gmra.mrb[8].mxu0 %vm951_vm10, %v916_v25 }
 0x132   : > { %v843_v14 = vpop.permute.xlu1 %842  ;;  %2281 = vmatprep.mubr.msk.bf16.mxu0 %vm951_vm10, %v918_v34 }
 0x133   : > { %v930_v54 = vsel %vm900_vm9, %v893_v16, %v843_v14  ;;  %v794_v63 = vpop.permute.xlu0 %793 }
 0x134   : > { %2222 = vmatmul.mubr.msk.bf16.gmra.mrb[24].mxu1 %vm951_vm10, %v930_v54  ;;  %v896_v5 = vsel %vm848_vm8, %v673_v28, %v794_v63 }
 0x136   : > { %v796_v29 = vpop.permute.xlu1 %795 }
 0x137   : > { %v845_v44 = vpop.permute.xlu0 %844  ;;  %v899_v20 = vsel %vm848_vm8, %v674_v46, %v796_v29 }
 0x138   : > { %v932_v45 = vsel %vm900_vm9, %v896_v5, %v845_v44 }
 0x139   : > { %2225 = vmatprep.mubr.msk.bf16.mxu1 %vm951_vm10, %v932_v45  ;;  %2282 = vmatmul.mubr.msk.bf16.gmra.mrb[12].mxu0 %vm951_vm10, %v920_v8 }
 0x13a   : > { %v847_v11 = vpop.permute.xlu1 %846  ;;  %2285 = vmatprep.mubr.msk.bf16.mxu0 %vm951_vm10, %v922_v53 }
 0x13b   : > { %v934_v9 = vsel %vm900_vm9, %v899_v20, %v847_v11 }
 0x13c   : > { %2226 = vmatmul.mubr.msk.bf16.gmra.mrb[28].mxu1 %vm951_vm10, %v934_v9 }
 0x13d   : > { %2249 = vmatprep.mubr.msk.bf16.mxu1 %vm951_vm10, %v918_v34 }
 0x141   : > { %2286 = vmatmul.mubr.msk.bf16.gmra.mrb[16].mxu0 %vm951_vm10, %v924_v37 }
 0x142   : > { %2289 = vmatprep.mubr.msk.bf16.mxu0 %vm951_vm10, %v926_v60 }
 0x144   : > { %2250 = vmatmul.mubr.msk.bf16.vlgmr.msra.gmra.mrb[16].mxu1 %vm951_vm10, %v920_v8 }
 0x145   : > { %2253 = vmatprep.mubr.msk.bf16.mxu1 %vm951_vm10, %v922_v53 }
 0x149   : > { %2290 = vmatmul.mubr.msk.bf16.gmra.mrb[20].mxu0 %vm951_vm10, %v928_v49 }
 0x14a   : > { %2293 = vmatprep.mubr.msk.bf16.mxu0 %vm951_vm10, %v930_v54 }
 0x14c   : > { %2254 = vmatmul.mubr.msk.bf16.gmra.mrb[20].mxu1 %vm951_vm10, %v924_v37 }
 0x14d   : > { %2257 = vmatprep.mubr.msk.bf16.mxu1 %vm951_vm10, %v926_v60 }
 0x151   : > { %2294 = vmatmul.mubr.msk.bf16.gmra.mrb[24].mxu0 %vm951_vm10, %v932_v45 }
 0x152   : > { %2297 = vmatprep.mubr.msk.bf16.mxu0 %vm951_vm10, %v934_v9 }
 0x154   : > { %2258 = vmatmul.mubr.msk.bf16.gmra.mrb[24].mxu1 %vm951_vm10, %v928_v49 }
 0x155   : > { %2261 = vmatprep.mubr.msk.bf16.mxu1 %vm951_vm10, %v930_v54 }
 0x159   : > { %2298 = vmatmul.mubr.msk.bf16.gmra.mrb[28].mxu0 %vm951_vm10, %v2708_v51 }
 0x15c   : > { %2262 = vmatmul.mubr.msk.bf16.gmra.mrb[28].mxu1 %vm951_vm10, %v932_v45 }
 0x1d7   : > { %v2199_v47 = vpop.f32.mrb[0].mxu1 }
 0x1d8   : > { %v1022_v10 = vpop.f32.mrb[1].mxu1 }
 0x1d9   : > { %v2200_v22 = vpop.f32.mrb[2].mxu1 }
 0x1da   : > { %v1025_v50 = vpop.f32.mrb[3].mxu1 }
 0x1df   : > { %v2203_v31 = vpop.f32.mrb[4].mxu1 }
 0x1e0   : > { %v1038_v58 = vpop.f32.mrb[5].mxu1 }
 0x1e1   : > { %v2204_v0 = vpop.f32.mrb[6].mxu1 }
 0x1e2   : > { %v1041_v17 = vpop.f32.mrb[7].mxu1 }
 0x1e7   : > { %v2920_v30 = vpop.f32.mrb[8].mxu1 }
 0x1e8   : > { %v2922_v24 = vpop.f32.mrb[9].mxu1 }
 0x1e9   : > { %v2924_v1 = vpop.f32.mrb[10].mxu1 }
 0x1ea   : > { %v2926_v3 = vpop.f32.mrb[11].mxu1 }
 0x1ef   : > { %v2928_v51 = vpop.f32.mrb[12].mxu1 }
 0x1f0   : > { %v2930_v12 = vpop.f32.mrb[13].mxu1 }
 0x1f1   : > { %v2932_v48 = vpop.f32.mrb[14].mxu1 }
 0x1f2   : > { %v2934_v13 = vpop.f32.mrb[15].mxu1 }
 0x1f4   : > { %v2271_v41 = vpop.f32.mrb[0].mxu0 }
 0x1f5   : > { %v2305_v4 = vadd.f32 %v2271_v41, %v2199_v47  ;;  %v1374_v21 = vpop.f32.mrb[1].mxu0 }
 0x1f6   : > { %v2306_v25 = vadd.f32 %v1374_v21, %v1022_v10  ;;  %v2272_v27 = vpop.f32.mrb[2].mxu0 }
 0x1f7   : > { %v2109_v6 = vpack.c.bf16 %v2305_v4, %v2305_v4  ;;  %v2307_v55 = vadd.f32 %v2272_v27, %v2200_v22  ;;  %v1377_v34 = vpop.f32.mrb[3].mxu0  ;;  %v1765_v52 = vmul.f32 %v2305_v4, %v2305_v4  ;;  %v1697_v23 = vsel %vm486_vm4, %v2305_v4, 0.0 }
 0x1f8   : > { %v2107_v7 = vpack.c.bf16 %v2306_v25, %v2306_v25  ;;  %v1763_v32 = vmul.f32 %v2306_v25, %v2306_v25  ;;  %v2308_v56 = vadd.f32 %v1377_v34, %v1025_v50  ;;  %v1694_v8 = vsel %vm486_vm4, %v2306_v25, 0.0 }
 0x1f9   : > { %1664 = vst.msk [vmem:[%s2940_s18 + $0x8] sm:$0xf] %vm1661_vm11, %v2109_v6  ;;  %v2110_v35 = vpack.c.bf16 %v2307_v55, %v2307_v55  ;;  %v1766_v53 = vmul.f32 %v2307_v55, %v2307_v55  ;;  %v1798_v60 = vsel %vm486_vm4, %v1765_v52, 0.0  ;;  %v1699_v18 = vsel %vm486_vm4, %v2307_v55, 0.0 }
 0x1fa   : > { %1662 = vst.msk [vmem:[%s2940_s18] sm:$0xf] %vm1661_vm11, %v2107_v7  ;;  %v2108_v57 = vpack.c.bf16 %v2308_v56, %v2308_v56  ;;  %v1695_v15 = vsel %vm486_vm4, %v2308_v56, 0.0  ;;  %v1764_v36 = vmul.f32 %v2308_v56, %v2308_v56  ;;  %v1795_v2 = vsel %vm486_vm4, %v1763_v32, 0.0 }
 0x1fb   : > { %1665 = vst.msk [vmem:[%s2940_s18 + $0xc] sm:$0xf] %vm1661_vm11, %v2110_v35  ;;  %v1696_v62 = vadd.f32 %v1695_v15, %v1694_v8  ;;  %v1800_v61 = vsel %vm486_vm4, %v1766_v53, 0.0 }
 0x1fc   : > { %1663 = vst.msk [vmem:[%s2940_s18 + $0x4] sm:$0xf] %vm1661_vm11, %v2108_v57  ;;  %v1796_v59 = vsel %vm486_vm4, %v1764_v36, 0.0  ;;  %v2275_v26 = vpop.f32.mrb[4].mxu0 }
 0x1fd   : > { %v1698_v37 = vadd.f32 %v1697_v23, %v1696_v62  ;;  %v1797_v19 = vadd.f32 %v1796_v59, %v1795_v2  ;;  %v2309_v39 = vadd.f32 %v2275_v26, %v2203_v31  ;;  %v1390_v40 = vpop.f32.mrb[5].mxu0 }
 0x1fe   : > { %v2310_v33 = vadd.f32 %v1390_v40, %v1038_v58  ;;  %v2276_v38 = vpop.f32.mrb[6].mxu0 }
 0x1ff   : > { %v1799_v42 = vadd.f32 %v1798_v60, %v1797_v19  ;;  %v2113_v49 = vpack.c.bf16 %v2309_v39, %v2309_v39  ;;  %v1393_v43 = vpop.f32.mrb[7].mxu0  ;;  %v1700_v14 = vadd.f32 %v1699_v18, %v1698_v37  ;;  %v2311_v29 = vadd.f32 %v2276_v38, %v2204_v0 }
 0x200   : > { %v2111_v16 = vpack.c.bf16 %v2310_v33, %v2310_v33  ;;  %v1701_v54 = vsel %vm486_vm4, %v2310_v33, 0.0  ;;  %v1767_v63 = vmul.f32 %v2310_v33, %v2310_v33  ;;  %v2312_v5 = vadd.f32 %v1393_v43, %v1041_v17 }
 0x201   : > { %1668 = vst.msk [vmem:[%s2940_s18 + $0x18] sm:$0xf] %vm1661_vm11, %v2113_v49  ;;  %v1801_v28 = vadd.f32 %v1800_v61, %v1799_v42  ;;  %v1702_v44 = vadd.f32 %v1701_v54, %v1700_v14  ;;  %v1769_v46 = vmul.f32 %v2309_v39, %v2309_v39  ;;  %v2114_v11 = vpack.c.bf16 %v2311_v29, %v2311_v29 }
 0x202   : > { %1666 = vst.msk [vmem:[%s2940_s18 + $0x10] sm:$0xf] %vm1661_vm11, %v2111_v16  ;;  %v1802_v45 = vsel %vm486_vm4, %v1767_v63, 0.0  ;;  %v2112_v9 = vpack.c.bf16 %v2312_v5, %v2312_v5  ;;  %v1703_v47 = vsel %vm486_vm4, %v2312_v5, 0.0  ;;  %v1768_v10 = vmul.f32 %v2312_v5, %v2312_v5 }
 0x203   : > { %v1803_v20 = vadd.f32 %v1802_v45, %v1801_v28  ;;  %1669 = vst.msk [vmem:[%s2940_s18 + $0x1c] sm:$0xf] %vm1661_vm11, %v2114_v11  ;;  %v1704_v50 = vadd.f32 %v1703_v47, %v1702_v44  ;;  %v1705_v0 = vsel %vm486_vm4, %v2309_v39, 0.0  ;;  %v1770_v17 = vmul.f32 %v2311_v29, %v2311_v29 }
 0x204   : > { %v2279_v22 = vpop.f32.mrb[8].mxu0  ;;  %1667 = vst.msk [vmem:[%s2940_s18 + $0x14] sm:$0xf] %vm1661_vm11, %v2112_v9  ;;  %v1804_v41 = vsel %vm486_vm4, %v1768_v10, 0.0  ;;  %v1806_v25 = vsel %vm486_vm4, %v1769_v46, 0.0 }
 0x205   : > { %v2313_v31 = vadd.f32 %v2279_v22, %v2920_v30  ;;  %v1406_v58 = vpop.f32.mrb[9].mxu0  ;;  %v1706_v27 = vadd.f32 %v1705_v0, %v1704_v50  ;;  %v1805_v6 = vadd.f32 %v1804_v41, %v1803_v20  ;;  %v1707_v30 = vsel %vm486_vm4, %v2311_v29, 0.0 }
 0x206   : > { %v2314_v4 = vadd.f32 %v1406_v58, %v2922_v24  ;;  %v2280_v21 = vpop.f32.mrb[10].mxu0  ;;  %v1808_v57 = vsel %vm486_vm4, %v1770_v17, 0.0 }
 0x207   : > { %v2117_v55 = vpack.c.bf16 %v2313_v31, %v2313_v31  ;;  %v1409_v34 = vpop.f32.mrb[11].mxu0  ;;  %v1807_v52 = vadd.f32 %v1806_v25, %v1805_v6  ;;  %v1708_v35 = vadd.f32 %v1707_v30, %v1706_v27  ;;  %v2315_v24 = vadd.f32 %v2280_v21, %v2924_v1 }
 0x208   : > { %v2115_v7 = vpack.c.bf16 %v2314_v4, %v2314_v4  ;;  %v1709_v32 = vsel %vm486_vm4, %v2314_v4, 0.0  ;;  %v1771_v56 = vmul.f32 %v2314_v4, %v2314_v4  ;;  %v2316_v8 = vadd.f32 %v1409_v34, %v2926_v3 }
 0x209   : > { %1672 = vst.msk [vmem:[%s2940_s18 + $0x28] sm:$0xf] %vm1661_vm11, %v2117_v55  ;;  %v1773_v36 = vmul.f32 %v2313_v31, %v2313_v31  ;;  %v1710_v53 = vadd.f32 %v1709_v32, %v1708_v35  ;;  %v1809_v62 = vadd.f32 %v1808_v57, %v1807_v52  ;;  %v2118_v23 = vpack.c.bf16 %v2315_v24, %v2315_v24 }
 0x20a   : > { %1670 = vst.msk [vmem:[%s2940_s18 + $0x20] sm:$0xf] %vm1661_vm11, %v2115_v7  ;;  %v1810_v15 = vsel %vm486_vm4, %v1771_v56, 0.0  ;;  %v2116_v2 = vpack.c.bf16 %v2316_v8, %v2316_v8  ;;  %v1711_v59 = vsel %vm486_vm4, %v2316_v8, 0.0  ;;  %v1772_v26 = vmul.f32 %v2316_v8, %v2316_v8 }
 0x20b   : > { %v1811_v19 = vadd.f32 %v1810_v15, %v1809_v62  ;;  %1673 = vst.msk [vmem:[%s2940_s18 + $0x2c] sm:$0xf] %vm1661_vm11, %v2118_v23  ;;  %v1712_v1 = vadd.f32 %v1711_v59, %v1710_v53  ;;  %v1713_v40 = vsel %vm486_vm4, %v2313_v31, 0.0  ;;  %v1774_v60 = vmul.f32 %v2315_v24, %v2315_v24 }
 0x20c   : > { %v2283_v37 = vpop.f32.mrb[12].mxu0  ;;  %1671 = vst.msk [vmem:[%s2940_s18 + $0x24] sm:$0xf] %vm1661_vm11, %v2116_v2  ;;  %v1812_v33 = vsel %vm486_vm4, %v1772_v26, 0.0  ;;  %v1814_v61 = vsel %vm486_vm4, %v1773_v36, 0.0 }
 0x20d   : > { %v2317_v3 = vadd.f32 %v2283_v37, %v2928_v51  ;;  %v1422_v39 = vpop.f32.mrb[13].mxu0  ;;  %v1714_v42 = vadd.f32 %v1713_v40, %v1712_v1  ;;  %v1813_v49 = vadd.f32 %v1812_v33, %v1811_v19  ;;  %v1715_v51 = vsel %vm486_vm4, %v2315_v24, 0.0 }
 0x20e   : > { %v2318_v38 = vadd.f32 %v1422_v39, %v2930_v12  ;;  %v2284_v18 = vpop.f32.mrb[14].mxu0  ;;  %v1816_v44 = vsel %vm486_vm4, %v1774_v60, 0.0 }
 0x20f   : > { %v2121_v43 = vpack.c.bf16 %v2317_v3, %v2317_v3  ;;  %v1425_v16 = vpop.f32.mrb[15].mxu0  ;;  %v1815_v28 = vadd.f32 %v1814_v61, %v1813_v49  ;;  %v1716_v29 = vadd.f32 %v1715_v51, %v1714_v42  ;;  %v2319_v12 = vadd.f32 %v2284_v18, %v2932_v48 }
 0x210   : > { %v2119_v14 = vpack.c.bf16 %v2318_v38, %v2318_v38  ;;  %v1717_v54 = vsel %vm486_vm4, %v2318_v38, 0.0  ;;  %v1775_v63 = vmul.f32 %v2318_v38, %v2318_v38  ;;  %v2320_v5 = vadd.f32 %v1425_v16, %v2934_v13 }
 0x211   : > { %1676 = vst.msk [vmem:[%s2940_s18 + $0x38] sm:$0xf] %vm1661_vm11, %v2121_v43  ;;  %v1718_v46 = vadd.f32 %v1717_v54, %v1716_v29  ;;  %v1817_v20 = vadd.f32 %v1816_v44, %v1815_v28  ;;  %v2122_v11 = vpack.c.bf16 %v2319_v12, %v2319_v12  ;;  %v1777_v9 = vmul.f32 %v2317_v3, %v2317_v3 }
 0x212   : > { %1674 = vst.msk [vmem:[%s2940_s18 + $0x30] sm:$0xf] %vm1661_vm11, %v2119_v14  ;;  %v1818_v45 = vsel %vm486_vm4, %v1775_v63, 0.0  ;;  %v2120_v47 = vpack.c.bf16 %v2320_v5, %v2320_v5  ;;  %v1719_v10 = vsel %vm486_vm4, %v2320_v5, 0.0  ;;  %v1776_v22 = vmul.f32 %v2320_v5, %v2320_v5 }
 0x213   : > { %v1819_v31 = vadd.f32 %v1818_v45, %v1817_v20  ;;  %1677 = vst.msk [vmem:[%s2940_s18 + $0x3c] sm:$0xf] %vm1661_vm11, %v2122_v11  ;;  %v1720_v48 = vadd.f32 %v1719_v10, %v1718_v46  ;;  %v1721_v58 = vsel %vm486_vm4, %v2317_v3, 0.0  ;;  %v1778_v0 = vmul.f32 %v2319_v12, %v2319_v12 }
 0x214   : > { %v2287_v50 = vpop.f32.mrb[16].mxu0  ;;  %1675 = vst.msk [vmem:[%s2940_s18 + $0x34] sm:$0xf] %vm1661_vm11, %v2120_v47  ;;  %v1820_v17 = vsel %vm486_vm4, %v1776_v22, 0.0  ;;  %v1822_v6 = vsel %vm486_vm4, %v1777_v9, 0.0  ;;  %v1723_v55 = vsel %vm486_vm4, %v2319_v12, 0.0 }
 0x215   : > { %v1438_v13 = vpop.f32.mrb[17].mxu0  ;;  %v1722_v4 = vadd.f32 %v1721_v58, %v1720_v48  ;;  %v1821_v21 = vadd.f32 %v1820_v17, %v1819_v31  ;;  %v1824_v35 = vsel %vm486_vm4, %v1778_v0, 0.0 }
 0x216   : > { %v2288_v41 = vpop.f32.mrb[18].mxu0 }
 0x217   : > { %v2251_v25 = vpop.f32.mrb[16].mxu1  ;;  %v1441_v27 = vpop.f32.mrb[19].mxu0  ;;  %v1823_v7 = vadd.f32 %v1822_v6, %v1821_v21  ;;  %v1724_v56 = vadd.f32 %v1723_v55, %v1722_v4 }
 0x218   : > { %v2321_v34 = vadd.f32 %v2287_v50, %v2251_v25  ;;  %v1261_v30 = vpop.f32.mrb[17].mxu1 }
 0x219   : > { %v2322_v32 = vadd.f32 %v1438_v13, %v1261_v30  ;;  %v2252_v52 = vpop.f32.mrb[18].mxu1  ;;  %v1825_v62 = vadd.f32 %v1824_v35, %v1823_v7 }
 0x21a   : > { %v2125_v24 = vpack.c.bf16 %v2321_v34, %v2321_v34  ;;  %v2323_v8 = vadd.f32 %v2288_v41, %v2252_v52  ;;  %v1264_v57 = vpop.f32.mrb[19].mxu1  ;;  %v1781_v1 = vmul.f32 %v2321_v34, %v2321_v34  ;;  %v1729_v43 = vsel %vm486_vm4, %v2321_v34, 0.0 }
 0x21b   : > { %v2123_v15 = vpack.c.bf16 %v2322_v32, %v2322_v32  ;;  %v1725_v36 = vsel %vm486_vm4, %v2322_v32, 0.0  ;;  %v1779_v53 = vmul.f32 %v2322_v32, %v2322_v32  ;;  %v2324_v37 = vadd.f32 %v1441_v27, %v1264_v57 }
 0x21c   : > { %1680 = vst.msk [vmem:[%s2940_s18 + $0x48] sm:$0xf] %vm1661_vm11, %v2125_v24  ;;  %v1726_v23 = vadd.f32 %v1725_v36, %v1724_v56  ;;  %v2126_v2 = vpack.c.bf16 %v2323_v8, %v2323_v8  ;;  %v2291_v59 = vpop.f32.mrb[20].mxu0  ;;  %v1782_v16 = vmul.f32 %v2323_v8, %v2323_v8  ;;  %v1830_v63 = vsel %vm486_vm4, %v1781_v1, 0.0 }
 0x21d   : > { %1678 = vst.msk [vmem:[%s2940_s18 + $0x40] sm:$0xf] %vm1661_vm11, %v2123_v15  ;;  %v1826_v26 = vsel %vm486_vm4, %v1779_v53, 0.0  ;;  %v1454_v19 = vpop.f32.mrb[21].mxu0  ;;  %v2124_v40 = vpack.c.bf16 %v2324_v37, %v2324_v37  ;;  %v1727_v60 = vsel %vm486_vm4, %v2324_v37, 0.0  ;;  %v1780_v33 = vmul.f32 %v2324_v37, %v2324_v37 }
 0x21e   : > { %v1827_v3 = vadd.f32 %v1826_v26, %v1825_v62  ;;  %1681 = vst.msk [vmem:[%s2940_s18 + $0x4c] sm:$0xf] %vm1661_vm11, %v2126_v2  ;;  %v2292_v39 = vpop.f32.mrb[22].mxu0  ;;  %v1728_v61 = vadd.f32 %v1727_v60, %v1726_v23  ;;  %v1731_v44 = vsel %vm486_vm4, %v2323_v8, 0.0  ;;  %v1832_v50 = vsel %vm486_vm4, %v1782_v16, 0.0 }
 0x21f   : > { %v2255_v38 = vpop.f32.mrb[20].mxu1  ;;  %v1457_v18 = vpop.f32.mrb[23].mxu0  ;;  %1679 = vst.msk [vmem:[%s2940_s18 + $0x44] sm:$0xf] %vm1661_vm11, %v2124_v40  ;;  %v1828_v51 = vsel %vm486_vm4, %v1780_v33, 0.0 }
 0x220   : > { %v2325_v42 = vadd.f32 %v2291_v59, %v2255_v38  ;;  %v1277_v49 = vpop.f32.mrb[21].mxu1  ;;  %v1730_v28 = vadd.f32 %v1729_v43, %v1728_v61  ;;  %v1829_v29 = vadd.f32 %v1828_v51, %v1827_v3 }
 0x221   : > { %v2326_v14 = vadd.f32 %v1454_v19, %v1277_v49  ;;  %v2256_v54 = vpop.f32.mrb[22].mxu1 }
 0x222   : > { %v2129_v12 = vpack.c.bf16 %v2325_v42, %v2325_v42  ;;  %v1280_v5 = vpop.f32.mrb[23].mxu1  ;;  %v1831_v11 = vadd.f32 %v1830_v63, %v1829_v29  ;;  %v1732_v9 = vadd.f32 %v1731_v44, %v1730_v28  ;;  %v2327_v47 = vadd.f32 %v2292_v39, %v2256_v54 }
 0x223   : > { %v2127_v45 = vpack.c.bf16 %v2326_v14, %v2326_v14  ;;  %v1733_v46 = vsel %vm486_vm4, %v2326_v14, 0.0  ;;  %v1783_v20 = vmul.f32 %v2326_v14, %v2326_v14  ;;  %v2328_v10 = vadd.f32 %v1457_v18, %v1280_v5 }
 0x224   : > { %1684 = vst.msk [vmem:[%s2940_s18 + $0x58] sm:$0xf] %vm1661_vm11, %v2129_v12  ;;  %v2295_v22 = vpop.f32.mrb[24].mxu0  ;;  %v1785_v13 = vmul.f32 %v2325_v42, %v2325_v42  ;;  %v1734_v58 = vadd.f32 %v1733_v46, %v1732_v9  ;;  %v1833_v0 = vadd.f32 %v1832_v50, %v1831_v11  ;;  %v2130_v17 = vpack.c.bf16 %v2327_v47, %v2327_v47 }
 0x225   : > { %1682 = vst.msk [vmem:[%s2940_s18 + $0x50] sm:$0xf] %vm1661_vm11, %v2127_v45  ;;  %v1834_v31 = vsel %vm486_vm4, %v1783_v20, 0.0  ;;  %v1470_v48 = vpop.f32.mrb[25].mxu0  ;;  %v2128_v4 = vpack.c.bf16 %v2328_v10, %v2328_v10  ;;  %v1735_v21 = vsel %vm486_vm4, %v2328_v10, 0.0  ;;  %v1784_v25 = vmul.f32 %v2328_v10, %v2328_v10 }
 0x226   : > { %v2296_v41 = vpop.f32.mrb[26].mxu0  ;;  %v1835_v55 = vadd.f32 %v1834_v31, %v1833_v0  ;;  %1685 = vst.msk [vmem:[%s2940_s18 + $0x5c] sm:$0xf] %vm1661_vm11, %v2130_v17  ;;  %v1736_v34 = vadd.f32 %v1735_v21, %v1734_v58  ;;  %v1737_v32 = vsel %vm486_vm4, %v2325_v42, 0.0  ;;  %v1786_v56 = vmul.f32 %v2327_v47, %v2327_v47 }
 0x227   : > { %v2259_v27 = vpop.f32.mrb[24].mxu1  ;;  %v1473_v6 = vpop.f32.mrb[27].mxu0  ;;  %1683 = vst.msk [vmem:[%s2940_s18 + $0x54] sm:$0xf] %vm1661_vm11, %v2128_v4  ;;  %v1836_v52 = vsel %vm486_vm4, %v1784_v25, 0.0  ;;  %v1838_v8 = vsel %vm486_vm4, %v1785_v13, 0.0 }
 0x228   : > { %v2329_v30 = vadd.f32 %v2295_v22, %v2259_v27  ;;  %v1293_v7 = vpop.f32.mrb[25].mxu1  ;;  %v1738_v57 = vadd.f32 %v1737_v32, %v1736_v34  ;;  %v1837_v15 = vadd.f32 %v1836_v52, %v1835_v55  ;;  %v1739_v62 = vsel %vm486_vm4, %v2327_v47, 0.0 }
 0x229   : > { %v2330_v35 = vadd.f32 %v1470_v48, %v1293_v7  ;;  %v2260_v24 = vpop.f32.mrb[26].mxu1  ;;  %v1840_v39 = vsel %vm486_vm4, %v1786_v56, 0.0 }
 0x22a   : > { %v2133_v36 = vpack.c.bf16 %v2329_v30, %v2329_v30  ;;  %v1296_v53 = vpop.f32.mrb[27].mxu1  ;;  %v1839_v26 = vadd.f32 %v1838_v8, %v1837_v15  ;;  %v1740_v37 = vadd.f32 %v1739_v62, %v1738_v57  ;;  %v2331_v19 = vadd.f32 %v2296_v41, %v2260_v24 }
 0x22b   : > { %v2131_v23 = vpack.c.bf16 %v2330_v35, %v2330_v35  ;;  %v1741_v2 = vsel %vm486_vm4, %v2330_v35, 0.0  ;;  %v1787_v59 = vmul.f32 %v2330_v35, %v2330_v35  ;;  %v2332_v1 = vadd.f32 %v1473_v6, %v1296_v53 }
 0x22c   : > { %1688 = vst.msk [vmem:[%s2940_s18 + $0x68] sm:$0xf] %vm1661_vm11, %v2133_v36  ;;  %v2299_v3 = vpop.f32.mrb[28].mxu0  ;;  %v1789_v33 = vmul.f32 %v2329_v30, %v2329_v30  ;;  %v1742_v38 = vadd.f32 %v1741_v2, %v1740_v37  ;;  %v1841_v18 = vadd.f32 %v1840_v39, %v1839_v26  ;;  %v2134_v61 = vpack.c.bf16 %v2331_v19, %v2331_v19 }
 0x22d   : > { %1686 = vst.msk [vmem:[%s2940_s18 + $0x60] sm:$0xf] %vm1661_vm11, %v2131_v23  ;;  %v1842_v40 = vsel %vm486_vm4, %v1787_v59, 0.0  ;;  %v1486_v60 = vpop.f32.mrb[29].mxu0  ;;  %v2132_v49 = vpack.c.bf16 %v2332_v1, %v2332_v1  ;;  %v1743_v43 = vsel %vm486_vm4, %v2332_v1, 0.0  ;;  %v1788_v16 = vmul.f32 %v2332_v1, %v2332_v1 }
 0x22e   : > { %v2300_v42 = vpop.f32.mrb[30].mxu0  ;;  %v1843_v54 = vadd.f32 %v1842_v40, %v1841_v18  ;;  %1689 = vst.msk [vmem:[%s2940_s18 + $0x6c] sm:$0xf] %vm1661_vm11, %v2134_v61  ;;  %v1744_v63 = vadd.f32 %v1743_v43, %v1742_v38  ;;  %v1745_v12 = vsel %vm486_vm4, %v2329_v30, 0.0  ;;  %v1790_v5 = vmul.f32 %v2331_v19, %v2331_v19 }
 0x22f   : > { %v2263_v51 = vpop.f32.mrb[28].mxu1  ;;  %v1489_v14 = vpop.f32.mrb[31].mxu0  ;;  %1687 = vst.msk [vmem:[%s2940_s18 + $0x64] sm:$0xf] %vm1661_vm11, %v2132_v49  ;;  %v1844_v44 = vsel %vm486_vm4, %v1788_v16, 0.0  ;;  %v1846_v20 = vsel %vm486_vm4, %v1789_v33, 0.0 }
 0x230   : > { %v2333_v28 = vadd.f32 %v2299_v3, %v2263_v51  ;;  %v1309_v29 = vpop.f32.mrb[29].mxu1  ;;  %v1746_v11 = vadd.f32 %v1745_v12, %v1744_v63  ;;  %v1845_v9 = vadd.f32 %v1844_v44, %v1843_v54  ;;  %v1747_v22 = vsel %vm486_vm4, %v2331_v19, 0.0 }
 0x231   : > { %v2334_v45 = vadd.f32 %v1486_v60, %v1309_v29  ;;  %v2264_v46 = vpop.f32.mrb[30].mxu1  ;;  %v1848_v41 = vsel %vm486_vm4, %v1790_v5, 0.0 }
 0x232   : > { %v2137_v47 = vpack.c.bf16 %v2333_v28, %v2333_v28  ;;  %v1312_v10 = vpop.f32.mrb[31].mxu1  ;;  %v1847_v13 = vadd.f32 %v1846_v20, %v1845_v9  ;;  %v1748_v58 = vadd.f32 %v1747_v22, %v1746_v11  ;;  %v2335_v0 = vadd.f32 %v2300_v42, %v2264_v46 }
 0x233   : > { %v2135_v50 = vpack.c.bf16 %v2334_v45, %v2334_v45  ;;  %v1749_v31 = vsel %vm486_vm4, %v2334_v45, 0.0  ;;  %v1791_v48 = vmul.f32 %v2334_v45, %v2334_v45  ;;  %v2336_v17 = vadd.f32 %v1489_v14, %v1312_v10 }
 0x234   : > { %1692 = vst.msk [vmem:[%s2940_s18 + $0x78] sm:$0xf] %vm1661_vm11, %v2137_v47  ;;  %v1750_v21 = vadd.f32 %v1749_v31, %v1748_v58  ;;  %v1849_v25 = vadd.f32 %v1848_v41, %v1847_v13  ;;  %v2138_v27 = vpack.c.bf16 %v2335_v0, %v2335_v0  ;;  %v1793_v6 = vmul.f32 %v2333_v28, %v2333_v28 }
 0x235   : > { %1690 = vst.msk [vmem:[%s2940_s18 + $0x70] sm:$0xf] %vm1661_vm11, %v2135_v50  ;;  %v1850_v4 = vsel %vm486_vm4, %v1791_v48, 0.0  ;;  %v2136_v55 = vpack.c.bf16 %v2336_v17, %v2336_v17  ;;  %v1751_v34 = vsel %vm486_vm4, %v2336_v17, 0.0  ;;  %v1792_v30 = vmul.f32 %v2336_v17, %v2336_v17 }
 0x236   : > { %v1851_v7 = vadd.f32 %v1850_v4, %v1849_v25  ;;  %1693 = vst.msk [vmem:[%s2940_s18 + $0x7c] sm:$0xf] %vm1661_vm11, %v2138_v27  ;;  %v1752_v32 = vadd.f32 %v1751_v34, %v1750_v21  ;;  %v1753_v56 = vsel %vm486_vm4, %v2333_v28, 0.0  ;;  %v1794_v52 = vmul.f32 %v2335_v0, %v2335_v0 }
 0x237   : > { %1691 = vst.msk [vmem:[%s2940_s18 + $0x74] sm:$0xf] %vm1661_vm11, %v2136_v55  ;;  %v1852_v35 = vsel %vm486_vm4, %v1792_v30, 0.0  ;;  %v1854_v57 = vsel %vm486_vm4, %v1793_v6, 0.0  ;;  %v1755_v15 = vsel %vm486_vm4, %v2335_v0, 0.0 }
 0x238   : > { %v1754_v24 = vadd.f32 %v1753_v56, %v1752_v32  ;;  %v1853_v8 = vadd.f32 %v1852_v35, %v1851_v7  ;;  %v1856_v62 = vsel %vm486_vm4, %v1794_v52, 0.0 }
 0x23a   : > { %v1756_v36 = vadd.f32 %v1755_v15, %v1754_v24  ;;  %v1855_v53 = vadd.f32 %v1854_v57, %v1853_v8 }
 0x23c   : > { %v1757_v23 = vrot.slane %v1756_v36, 4  ;;  %v1857_v2 = vadd.f32 %v1856_v62, %v1855_v53 }
 0x23e   : > { %v1758_v59 = vadd.f32 %v1757_v23, %v1756_v36  ;;  %v1858_v26 = vrot.slane %v1857_v2, 4 }
 0x240   : > { %v1759_v37 = vrot.slane %v1758_v59, 2  ;;  %v1859_v19 = vadd.f32 %v1858_v26, %v1857_v2 }
 0x242   : > { %v1760_v1 = vadd.f32 %v1759_v37, %v1758_v59  ;;  %v1860_v3 = vrot.slane %v1859_v19, 2 }
 0x244   : > { %v1761_v39 = vrot.slane %v1760_v1, 1  ;;  %v1861_v40 = vadd.f32 %v1860_v3, %v1859_v19 }
 0x246   : > { %v1862_v60 = vrot.slane %v1861_v40, 1  ;;  %v1762_v33 = vadd.f32 %v1761_v39, %v1760_v1 }
 0x248   : > { %v1863_v38 = vadd.f32 %v1862_v60, %v1861_v40 }
 0x24a   : > { %v1865_v18 = vsel %vm655_vm5, %v1762_v33, %v1863_v38 }
 0x24b   : > { %1867 = vst.msk [vmem:[%s228_s21] sm:$0x3] %vm1866_vm12, %v1865_v18 }
 0x24c PF: > { %s15_s15 = sadd.s32 1, %s2429_s15  }
 0x24d   : > { %p12_p4 = scmp.ge.s32.totalorder %s15_s15, 4  }
 0x24f   :  { %14 = sbr.rel (!%p12_p4) target bundleno = 1 (0x1), region = 79 }

</bundles_post_ra>
